<compile_context>
chip_gen: v7x
topology: tpu7x:2x2x1
jax: 0.10.0
libtpu: 0.0.40
codegen_flags: <defaults>
</compile_context>

<pallas_src>
import math
import functools

import jax
import jax.numpy as jnp
from jax.experimental import pallas as pl
from jax.experimental.pallas import tpu as pltpu


# ---------------------------------------------------------------------------
# Fused sequential LSTM kernel (time-major).
# ---------------------------------------------------------------------------
def _lstm_kernel(x_ref, w_ref, u_ref, b_ref, out_ref, h_sc, c_sc,
                 *, hidden_size, chunk, chains):
    """One grid step == `chunk` time steps for one batch shard.

    x_ref  : (Tc, Bs, I)  bf16  time-major input slab for this chunk
    w_ref  : (I, 4H)      bf16  input->gates weights   (resident)
    u_ref  : (H, 4H)      bf16  hidden->gates weights  (resident)
    b_ref  : (1, 4H)      f32   merged gate bias
    out_ref: (Tc, Bs, H)  f32   time-major h_t outputs for this chunk
    h_sc   : (Bs, H)      f32   hidden-state carry (persists across chunks)
    c_sc   : (Bs, H)      f32   cell-state carry   (persists across chunks)
    """
    t = pl.program_id(1)          # seq-chunk axis (innermost, "arbitrary")

    @pl.when(t == 0)
    def _():
        h_sc[...] = jnp.zeros_like(h_sc)
        c_sc[...] = jnp.zeros_like(c_sc)

    H = hidden_size
    Bs = h_sc.shape[0]
    rows = Bs // chains

    w = w_ref[...]                # (I, 4H) bf16, loaded once per chunk
    u = u_ref[...]                # (H, 4H) bf16, loaded once per chunk
    # Hoisted broadcast (JAX does not CSE broadcast_in_dim inside the loop).
    bias = jnp.broadcast_to(b_ref[...], (rows, 4 * H))

    def cell(x_rows, h, c):
        # x_rows: (rows, I) bf16; h, c: (rows, H) f32
        gates = (
            jnp.dot(x_rows, w, preferred_element_type=jnp.float32)
            + jnp.dot(h.astype(jnp.bfloat16), u, preferred_element_type=jnp.float32)
            + bias
        )                                              # (rows, 4H) f32
        i_t = jax.nn.sigmoid(gates[:, 0 * H:1 * H])
        f_t = jax.nn.sigmoid(gates[:, 1 * H:2 * H])
        g_t = jnp.tanh(gates[:, 2 * H:3 * H])
        o_t = jax.nn.sigmoid(gates[:, 3 * H:4 * H])
        c = f_t * c + i_t * g_t
        h = o_t * jnp.tanh(c)
        return h, c

    # Load carries once per chunk; keep them in registers through the
    # statically unrolled loop, write back once at the end.
    hs = [h_sc[j * rows:(j + 1) * rows, :] for j in range(chains)]
    cs = [c_sc[j * rows:(j + 1) * rows, :] for j in range(chains)]

    # Statically unrolled chunk loop; the `chains` sub-batches are independent
    # dependency chains so the scheduler can overlap MXU / EUP / VPU work.
    for k in range(chunk):
        for j in range(chains):
            x_kj = x_ref[k, j * rows:(j + 1) * rows, :]          # dense (rows, I)
            hs[j], cs[j] = cell(x_kj, hs[j], cs[j])
            out_ref[k, j * rows:(j + 1) * rows, :] = hs[j].astype(out_ref.dtype)

    for j in range(chains):
        h_sc[j * rows:(j + 1) * rows, :] = hs[j]
        c_sc[j * rows:(j + 1) * rows, :] = cs[j]


def _vmem_limit_bytes():
    """Conservative VMEM limit derived from the actual part (None -> default)."""
    try:
        cap = pltpu.get_tpu_info().vmem_capacity_bytes
        return min(int(cap * 0.9), 96 * 1024 * 1024)
    except Exception:
        return None


def lstm_forward(x, W, U, bias, *, chunk=8, batch_shards=1):
    """x: (batch, seq, input) f32 -> (batch, seq, hidden) f32 (module semantics)."""
    B, S, I = x.shape
    H = U.shape[0]
    assert W.shape == (I, 4 * H) and U.shape == (H, 4 * H) and bias.shape == (4 * H,)
    assert H % 128 == 0, "hidden_size must be a multiple of 128 (lane-aligned gates)"

    # One parallel HBM pass to time-major so every per-step access inside the
    # sequential kernel is a dense tile (no strided/masked vld/vst on the
    # serial critical path).  Much cheaper than the old G gate-slab round trip.
    x_tm = jnp.transpose(x, (1, 0, 2)).astype(jnp.bfloat16)     # (S, B, I)
    W_bf = W.astype(jnp.bfloat16)
    U_bf = U.astype(jnp.bfloat16)
    b2 = bias.reshape(1, 4 * H).astype(jnp.float32)

    # Seq chunk: largest divisor of S up to `chunk` (time is a leading block
    # dim, so no sublane-multiple requirement; never fall back to Tc = S).
    Tc = 1
    for cand in range(min(chunk, S), 0, -1):
        if S % cand == 0:
            Tc = cand
            break
    n_t = S // Tc

    # Batch shards: 1 on single-TC chips (v5e / v6e).  Multi-TC callers (v7x)
    # may pass batch_shards=2; only honored when each shard keeps a full bf16
    # sublane tile (>= 16 rows).
    n_b = 1
    if batch_shards > 1 and B % batch_shards == 0 and (B // batch_shards) % 16 == 0:
        n_b = batch_shards
    Bs = B // n_b

    # Two interleaved dependency chains when each keeps >= 16 rows.
    chains = 2 if Bs % 32 == 0 else 1

    kernel = functools.partial(_lstm_kernel, hidden_size=H, chunk=Tc, chains=chains)

    cp_kwargs = dict(dimension_semantics=("parallel", "arbitrary"))
    vmem_limit = _vmem_limit_bytes()
    if vmem_limit is not None:
        cp_kwargs["vmem_limit_bytes"] = vmem_limit

    out_tm = pl.pallas_call(
        kernel,
        out_shape=jax.ShapeDtypeStruct((S, B, H), jnp.float32),
        grid_spec=pltpu.PrefetchScalarGridSpec(
            num_scalar_prefetch=0,
            grid=(n_b, n_t),
            in_specs=[
                pl.BlockSpec((Tc, Bs, I), lambda b, t: (t, b, 0)),   # x slab
                pl.BlockSpec((I, 4 * H), lambda b, t: (0, 0)),       # W (resident)
                pl.BlockSpec((H, 4 * H), lambda b, t: (0, 0)),       # U (resident)
                pl.BlockSpec((1, 4 * H), lambda b, t: (0, 0)),       # bias
            ],
            out_specs=pl.BlockSpec((Tc, Bs, H), lambda b, t: (t, b, 0)),
            scratch_shapes=[
                pltpu.VMEM((Bs, H), jnp.float32),   # h carry
                pltpu.VMEM((Bs, H), jnp.float32),   # c carry
            ],
        ),
        compiler_params=pltpu.CompilerParams(**cp_kwargs),
    )(x_tm, W_bf, U_bf, b2)

    return jnp.transpose(out_tm, (1, 0, 2))            # back to (B, S, H)


# ---------------------------------------------------------------------------
# Pure-JAX f32 reference matching the PyTorch forward exactly.
# ---------------------------------------------------------------------------
def lstm_reference(x, W, U, bias):
    B, S, I = x.shape
    H = U.shape[0]
    h = jnp.zeros((B, H), jnp.float32)
    c = jnp.zeros((B, H), jnp.float32)

    def step(carry, x_t):
        h, c = carry
        gates = x_t @ W + h @ U + bias
        i_t = jax.nn.sigmoid(gates[:, :H])
        f_t = jax.nn.sigmoid(gates[:, H:2 * H])
        g_t = jnp.tanh(gates[:, 2 * H:3 * H])
        o_t = jax.nn.sigmoid(gates[:, 3 * H:])
        c = f_t * c + i_t * g_t
        h = o_t * jnp.tanh(c)
        return (h, c), h

    _, seq = jax.lax.scan(step, (h, c), jnp.transpose(x, (1, 0, 2)))
    return jnp.transpose(seq, (1, 0, 2))


if __name__ == "__main__":
    # Small, tile-friendly shapes consistent with the module's (batch, seq,
    # feature) input.  batch=32 exercises the two-chain interleaved path and
    # seq=32 with chunk=8 exercises the persistent carry across 4 chunks.
    batch, seq_len = 32, 32
    input_size, hidden_size = 128, 128

    key = jax.random.PRNGKey(0)
    kx, kw, ku, kb = jax.random.split(key, 4)

    stdv = 1.0 / math.sqrt(hidden_size)
    x = jax.random.normal(kx, (batch, seq_len, input_size), jnp.float32)
    W = jax.random.uniform(kw, (input_size, 4 * hidden_size), jnp.float32, -stdv, stdv)
    U = jax.random.uniform(ku, (hidden_size, 4 * hidden_size), jnp.float32, -stdv, stdv)
    bias = jax.random.uniform(kb, (4 * hidden_size,), jnp.float32, -stdv, stdv)

    out = jax.block_until_ready(lstm_forward(x, W, U, bias))
    ref = jax.block_until_ready(lstm_reference(x, W, U, bias))

    assert out.shape == (batch, seq_len, hidden_size)
    # bf16 operands with f32 accumulation -> tolerance relaxed vs the f32 reference.
    assert jnp.allclose(out, ref, atol=5e-2, rtol=5e-2), "mismatch vs reference"
    print("KERNEL_OK")
</pallas_src>

<mosaic_0001>
module attributes {stable_mosaic.version = 11 : i64} {
  func.func @_lstm_kernel(%arg0: i32, %arg1: i32, %arg2: memref<8x32x128xbf16, #tpu.memory_space<vmem>>, %arg3: memref<128x512xbf16, #tpu.memory_space<vmem>>, %arg4: memref<128x512xbf16, #tpu.memory_space<vmem>>, %arg5: memref<1x512xf32, #tpu.memory_space<vmem>>, %arg6: memref<8x32x128xf32, #tpu.memory_space<vmem>>, %arg7: memref<32x128xf32, #tpu.memory_space<vmem>>, %arg8: memref<32x128xf32, #tpu.memory_space<vmem>>) attributes {dimension_semantics = [#tpu.dimension_semantics<parallel>, #tpu.dimension_semantics<arbitrary>], iteration_bounds = array<i64: 1, 4>, scalar_prefetch = 0 : i64, scratch_operands = 2 : i64, tpu.core_type = #tpu.core_type<tc>, window_params = [{transform_indices = @transform_0, window_bounds = array<i64: 8, 32, 128>}, {pipeline_mode = #tpu.pipeline_mode<synchronous>, transform_indices = @transform_1, window_bounds = array<i64: 128, 512>}, {pipeline_mode = #tpu.pipeline_mode<synchronous>, transform_indices = @transform_2, window_bounds = array<i64: 128, 512>}, {pipeline_mode = #tpu.pipeline_mode<synchronous>, transform_indices = @transform_3, window_bounds = array<i64: 1, 512>}, {transform_indices = @transform_4, window_bounds = array<i64: 8, 32, 128>}]} {
    %c0_i32 = arith.constant 0 : i32
    %0 = arith.cmpi eq, %arg1, %c0_i32 : i32
    %1 = arith.extui %0 : i1 to i32
    %c0_i32_0 = arith.constant 0 : i32
    %2 = arith.cmpi ne, %1, %c0_i32_0 : i32
    scf.if %2 {
      %cst_189 = arith.constant 0.000000e+00 : f32
      %576 = vector.broadcast %cst_189 : f32 to vector<32x128xf32>
      %c0_190 = arith.constant 0 : index
      %c0_191 = arith.constant 0 : index
      %577 = vector.load %arg7[%c0_190, %c0_191] : memref<32x128xf32, #tpu.memory_space<vmem>>, vector<32x128xf32>
      tpu.vector_store %arg7[%c0_190, %c0_191], %576 {strides = array<i32>} : memref<32x128xf32, #tpu.memory_space<vmem>>, vector<32x128xf32>,
      %cst_192 = arith.constant 0.000000e+00 : f32
      %578 = vector.broadcast %cst_192 : f32 to vector<32x128xf32>
      %c0_193 = arith.constant 0 : index
      %c0_194 = arith.constant 0 : index
      %579 = vector.load %arg8[%c0_193, %c0_194] : memref<32x128xf32, #tpu.memory_space<vmem>>, vector<32x128xf32>
      tpu.vector_store %arg8[%c0_193, %c0_194], %578 {strides = array<i32>} : memref<32x128xf32, #tpu.memory_space<vmem>>, vector<32x128xf32>,
    } else {
    }
    %c0 = arith.constant 0 : index
    %c0_1 = arith.constant 0 : index
    %3 = vector.load %arg3[%c0, %c0_1] : memref<128x512xbf16, #tpu.memory_space<vmem>>, vector<128x512xbf16>
    %c0_2 = arith.constant 0 : index
    %c0_3 = arith.constant 0 : index
    %4 = vector.load %arg4[%c0_2, %c0_3] : memref<128x512xbf16, #tpu.memory_space<vmem>>, vector<128x512xbf16>
    %c0_4 = arith.constant 0 : index
    %c0_5 = arith.constant 0 : index
    %5 = vector.load %arg5[%c0_4, %c0_5] : memref<1x512xf32, #tpu.memory_space<vmem>>, vector<1x512xf32>
    %6 = vector.shape_cast %5 : vector<1x512xf32> to vector<1x512xf32>
    %7 = vector.broadcast %6 : vector<1x512xf32> to vector<16x512xf32>
    %c0_6 = arith.constant 0 : index
    %c0_7 = arith.constant 0 : index
    %8 = vector.load %arg7[%c0_6, %c0_7] : memref<32x128xf32, #tpu.memory_space<vmem>>, vector<16x128xf32>
    %c16 = arith.constant 16 : index
    %c0_8 = arith.constant 0 : index
    %9 = vector.load %arg7[%c16, %c0_8] : memref<32x128xf32, #tpu.memory_space<vmem>>, vector<16x128xf32>
    %c0_9 = arith.constant 0 : index
    %c0_10 = arith.constant 0 : index
    %10 = vector.load %arg8[%c0_9, %c0_10] : memref<32x128xf32, #tpu.memory_space<vmem>>, vector<16x128xf32>
    %c16_11 = arith.constant 16 : index
    %c0_12 = arith.constant 0 : index
    %11 = vector.load %arg8[%c16_11, %c0_12] : memref<32x128xf32, #tpu.memory_space<vmem>>, vector<16x128xf32>
    %c0_13 = arith.constant 0 : index
    %c0_14 = arith.constant 0 : index
    %c0_15 = arith.constant 0 : index
    %12 = vector.load %arg2[%c0_13, %c0_14, %c0_15] : memref<8x32x128xbf16, #tpu.memory_space<vmem>>, vector<1x16x128xbf16>
    %13 = vector.shape_cast %12 : vector<1x16x128xbf16> to vector<16x128xbf16>
    %cst = arith.constant dense<0.000000e+00> : vector<16x512xf32>
    %14 = tpu.matmul %13, %3, %cst {dimension_numbers = #tpu.dot_dimension_numbers<[1], [0], [0], [1], [0, 0, 1, 1], [], []>} : vector<16x128xbf16>, vector<128x512xbf16>, vector<16x512xf32> -> vector<16x512xf32>
    %15 = arith.truncf %8 : vector<16x128xf32> to vector<16x128xbf16>
    %cst_16 = arith.constant dense<0.000000e+00> : vector<16x512xf32>
    %16 = tpu.matmul %15, %4, %cst_16 {dimension_numbers = #tpu.dot_dimension_numbers<[1], [0], [0], [1], [0, 0, 1, 1], [], []>} : vector<16x128xbf16>, vector<128x512xbf16>, vector<16x512xf32> -> vector<16x512xf32>
    %17 = arith.addf %14, %16 : vector<16x512xf32>
    %18 = arith.addf %17, %7 : vector<16x512xf32>
    %19 = vector.extract_strided_slice %18 {offsets = [0, 0], sizes = [16, 128], strides = [1, 1]} : vector<16x512xf32> to vector<16x128xf32>
    %20 = arith.negf %19 : vector<16x128xf32>
    %21 = math.exp %20 : vector<16x128xf32>
    %cst_17 = arith.constant 1.000000e+00 : f32
    %22 = vector.broadcast %cst_17 : f32 to vector<16x128xf32>
    %23 = arith.addf %22, %21 : vector<16x128xf32>
    %24 = arith.divf %22, %23 : vector<16x128xf32>
    %25 = vector.extract_strided_slice %18 {offsets = [0, 128], sizes = [16, 128], strides = [1, 1]} : vector<16x512xf32> to vector<16x128xf32>
    %26 = arith.negf %25 : vector<16x128xf32>
    %27 = math.exp %26 : vector<16x128xf32>
    %cst_18 = arith.constant 1.000000e+00 : f32
    %28 = vector.broadcast %cst_18 : f32 to vector<16x128xf32>
    %29 = arith.addf %28, %27 : vector<16x128xf32>
    %30 = arith.divf %28, %29 : vector<16x128xf32>
    %31 = vector.extract_strided_slice %18 {offsets = [0, 256], sizes = [16, 128], strides = [1, 1]} : vector<16x512xf32> to vector<16x128xf32>
    %32 = math.tanh %31 : vector<16x128xf32>
    %33 = vector.extract_strided_slice %18 {offsets = [0, 384], sizes = [16, 128], strides = [1, 1]} : vector<16x512xf32> to vector<16x128xf32>
    %34 = arith.negf %33 : vector<16x128xf32>
    %35 = math.exp %34 : vector<16x128xf32>
    %cst_19 = arith.constant 1.000000e+00 : f32
    %36 = vector.broadcast %cst_19 : f32 to vector<16x128xf32>
    %37 = arith.addf %36, %35 : vector<16x128xf32>
    %38 = arith.divf %36, %37 : vector<16x128xf32>
    %39 = arith.mulf %30, %10 : vector<16x128xf32>
    %40 = arith.mulf %24, %32 : vector<16x128xf32>
    %41 = arith.addf %39, %40 : vector<16x128xf32>
    %42 = math.tanh %41 : vector<16x128xf32>
    %43 = arith.mulf %38, %42 : vector<16x128xf32>
    %c0_20 = arith.constant 0 : index
    %c0_21 = arith.constant 0 : index
    %c0_22 = arith.constant 0 : index
    %44 = vector.load %arg6[%c0_20, %c0_21, %c0_22] : memref<8x32x128xf32, #tpu.memory_space<vmem>>, vector<1x16x128xf32>
    %45 = vector.shape_cast %44 : vector<1x16x128xf32> to vector<16x128xf32>
    %46 = vector.shape_cast %43 : vector<16x128xf32> to vector<1x16x128xf32>
    tpu.vector_store %arg6[%c0_20, %c0_21, %c0_22], %46 {strides = array<i32>} : memref<8x32x128xf32, #tpu.memory_space<vmem>>, vector<1x16x128xf32>,
    %c0_23 = arith.constant 0 : index
    %c16_24 = arith.constant 16 : index
    %c0_25 = arith.constant 0 : index
    %47 = vector.load %arg2[%c0_23, %c16_24, %c0_25] : memref<8x32x128xbf16, #tpu.memory_space<vmem>>, vector<1x16x128xbf16>
    %48 = vector.shape_cast %47 : vector<1x16x128xbf16> to vector<16x128xbf16>
    %cst_26 = arith.constant dense<0.000000e+00> : vector<16x512xf32>
    %49 = tpu.matmul %48, %3, %cst_26 {dimension_numbers = #tpu.dot_dimension_numbers<[1], [0], [0], [1], [0, 0, 1, 1], [], []>} : vector<16x128xbf16>, vector<128x512xbf16>, vector<16x512xf32> -> vector<16x512xf32>
    %50 = arith.truncf %9 : vector<16x128xf32> to vector<16x128xbf16>
    %cst_27 = arith.constant dense<0.000000e+00> : vector<16x512xf32>
    %51 = tpu.matmul %50, %4, %cst_27 {dimension_numbers = #tpu.dot_dimension_numbers<[1], [0], [0], [1], [0, 0, 1, 1], [], []>} : vector<16x128xbf16>, vector<128x512xbf16>, vector<16x512xf32> -> vector<16x512xf32>
    %52 = arith.addf %49, %51 : vector<16x512xf32>
    %53 = arith.addf %52, %7 : vector<16x512xf32>
    %54 = vector.extract_strided_slice %53 {offsets = [0, 0], sizes = [16, 128], strides = [1, 1]} : vector<16x512xf32> to vector<16x128xf32>
    %55 = arith.negf %54 : vector<16x128xf32>
    %56 = math.exp %55 : vector<16x128xf32>
    %cst_28 = arith.constant 1.000000e+00 : f32
    %57 = vector.broadcast %cst_28 : f32 to vector<16x128xf32>
    %58 = arith.addf %57, %56 : vector<16x128xf32>
    %59 = arith.divf %57, %58 : vector<16x128xf32>
    %60 = vector.extract_strided_slice %53 {offsets = [0, 128], sizes = [16, 128], strides = [1, 1]} : vector<16x512xf32> to vector<16x128xf32>
    %61 = arith.negf %60 : vector<16x128xf32>
    %62 = math.exp %61 : vector<16x128xf32>
    %cst_29 = arith.constant 1.000000e+00 : f32
    %63 = vector.broadcast %cst_29 : f32 to vector<16x128xf32>
    %64 = arith.addf %63, %62 : vector<16x128xf32>
    %65 = arith.divf %63, %64 : vector<16x128xf32>
    %66 = vector.extract_strided_slice %53 {offsets = [0, 256], sizes = [16, 128], strides = [1, 1]} : vector<16x512xf32> to vector<16x128xf32>
    %67 = math.tanh %66 : vector<16x128xf32>
    %68 = vector.extract_strided_slice %53 {offsets = [0, 384], sizes = [16, 128], strides = [1, 1]} : vector<16x512xf32> to vector<16x128xf32>
    %69 = arith.negf %68 : vector<16x128xf32>
    %70 = math.exp %69 : vector<16x128xf32>
    %cst_30 = arith.constant 1.000000e+00 : f32
    %71 = vector.broadcast %cst_30 : f32 to vector<16x128xf32>
    %72 = arith.addf %71, %70 : vector<16x128xf32>
    %73 = arith.divf %71, %72 : vector<16x128xf32>
    %74 = arith.mulf %65, %11 : vector<16x128xf32>
    %75 = arith.mulf %59, %67 : vector<16x128xf32>
    %76 = arith.addf %74, %75 : vector<16x128xf32>
    %77 = math.tanh %76 : vector<16x128xf32>
    %78 = arith.mulf %73, %77 : vector<16x128xf32>
    %c0_31 = arith.constant 0 : index
    %c16_32 = arith.constant 16 : index
    %c0_33 = arith.constant 0 : index
    %79 = vector.load %arg6[%c0_31, %c16_32, %c0_33] : memref<8x32x128xf32, #tpu.memory_space<vmem>>, vector<1x16x128xf32>
    %80 = vector.shape_cast %79 : vector<1x16x128xf32> to vector<16x128xf32>
    %81 = vector.shape_cast %78 : vector<16x128xf32> to vector<1x16x128xf32>
    tpu.vector_store %arg6[%c0_31, %c16_32, %c0_33], %81 {strides = array<i32>} : memref<8x32x128xf32, #tpu.memory_space<vmem>>, vector<1x16x128xf32>,
    %c1 = arith.constant 1 : index
    %c0_34 = arith.constant 0 : index
    %c0_35 = arith.constant 0 : index
    %82 = vector.load %arg2[%c1, %c0_34, %c0_35] : memref<8x32x128xbf16, #tpu.memory_space<vmem>>, vector<1x16x128xbf16>
    %83 = vector.shape_cast %82 : vector<1x16x128xbf16> to vector<16x128xbf16>
    %cst_36 = arith.constant dense<0.000000e+00> : vector<16x512xf32>
    %84 = tpu.matmul %83, %3, %cst_36 {dimension_numbers = #tpu.dot_dimension_numbers<[1], [0], [0], [1], [0, 0, 1, 1], [], []>} : vector<16x128xbf16>, vector<128x512xbf16>, vector<16x512xf32> -> vector<16x512xf32>
    %85 = arith.truncf %43 : vector<16x128xf32> to vector<16x128xbf16>
    %cst_37 = arith.constant dense<0.000000e+00> : vector<16x512xf32>
    %86 = tpu.matmul %85, %4, %cst_37 {dimension_numbers = #tpu.dot_dimension_numbers<[1], [0], [0], [1], [0, 0, 1, 1], [], []>} : vector<16x128xbf16>, vector<128x512xbf16>, vector<16x512xf32> -> vector<16x512xf32>
    %87 = arith.addf %84, %86 : vector<16x512xf32>
    %88 = arith.addf %87, %7 : vector<16x512xf32>
    %89 = vector.extract_strided_slice %88 {offsets = [0, 0], sizes = [16, 128], strides = [1, 1]} : vector<16x512xf32> to vector<16x128xf32>
    %90 = arith.negf %89 : vector<16x128xf32>
    %91 = math.exp %90 : vector<16x128xf32>
    %cst_38 = arith.constant 1.000000e+00 : f32
    %92 = vector.broadcast %cst_38 : f32 to vector<16x128xf32>
    %93 = arith.addf %92, %91 : vector<16x128xf32>
    %94 = arith.divf %92, %93 : vector<16x128xf32>
    %95 = vector.extract_strided_slice %88 {offsets = [0, 128], sizes = [16, 128], strides = [1, 1]} : vector<16x512xf32> to vector<16x128xf32>
    %96 = arith.negf %95 : vector<16x128xf32>
    %97 = math.exp %96 : vector<16x128xf32>
    %cst_39 = arith.constant 1.000000e+00 : f32
    %98 = vector.broadcast %cst_39 : f32 to vector<16x128xf32>
    %99 = arith.addf %98, %97 : vector<16x128xf32>
    %100 = arith.divf %98, %99 : vector<16x128xf32>
    %101 = vector.extract_strided_slice %88 {offsets = [0, 256], sizes = [16, 128], strides = [1, 1]} : vector<16x512xf32> to vector<16x128xf32>
    %102 = math.tanh %101 : vector<16x128xf32>
    %103 = vector.extract_strided_slice %88 {offsets = [0, 384], sizes = [16, 128], strides = [1, 1]} : vector<16x512xf32> to vector<16x128xf32>
    %104 = arith.negf %103 : vector<16x128xf32>
    %105 = math.exp %104 : vector<16x128xf32>
    %cst_40 = arith.constant 1.000000e+00 : f32
    %106 = vector.broadcast %cst_40 : f32 to vector<16x128xf32>
    %107 = arith.addf %106, %105 : vector<16x128xf32>
    %108 = arith.divf %106, %107 : vector<16x128xf32>
    %109 = arith.mulf %100, %41 : vector<16x128xf32>
    %110 = arith.mulf %94, %102 : vector<16x128xf32>
    %111 = arith.addf %109, %110 : vector<16x128xf32>
    %112 = math.tanh %111 : vector<16x128xf32>
    %113 = arith.mulf %108, %112 : vector<16x128xf32>
    %c1_41 = arith.constant 1 : index
    %c0_42 = arith.constant 0 : index
    %c0_43 = arith.constant 0 : index
    %114 = vector.load %arg6[%c1_41, %c0_42, %c0_43] : memref<8x32x128xf32, #tpu.memory_space<vmem>>, vector<1x16x128xf32>
    %115 = vector.shape_cast %114 : vector<1x16x128xf32> to vector<16x128xf32>
    %116 = vector.shape_cast %113 : vector<16x128xf32> to vector<1x16x128xf32>
    tpu.vector_store %arg6[%c1_41, %c0_42, %c0_43], %116 {strides = array<i32>} : memref<8x32x128xf32, #tpu.memory_space<vmem>>, vector<1x16x128xf32>,
    %c1_44 = arith.constant 1 : index
    %c16_45 = arith.constant 16 : index
    %c0_46 = arith.constant 0 : index
    %117 = vector.load %arg2[%c1_44, %c16_45, %c0_46] : memref<8x32x128xbf16, #tpu.memory_space<vmem>>, vector<1x16x128xbf16>
    %118 = vector.shape_cast %117 : vector<1x16x128xbf16> to vector<16x128xbf16>
    %cst_47 = arith.constant dense<0.000000e+00> : vector<16x512xf32>
    %119 = tpu.matmul %118, %3, %cst_47 {dimension_numbers = #tpu.dot_dimension_numbers<[1], [0], [0], [1], [0, 0, 1, 1], [], []>} : vector<16x128xbf16>, vector<128x512xbf16>, vector<16x512xf32> -> vector<16x512xf32>
    %120 = arith.truncf %78 : vector<16x128xf32> to vector<16x128xbf16>
    %cst_48 = arith.constant dense<0.000000e+00> : vector<16x512xf32>
    %121 = tpu.matmul %120, %4, %cst_48 {dimension_numbers = #tpu.dot_dimension_numbers<[1], [0], [0], [1], [0, 0, 1, 1], [], []>} : vector<16x128xbf16>, vector<128x512xbf16>, vector<16x512xf32> -> vector<16x512xf32>
    %122 = arith.addf %119, %121 : vector<16x512xf32>
    %123 = arith.addf %122, %7 : vector<16x512xf32>
    %124 = vector.extract_strided_slice %123 {offsets = [0, 0], sizes = [16, 128], strides = [1, 1]} : vector<16x512xf32> to vector<16x128xf32>
    %125 = arith.negf %124 : vector<16x128xf32>
    %126 = math.exp %125 : vector<16x128xf32>
    %cst_49 = arith.constant 1.000000e+00 : f32
    %127 = vector.broadcast %cst_49 : f32 to vector<16x128xf32>
    %128 = arith.addf %127, %126 : vector<16x128xf32>
    %129 = arith.divf %127, %128 : vector<16x128xf32>
    %130 = vector.extract_strided_slice %123 {offsets = [0, 128], sizes = [16, 128], strides = [1, 1]} : vector<16x512xf32> to vector<16x128xf32>
    %131 = arith.negf %130 : vector<16x128xf32>
    %132 = math.exp %131 : vector<16x128xf32>
    %cst_50 = arith.constant 1.000000e+00 : f32
    %133 = vector.broadcast %cst_50 : f32 to vector<16x128xf32>
    %134 = arith.addf %133, %132 : vector<16x128xf32>
    %135 = arith.divf %133, %134 : vector<16x128xf32>
    %136 = vector.extract_strided_slice %123 {offsets = [0, 256], sizes = [16, 128], strides = [1, 1]} : vector<16x512xf32> to vector<16x128xf32>
    %137 = math.tanh %136 : vector<16x128xf32>
    %138 = vector.extract_strided_slice %123 {offsets = [0, 384], sizes = [16, 128], strides = [1, 1]} : vector<16x512xf32> to vector<16x128xf32>
    %139 = arith.negf %138 : vector<16x128xf32>
    %140 = math.exp %139 : vector<16x128xf32>
    %cst_51 = arith.constant 1.000000e+00 : f32
    %141 = vector.broadcast %cst_51 : f32 to vector<16x128xf32>
    %142 = arith.addf %141, %140 : vector<16x128xf32>
    %143 = arith.divf %141, %142 : vector<16x128xf32>
    %144 = arith.mulf %135, %76 : vector<16x128xf32>
    %145 = arith.mulf %129, %137 : vector<16x128xf32>
    %146 = arith.addf %144, %145 : vector<16x128xf32>
    %147 = math.tanh %146 : vector<16x128xf32>
    %148 = arith.mulf %143, %147 : vector<16x128xf32>
    %c1_52 = arith.constant 1 : index
    %c16_53 = arith.constant 16 : index
    %c0_54 = arith.constant 0 : index
    %149 = vector.load %arg6[%c1_52, %c16_53, %c0_54] : memref<8x32x128xf32, #tpu.memory_space<vmem>>, vector<1x16x128xf32>
    %150 = vector.shape_cast %149 : vector<1x16x128xf32> to vector<16x128xf32>
    %151 = vector.shape_cast %148 : vector<16x128xf32> to vector<1x16x128xf32>
    tpu.vector_store %arg6[%c1_52, %c16_53, %c0_54], %151 {strides = array<i32>} : memref<8x32x128xf32, #tpu.memory_space<vmem>>, vector<1x16x128xf32>,
    %c2 = arith.constant 2 : index
    %c0_55 = arith.constant 0 : index
    %c0_56 = arith.constant 0 : index
    %152 = vector.load %arg2[%c2, %c0_55, %c0_56] : memref<8x32x128xbf16, #tpu.memory_space<vmem>>, vector<1x16x128xbf16>
    %153 = vector.shape_cast %152 : vector<1x16x128xbf16> to vector<16x128xbf16>
    %cst_57 = arith.constant dense<0.000000e+00> : vector<16x512xf32>
    %154 = tpu.matmul %153, %3, %cst_57 {dimension_numbers = #tpu.dot_dimension_numbers<[1], [0], [0], [1], [0, 0, 1, 1], [], []>} : vector<16x128xbf16>, vector<128x512xbf16>, vector<16x512xf32> -> vector<16x512xf32>
    %155 = arith.truncf %113 : vector<16x128xf32> to vector<16x128xbf16>
    %cst_58 = arith.constant dense<0.000000e+00> : vector<16x512xf32>
    %156 = tpu.matmul %155, %4, %cst_58 {dimension_numbers = #tpu.dot_dimension_numbers<[1], [0], [0], [1], [0, 0, 1, 1], [], []>} : vector<16x128xbf16>, vector<128x512xbf16>, vector<16x512xf32> -> vector<16x512xf32>
    %157 = arith.addf %154, %156 : vector<16x512xf32>
    %158 = arith.addf %157, %7 : vector<16x512xf32>
    %159 = vector.extract_strided_slice %158 {offsets = [0, 0], sizes = [16, 128], strides = [1, 1]} : vector<16x512xf32> to vector<16x128xf32>
    %160 = arith.negf %159 : vector<16x128xf32>
    %161 = math.exp %160 : vector<16x128xf32>
    %cst_59 = arith.constant 1.000000e+00 : f32
    %162 = vector.broadcast %cst_59 : f32 to vector<16x128xf32>
    %163 = arith.addf %162, %161 : vector<16x128xf32>
    %164 = arith.divf %162, %163 : vector<16x128xf32>
    %165 = vector.extract_strided_slice %158 {offsets = [0, 128], sizes = [16, 128], strides = [1, 1]} : vector<16x512xf32> to vector<16x128xf32>
    %166 = arith.negf %165 : vector<16x128xf32>
    %167 = math.exp %166 : vector<16x128xf32>
    %cst_60 = arith.constant 1.000000e+00 : f32
    %168 = vector.broadcast %cst_60 : f32 to vector<16x128xf32>
    %169 = arith.addf %168, %167 : vector<16x128xf32>
    %170 = arith.divf %168, %169 : vector<16x128xf32>
    %171 = vector.extract_strided_slice %158 {offsets = [0, 256], sizes = [16, 128], strides = [1, 1]} : vector<16x512xf32> to vector<16x128xf32>
    %172 = math.tanh %171 : vector<16x128xf32>
    %173 = vector.extract_strided_slice %158 {offsets = [0, 384], sizes = [16, 128], strides = [1, 1]} : vector<16x512xf32> to vector<16x128xf32>
    %174 = arith.negf %173 : vector<16x128xf32>
    %175 = math.exp %174 : vector<16x128xf32>
    %cst_61 = arith.constant 1.000000e+00 : f32
    %176 = vector.broadcast %cst_61 : f32 to vector<16x128xf32>
    %177 = arith.addf %176, %175 : vector<16x128xf32>
    %178 = arith.divf %176, %177 : vector<16x128xf32>
    %179 = arith.mulf %170, %111 : vector<16x128xf32>
    %180 = arith.mulf %164, %172 : vector<16x128xf32>
    %181 = arith.addf %179, %180 : vector<16x128xf32>
    %182 = math.tanh %181 : vector<16x128xf32>
    %183 = arith.mulf %178, %182 : vector<16x128xf32>
    %c2_62 = arith.constant 2 : index
    %c0_63 = arith.constant 0 : index
    %c0_64 = arith.constant 0 : index
    %184 = vector.load %arg6[%c2_62, %c0_63, %c0_64] : memref<8x32x128xf32, #tpu.memory_space<vmem>>, vector<1x16x128xf32>
    %185 = vector.shape_cast %184 : vector<1x16x128xf32> to vector<16x128xf32>
    %186 = vector.shape_cast %183 : vector<16x128xf32> to vector<1x16x128xf32>
    tpu.vector_store %arg6[%c2_62, %c0_63, %c0_64], %186 {strides = array<i32>} : memref<8x32x128xf32, #tpu.memory_space<vmem>>, vector<1x16x128xf32>,
    %c2_65 = arith.constant 2 : index
    %c16_66 = arith.constant 16 : index
    %c0_67 = arith.constant 0 : index
    %187 = vector.load %arg2[%c2_65, %c16_66, %c0_67] : memref<8x32x128xbf16, #tpu.memory_space<vmem>>, vector<1x16x128xbf16>
    %188 = vector.shape_cast %187 : vector<1x16x128xbf16> to vector<16x128xbf16>
    %cst_68 = arith.constant dense<0.000000e+00> : vector<16x512xf32>
    %189 = tpu.matmul %188, %3, %cst_68 {dimension_numbers = #tpu.dot_dimension_numbers<[1], [0], [0], [1], [0, 0, 1, 1], [], []>} : vector<16x128xbf16>, vector<128x512xbf16>, vector<16x512xf32> -> vector<16x512xf32>
    %190 = arith.truncf %148 : vector<16x128xf32> to vector<16x128xbf16>
    %cst_69 = arith.constant dense<0.000000e+00> : vector<16x512xf32>
    %191 = tpu.matmul %190, %4, %cst_69 {dimension_numbers = #tpu.dot_dimension_numbers<[1], [0], [0], [1], [0, 0, 1, 1], [], []>} : vector<16x128xbf16>, vector<128x512xbf16>, vector<16x512xf32> -> vector<16x512xf32>
    %192 = arith.addf %189, %191 : vector<16x512xf32>
    %193 = arith.addf %192, %7 : vector<16x512xf32>
    %194 = vector.extract_strided_slice %193 {offsets = [0, 0], sizes = [16, 128], strides = [1, 1]} : vector<16x512xf32> to vector<16x128xf32>
    %195 = arith.negf %194 : vector<16x128xf32>
    %196 = math.exp %195 : vector<16x128xf32>
    %cst_70 = arith.constant 1.000000e+00 : f32
    %197 = vector.broadcast %cst_70 : f32 to vector<16x128xf32>
    %198 = arith.addf %197, %196 : vector<16x128xf32>
    %199 = arith.divf %197, %198 : vector<16x128xf32>
    %200 = vector.extract_strided_slice %193 {offsets = [0, 128], sizes = [16, 128], strides = [1, 1]} : vector<16x512xf32> to vector<16x128xf32>
    %201 = arith.negf %200 : vector<16x128xf32>
    %202 = math.exp %201 : vector<16x128xf32>
    %cst_71 = arith.constant 1.000000e+00 : f32
    %203 = vector.broadcast %cst_71 : f32 to vector<16x128xf32>
    %204 = arith.addf %203, %202 : vector<16x128xf32>
    %205 = arith.divf %203, %204 : vector<16x128xf32>
    %206 = vector.extract_strided_slice %193 {offsets = [0, 256], sizes = [16, 128], strides = [1, 1]} : vector<16x512xf32> to vector<16x128xf32>
    %207 = math.tanh %206 : vector<16x128xf32>
    %208 = vector.extract_strided_slice %193 {offsets = [0, 384], sizes = [16, 128], strides = [1, 1]} : vector<16x512xf32> to vector<16x128xf32>
    %209 = arith.negf %208 : vector<16x128xf32>
    %210 = math.exp %209 : vector<16x128xf32>
    %cst_72 = arith.constant 1.000000e+00 : f32
    %211 = vector.broadcast %cst_72 : f32 to vector<16x128xf32>
    %212 = arith.addf %211, %210 : vector<16x128xf32>
    %213 = arith.divf %211, %212 : vector<16x128xf32>
    %214 = arith.mulf %205, %146 : vector<16x128xf32>
    %215 = arith.mulf %199, %207 : vector<16x128xf32>
    %216 = arith.addf %214, %215 : vector<16x128xf32>
    %217 = math.tanh %216 : vector<16x128xf32>
    %218 = arith.mulf %213, %217 : vector<16x128xf32>
    %c2_73 = arith.constant 2 : index
    %c16_74 = arith.constant 16 : index
    %c0_75 = arith.constant 0 : index
    %219 = vector.load %arg6[%c2_73, %c16_74, %c0_75] : memref<8x32x128xf32, #tpu.memory_space<vmem>>, vector<1x16x128xf32>
    %220 = vector.shape_cast %219 : vector<1x16x128xf32> to vector<16x128xf32>
    %221 = vector.shape_cast %218 : vector<16x128xf32> to vector<1x16x128xf32>
    tpu.vector_store %arg6[%c2_73, %c16_74, %c0_75], %221 {strides = array<i32>} : memref<8x32x128xf32, #tpu.memory_space<vmem>>, vector<1x16x128xf32>,
    %c3 = arith.constant 3 : index
    %c0_76 = arith.constant 0 : index
    %c0_77 = arith.constant 0 : index
    %222 = vector.load %arg2[%c3, %c0_76, %c0_77] : memref<8x32x128xbf16, #tpu.memory_space<vmem>>, vector<1x16x128xbf16>
    %223 = vector.shape_cast %222 : vector<1x16x128xbf16> to vector<16x128xbf16>
    %cst_78 = arith.constant dense<0.000000e+00> : vector<16x512xf32>
    %224 = tpu.matmul %223, %3, %cst_78 {dimension_numbers = #tpu.dot_dimension_numbers<[1], [0], [0], [1], [0, 0, 1, 1], [], []>} : vector<16x128xbf16>, vector<128x512xbf16>, vector<16x512xf32> -> vector<16x512xf32>
    %225 = arith.truncf %183 : vector<16x128xf32> to vector<16x128xbf16>
    %cst_79 = arith.constant dense<0.000000e+00> : vector<16x512xf32>
    %226 = tpu.matmul %225, %4, %cst_79 {dimension_numbers = #tpu.dot_dimension_numbers<[1], [0], [0], [1], [0, 0, 1, 1], [], []>} : vector<16x128xbf16>, vector<128x512xbf16>, vector<16x512xf32> -> vector<16x512xf32>
    %227 = arith.addf %224, %226 : vector<16x512xf32>
    %228 = arith.addf %227, %7 : vector<16x512xf32>
    %229 = vector.extract_strided_slice %228 {offsets = [0, 0], sizes = [16, 128], strides = [1, 1]} : vector<16x512xf32> to vector<16x128xf32>
    %230 = arith.negf %229 : vector<16x128xf32>
    %231 = math.exp %230 : vector<16x128xf32>
    %cst_80 = arith.constant 1.000000e+00 : f32
    %232 = vector.broadcast %cst_80 : f32 to vector<16x128xf32>
    %233 = arith.addf %232, %231 : vector<16x128xf32>
    %234 = arith.divf %232, %233 : vector<16x128xf32>
    %235 = vector.extract_strided_slice %228 {offsets = [0, 128], sizes = [16, 128], strides = [1, 1]} : vector<16x512xf32> to vector<16x128xf32>
    %236 = arith.negf %235 : vector<16x128xf32>
    %237 = math.exp %236 : vector<16x128xf32>
    %cst_81 = arith.constant 1.000000e+00 : f32
    %238 = vector.broadcast %cst_81 : f32 to vector<16x128xf32>
    %239 = arith.addf %238, %237 : vector<16x128xf32>
    %240 = arith.divf %238, %239 : vector<16x128xf32>
    %241 = vector.extract_strided_slice %228 {offsets = [0, 256], sizes = [16, 128], strides = [1, 1]} : vector<16x512xf32> to vector<16x128xf32>
    %242 = math.tanh %241 : vector<16x128xf32>
    %243 = vector.extract_strided_slice %228 {offsets = [0, 384], sizes = [16, 128], strides = [1, 1]} : vector<16x512xf32> to vector<16x128xf32>
    %244 = arith.negf %243 : vector<16x128xf32>
    %245 = math.exp %244 : vector<16x128xf32>
    %cst_82 = arith.constant 1.000000e+00 : f32
    %246 = vector.broadcast %cst_82 : f32 to vector<16x128xf32>
    %247 = arith.addf %246, %245 : vector<16x128xf32>
    %248 = arith.divf %246, %247 : vector<16x128xf32>
    %249 = arith.mulf %240, %181 : vector<16x128xf32>
    %250 = arith.mulf %234, %242 : vector<16x128xf32>
    %251 = arith.addf %249, %250 : vector<16x128xf32>
    %252 = math.tanh %251 : vector<16x128xf32>
    %253 = arith.mulf %248, %252 : vector<16x128xf32>
    %c3_83 = arith.constant 3 : index
    %c0_84 = arith.constant 0 : index
    %c0_85 = arith.constant 0 : index
    %254 = vector.load %arg6[%c3_83, %c0_84, %c0_85] : memref<8x32x128xf32, #tpu.memory_space<vmem>>, vector<1x16x128xf32>
    %255 = vector.shape_cast %254 : vector<1x16x128xf32> to vector<16x128xf32>
    %256 = vector.shape_cast %253 : vector<16x128xf32> to vector<1x16x128xf32>
    tpu.vector_store %arg6[%c3_83, %c0_84, %c0_85], %256 {strides = array<i32>} : memref<8x32x128xf32, #tpu.memory_space<vmem>>, vector<1x16x128xf32>,
    %c3_86 = arith.constant 3 : index
    %c16_87 = arith.constant 16 : index
    %c0_88 = arith.constant 0 : index
    %257 = vector.load %arg2[%c3_86, %c16_87, %c0_88] : memref<8x32x128xbf16, #tpu.memory_space<vmem>>, vector<1x16x128xbf16>
    %258 = vector.shape_cast %257 : vector<1x16x128xbf16> to vector<16x128xbf16>
    %cst_89 = arith.constant dense<0.000000e+00> : vector<16x512xf32>
    %259 = tpu.matmul %258, %3, %cst_89 {dimension_numbers = #tpu.dot_dimension_numbers<[1], [0], [0], [1], [0, 0, 1, 1], [], []>} : vector<16x128xbf16>, vector<128x512xbf16>, vector<16x512xf32> -> vector<16x512xf32>
    %260 = arith.truncf %218 : vector<16x128xf32> to vector<16x128xbf16>
    %cst_90 = arith.constant dense<0.000000e+00> : vector<16x512xf32>
    %261 = tpu.matmul %260, %4, %cst_90 {dimension_numbers = #tpu.dot_dimension_numbers<[1], [0], [0], [1], [0, 0, 1, 1], [], []>} : vector<16x128xbf16>, vector<128x512xbf16>, vector<16x512xf32> -> vector<16x512xf32>
    %262 = arith.addf %259, %261 : vector<16x512xf32>
    %263 = arith.addf %262, %7 : vector<16x512xf32>
    %264 = vector.extract_strided_slice %263 {offsets = [0, 0], sizes = [16, 128], strides = [1, 1]} : vector<16x512xf32> to vector<16x128xf32>
    %265 = arith.negf %264 : vector<16x128xf32>
    %266 = math.exp %265 : vector<16x128xf32>
    %cst_91 = arith.constant 1.000000e+00 : f32
    %267 = vector.broadcast %cst_91 : f32 to vector<16x128xf32>
    %268 = arith.addf %267, %266 : vector<16x128xf32>
    %269 = arith.divf %267, %268 : vector<16x128xf32>
    %270 = vector.extract_strided_slice %263 {offsets = [0, 128], sizes = [16, 128], strides = [1, 1]} : vector<16x512xf32> to vector<16x128xf32>
    %271 = arith.negf %270 : vector<16x128xf32>
    %272 = math.exp %271 : vector<16x128xf32>
    %cst_92 = arith.constant 1.000000e+00 : f32
    %273 = vector.broadcast %cst_92 : f32 to vector<16x128xf32>
    %274 = arith.addf %273, %272 : vector<16x128xf32>
    %275 = arith.divf %273, %274 : vector<16x128xf32>
    %276 = vector.extract_strided_slice %263 {offsets = [0, 256], sizes = [16, 128], strides = [1, 1]} : vector<16x512xf32> to vector<16x128xf32>
    %277 = math.tanh %276 : vector<16x128xf32>
    %278 = vector.extract_strided_slice %263 {offsets = [0, 384], sizes = [16, 128], strides = [1, 1]} : vector<16x512xf32> to vector<16x128xf32>
    %279 = arith.negf %278 : vector<16x128xf32>
    %280 = math.exp %279 : vector<16x128xf32>
    %cst_93 = arith.constant 1.000000e+00 : f32
    %281 = vector.broadcast %cst_93 : f32 to vector<16x128xf32>
    %282 = arith.addf %281, %280 : vector<16x128xf32>
    %283 = arith.divf %281, %282 : vector<16x128xf32>
    %284 = arith.mulf %275, %216 : vector<16x128xf32>
    %285 = arith.mulf %269, %277 : vector<16x128xf32>
    %286 = arith.addf %284, %285 : vector<16x128xf32>
    %287 = math.tanh %286 : vector<16x128xf32>
    %288 = arith.mulf %283, %287 : vector<16x128xf32>
    %c3_94 = arith.constant 3 : index
    %c16_95 = arith.constant 16 : index
    %c0_96 = arith.constant 0 : index
    %289 = vector.load %arg6[%c3_94, %c16_95, %c0_96] : memref<8x32x128xf32, #tpu.memory_space<vmem>>, vector<1x16x128xf32>
    %290 = vector.shape_cast %289 : vector<1x16x128xf32> to vector<16x128xf32>
    %291 = vector.shape_cast %288 : vector<16x128xf32> to vector<1x16x128xf32>
    tpu.vector_store %arg6[%c3_94, %c16_95, %c0_96], %291 {strides = array<i32>} : memref<8x32x128xf32, #tpu.memory_space<vmem>>, vector<1x16x128xf32>,
    %c4 = arith.constant 4 : index
    %c0_97 = arith.constant 0 : index
    %c0_98 = arith.constant 0 : index
    %292 = vector.load %arg2[%c4, %c0_97, %c0_98] : memref<8x32x128xbf16, #tpu.memory_space<vmem>>, vector<1x16x128xbf16>
    %293 = vector.shape_cast %292 : vector<1x16x128xbf16> to vector<16x128xbf16>
    %cst_99 = arith.constant dense<0.000000e+00> : vector<16x512xf32>
    %294 = tpu.matmul %293, %3, %cst_99 {dimension_numbers = #tpu.dot_dimension_numbers<[1], [0], [0], [1], [0, 0, 1, 1], [], []>} : vector<16x128xbf16>, vector<128x512xbf16>, vector<16x512xf32> -> vector<16x512xf32>
    %295 = arith.truncf %253 : vector<16x128xf32> to vector<16x128xbf16>
    %cst_100 = arith.constant dense<0.000000e+00> : vector<16x512xf32>
    %296 = tpu.matmul %295, %4, %cst_100 {dimension_numbers = #tpu.dot_dimension_numbers<[1], [0], [0], [1], [0, 0, 1, 1], [], []>} : vector<16x128xbf16>, vector<128x512xbf16>, vector<16x512xf32> -> vector<16x512xf32>
    %297 = arith.addf %294, %296 : vector<16x512xf32>
    %298 = arith.addf %297, %7 : vector<16x512xf32>
    %299 = vector.extract_strided_slice %298 {offsets = [0, 0], sizes = [16, 128], strides = [1, 1]} : vector<16x512xf32> to vector<16x128xf32>
    %300 = arith.negf %299 : vector<16x128xf32>
    %301 = math.exp %300 : vector<16x128xf32>
    %cst_101 = arith.constant 1.000000e+00 : f32
    %302 = vector.broadcast %cst_101 : f32 to vector<16x128xf32>
    %303 = arith.addf %302, %301 : vector<16x128xf32>
    %304 = arith.divf %302, %303 : vector<16x128xf32>
    %305 = vector.extract_strided_slice %298 {offsets = [0, 128], sizes = [16, 128], strides = [1, 1]} : vector<16x512xf32> to vector<16x128xf32>
    %306 = arith.negf %305 : vector<16x128xf32>
    %307 = math.exp %306 : vector<16x128xf32>
    %cst_102 = arith.constant 1.000000e+00 : f32
    %308 = vector.broadcast %cst_102 : f32 to vector<16x128xf32>
    %309 = arith.addf %308, %307 : vector<16x128xf32>
    %310 = arith.divf %308, %309 : vector<16x128xf32>
    %311 = vector.extract_strided_slice %298 {offsets = [0, 256], sizes = [16, 128], strides = [1, 1]} : vector<16x512xf32> to vector<16x128xf32>
    %312 = math.tanh %311 : vector<16x128xf32>
    %313 = vector.extract_strided_slice %298 {offsets = [0, 384], sizes = [16, 128], strides = [1, 1]} : vector<16x512xf32> to vector<16x128xf32>
    %314 = arith.negf %313 : vector<16x128xf32>
    %315 = math.exp %314 : vector<16x128xf32>
    %cst_103 = arith.constant 1.000000e+00 : f32
    %316 = vector.broadcast %cst_103 : f32 to vector<16x128xf32>
    %317 = arith.addf %316, %315 : vector<16x128xf32>
    %318 = arith.divf %316, %317 : vector<16x128xf32>
    %319 = arith.mulf %310, %251 : vector<16x128xf32>
    %320 = arith.mulf %304, %312 : vector<16x128xf32>
    %321 = arith.addf %319, %320 : vector<16x128xf32>
    %322 = math.tanh %321 : vector<16x128xf32>
    %323 = arith.mulf %318, %322 : vector<16x128xf32>
    %c4_104 = arith.constant 4 : index
    %c0_105 = arith.constant 0 : index
    %c0_106 = arith.constant 0 : index
    %324 = vector.load %arg6[%c4_104, %c0_105, %c0_106] : memref<8x32x128xf32, #tpu.memory_space<vmem>>, vector<1x16x128xf32>
    %325 = vector.shape_cast %324 : vector<1x16x128xf32> to vector<16x128xf32>
    %326 = vector.shape_cast %323 : vector<16x128xf32> to vector<1x16x128xf32>
    tpu.vector_store %arg6[%c4_104, %c0_105, %c0_106], %326 {strides = array<i32>} : memref<8x32x128xf32, #tpu.memory_space<vmem>>, vector<1x16x128xf32>,
    %c4_107 = arith.constant 4 : index
    %c16_108 = arith.constant 16 : index
    %c0_109 = arith.constant 0 : index
    %327 = vector.load %arg2[%c4_107, %c16_108, %c0_109] : memref<8x32x128xbf16, #tpu.memory_space<vmem>>, vector<1x16x128xbf16>
    %328 = vector.shape_cast %327 : vector<1x16x128xbf16> to vector<16x128xbf16>
    %cst_110 = arith.constant dense<0.000000e+00> : vector<16x512xf32>
    %329 = tpu.matmul %328, %3, %cst_110 {dimension_numbers = #tpu.dot_dimension_numbers<[1], [0], [0], [1], [0, 0, 1, 1], [], []>} : vector<16x128xbf16>, vector<128x512xbf16>, vector<16x512xf32> -> vector<16x512xf32>
    %330 = arith.truncf %288 : vector<16x128xf32> to vector<16x128xbf16>
    %cst_111 = arith.constant dense<0.000000e+00> : vector<16x512xf32>
    %331 = tpu.matmul %330, %4, %cst_111 {dimension_numbers = #tpu.dot_dimension_numbers<[1], [0], [0], [1], [0, 0, 1, 1], [], []>} : vector<16x128xbf16>, vector<128x512xbf16>, vector<16x512xf32> -> vector<16x512xf32>
    %332 = arith.addf %329, %331 : vector<16x512xf32>
    %333 = arith.addf %332, %7 : vector<16x512xf32>
    %334 = vector.extract_strided_slice %333 {offsets = [0, 0], sizes = [16, 128], strides = [1, 1]} : vector<16x512xf32> to vector<16x128xf32>
    %335 = arith.negf %334 : vector<16x128xf32>
    %336 = math.exp %335 : vector<16x128xf32>
    %cst_112 = arith.constant 1.000000e+00 : f32
    %337 = vector.broadcast %cst_112 : f32 to vector<16x128xf32>
    %338 = arith.addf %337, %336 : vector<16x128xf32>
    %339 = arith.divf %337, %338 : vector<16x128xf32>
    %340 = vector.extract_strided_slice %333 {offsets = [0, 128], sizes = [16, 128], strides = [1, 1]} : vector<16x512xf32> to vector<16x128xf32>
    %341 = arith.negf %340 : vector<16x128xf32>
    %342 = math.exp %341 : vector<16x128xf32>
    %cst_113 = arith.constant 1.000000e+00 : f32
    %343 = vector.broadcast %cst_113 : f32 to vector<16x128xf32>
    %344 = arith.addf %343, %342 : vector<16x128xf32>
    %345 = arith.divf %343, %344 : vector<16x128xf32>
    %346 = vector.extract_strided_slice %333 {offsets = [0, 256], sizes = [16, 128], strides = [1, 1]} : vector<16x512xf32> to vector<16x128xf32>
    %347 = math.tanh %346 : vector<16x128xf32>
    %348 = vector.extract_strided_slice %333 {offsets = [0, 384], sizes = [16, 128], strides = [1, 1]} : vector<16x512xf32> to vector<16x128xf32>
    %349 = arith.negf %348 : vector<16x128xf32>
    %350 = math.exp %349 : vector<16x128xf32>
    %cst_114 = arith.constant 1.000000e+00 : f32
    %351 = vector.broadcast %cst_114 : f32 to vector<16x128xf32>
    %352 = arith.addf %351, %350 : vector<16x128xf32>
    %353 = arith.divf %351, %352 : vector<16x128xf32>
    %354 = arith.mulf %345, %286 : vector<16x128xf32>
    %355 = arith.mulf %339, %347 : vector<16x128xf32>
    %356 = arith.addf %354, %355 : vector<16x128xf32>
    %357 = math.tanh %356 : vector<16x128xf32>
    %358 = arith.mulf %353, %357 : vector<16x128xf32>
    %c4_115 = arith.constant 4 : index
    %c16_116 = arith.constant 16 : index
    %c0_117 = arith.constant 0 : index
    %359 = vector.load %arg6[%c4_115, %c16_116, %c0_117] : memref<8x32x128xf32, #tpu.memory_space<vmem>>, vector<1x16x128xf32>
    %360 = vector.shape_cast %359 : vector<1x16x128xf32> to vector<16x128xf32>
    %361 = vector.shape_cast %358 : vector<16x128xf32> to vector<1x16x128xf32>
    tpu.vector_store %arg6[%c4_115, %c16_116, %c0_117], %361 {strides = array<i32>} : memref<8x32x128xf32, #tpu.memory_space<vmem>>, vector<1x16x128xf32>,
    %c5 = arith.constant 5 : index
    %c0_118 = arith.constant 0 : index
    %c0_119 = arith.constant 0 : index
    %362 = vector.load %arg2[%c5, %c0_118, %c0_119] : memref<8x32x128xbf16, #tpu.memory_space<vmem>>, vector<1x16x128xbf16>
    %363 = vector.shape_cast %362 : vector<1x16x128xbf16> to vector<16x128xbf16>
    %cst_120 = arith.constant dense<0.000000e+00> : vector<16x512xf32>
    %364 = tpu.matmul %363, %3, %cst_120 {dimension_numbers = #tpu.dot_dimension_numbers<[1], [0], [0], [1], [0, 0, 1, 1], [], []>} : vector<16x128xbf16>, vector<128x512xbf16>, vector<16x512xf32> -> vector<16x512xf32>
    %365 = arith.truncf %323 : vector<16x128xf32> to vector<16x128xbf16>
    %cst_121 = arith.constant dense<0.000000e+00> : vector<16x512xf32>
    %366 = tpu.matmul %365, %4, %cst_121 {dimension_numbers = #tpu.dot_dimension_numbers<[1], [0], [0], [1], [0, 0, 1, 1], [], []>} : vector<16x128xbf16>, vector<128x512xbf16>, vector<16x512xf32> -> vector<16x512xf32>
    %367 = arith.addf %364, %366 : vector<16x512xf32>
    %368 = arith.addf %367, %7 : vector<16x512xf32>
    %369 = vector.extract_strided_slice %368 {offsets = [0, 0], sizes = [16, 128], strides = [1, 1]} : vector<16x512xf32> to vector<16x128xf32>
    %370 = arith.negf %369 : vector<16x128xf32>
    %371 = math.exp %370 : vector<16x128xf32>
    %cst_122 = arith.constant 1.000000e+00 : f32
    %372 = vector.broadcast %cst_122 : f32 to vector<16x128xf32>
    %373 = arith.addf %372, %371 : vector<16x128xf32>
    %374 = arith.divf %372, %373 : vector<16x128xf32>
    %375 = vector.extract_strided_slice %368 {offsets = [0, 128], sizes = [16, 128], strides = [1, 1]} : vector<16x512xf32> to vector<16x128xf32>
    %376 = arith.negf %375 : vector<16x128xf32>
    %377 = math.exp %376 : vector<16x128xf32>
    %cst_123 = arith.constant 1.000000e+00 : f32
    %378 = vector.broadcast %cst_123 : f32 to vector<16x128xf32>
    %379 = arith.addf %378, %377 : vector<16x128xf32>
    %380 = arith.divf %378, %379 : vector<16x128xf32>
    %381 = vector.extract_strided_slice %368 {offsets = [0, 256], sizes = [16, 128], strides = [1, 1]} : vector<16x512xf32> to vector<16x128xf32>
    %382 = math.tanh %381 : vector<16x128xf32>
    %383 = vector.extract_strided_slice %368 {offsets = [0, 384], sizes = [16, 128], strides = [1, 1]} : vector<16x512xf32> to vector<16x128xf32>
    %384 = arith.negf %383 : vector<16x128xf32>
    %385 = math.exp %384 : vector<16x128xf32>
    %cst_124 = arith.constant 1.000000e+00 : f32
    %386 = vector.broadcast %cst_124 : f32 to vector<16x128xf32>
    %387 = arith.addf %386, %385 : vector<16x128xf32>
    %388 = arith.divf %386, %387 : vector<16x128xf32>
    %389 = arith.mulf %380, %321 : vector<16x128xf32>
    %390 = arith.mulf %374, %382 : vector<16x128xf32>
    %391 = arith.addf %389, %390 : vector<16x128xf32>
    %392 = math.tanh %391 : vector<16x128xf32>
    %393 = arith.mulf %388, %392 : vector<16x128xf32>
    %c5_125 = arith.constant 5 : index
    %c0_126 = arith.constant 0 : index
    %c0_127 = arith.constant 0 : index
    %394 = vector.load %arg6[%c5_125, %c0_126, %c0_127] : memref<8x32x128xf32, #tpu.memory_space<vmem>>, vector<1x16x128xf32>
    %395 = vector.shape_cast %394 : vector<1x16x128xf32> to vector<16x128xf32>
    %396 = vector.shape_cast %393 : vector<16x128xf32> to vector<1x16x128xf32>
    tpu.vector_store %arg6[%c5_125, %c0_126, %c0_127], %396 {strides = array<i32>} : memref<8x32x128xf32, #tpu.memory_space<vmem>>, vector<1x16x128xf32>,
    %c5_128 = arith.constant 5 : index
    %c16_129 = arith.constant 16 : index
    %c0_130 = arith.constant 0 : index
    %397 = vector.load %arg2[%c5_128, %c16_129, %c0_130] : memref<8x32x128xbf16, #tpu.memory_space<vmem>>, vector<1x16x128xbf16>
    %398 = vector.shape_cast %397 : vector<1x16x128xbf16> to vector<16x128xbf16>
    %cst_131 = arith.constant dense<0.000000e+00> : vector<16x512xf32>
    %399 = tpu.matmul %398, %3, %cst_131 {dimension_numbers = #tpu.dot_dimension_numbers<[1], [0], [0], [1], [0, 0, 1, 1], [], []>} : vector<16x128xbf16>, vector<128x512xbf16>, vector<16x512xf32> -> vector<16x512xf32>
    %400 = arith.truncf %358 : vector<16x128xf32> to vector<16x128xbf16>
    %cst_132 = arith.constant dense<0.000000e+00> : vector<16x512xf32>
    %401 = tpu.matmul %400, %4, %cst_132 {dimension_numbers = #tpu.dot_dimension_numbers<[1], [0], [0], [1], [0, 0, 1, 1], [], []>} : vector<16x128xbf16>, vector<128x512xbf16>, vector<16x512xf32> -> vector<16x512xf32>
    %402 = arith.addf %399, %401 : vector<16x512xf32>
    %403 = arith.addf %402, %7 : vector<16x512xf32>
    %404 = vector.extract_strided_slice %403 {offsets = [0, 0], sizes = [16, 128], strides = [1, 1]} : vector<16x512xf32> to vector<16x128xf32>
    %405 = arith.negf %404 : vector<16x128xf32>
    %406 = math.exp %405 : vector<16x128xf32>
    %cst_133 = arith.constant 1.000000e+00 : f32
    %407 = vector.broadcast %cst_133 : f32 to vector<16x128xf32>
    %408 = arith.addf %407, %406 : vector<16x128xf32>
    %409 = arith.divf %407, %408 : vector<16x128xf32>
    %410 = vector.extract_strided_slice %403 {offsets = [0, 128], sizes = [16, 128], strides = [1, 1]} : vector<16x512xf32> to vector<16x128xf32>
    %411 = arith.negf %410 : vector<16x128xf32>
    %412 = math.exp %411 : vector<16x128xf32>
    %cst_134 = arith.constant 1.000000e+00 : f32
    %413 = vector.broadcast %cst_134 : f32 to vector<16x128xf32>
    %414 = arith.addf %413, %412 : vector<16x128xf32>
    %415 = arith.divf %413, %414 : vector<16x128xf32>
    %416 = vector.extract_strided_slice %403 {offsets = [0, 256], sizes = [16, 128], strides = [1, 1]} : vector<16x512xf32> to vector<16x128xf32>
    %417 = math.tanh %416 : vector<16x128xf32>
    %418 = vector.extract_strided_slice %403 {offsets = [0, 384], sizes = [16, 128], strides = [1, 1]} : vector<16x512xf32> to vector<16x128xf32>
    %419 = arith.negf %418 : vector<16x128xf32>
    %420 = math.exp %419 : vector<16x128xf32>
    %cst_135 = arith.constant 1.000000e+00 : f32
    %421 = vector.broadcast %cst_135 : f32 to vector<16x128xf32>
    %422 = arith.addf %421, %420 : vector<16x128xf32>
    %423 = arith.divf %421, %422 : vector<16x128xf32>
    %424 = arith.mulf %415, %356 : vector<16x128xf32>
    %425 = arith.mulf %409, %417 : vector<16x128xf32>
    %426 = arith.addf %424, %425 : vector<16x128xf32>
    %427 = math.tanh %426 : vector<16x128xf32>
    %428 = arith.mulf %423, %427 : vector<16x128xf32>
    %c5_136 = arith.constant 5 : index
    %c16_137 = arith.constant 16 : index
    %c0_138 = arith.constant 0 : index
    %429 = vector.load %arg6[%c5_136, %c16_137, %c0_138] : memref<8x32x128xf32, #tpu.memory_space<vmem>>, vector<1x16x128xf32>
    %430 = vector.shape_cast %429 : vector<1x16x128xf32> to vector<16x128xf32>
    %431 = vector.shape_cast %428 : vector<16x128xf32> to vector<1x16x128xf32>
    tpu.vector_store %arg6[%c5_136, %c16_137, %c0_138], %431 {strides = array<i32>} : memref<8x32x128xf32, #tpu.memory_space<vmem>>, vector<1x16x128xf32>,
    %c6 = arith.constant 6 : index
    %c0_139 = arith.constant 0 : index
    %c0_140 = arith.constant 0 : index
    %432 = vector.load %arg2[%c6, %c0_139, %c0_140] : memref<8x32x128xbf16, #tpu.memory_space<vmem>>, vector<1x16x128xbf16>
    %433 = vector.shape_cast %432 : vector<1x16x128xbf16> to vector<16x128xbf16>
    %cst_141 = arith.constant dense<0.000000e+00> : vector<16x512xf32>
    %434 = tpu.matmul %433, %3, %cst_141 {dimension_numbers = #tpu.dot_dimension_numbers<[1], [0], [0], [1], [0, 0, 1, 1], [], []>} : vector<16x128xbf16>, vector<128x512xbf16>, vector<16x512xf32> -> vector<16x512xf32>
    %435 = arith.truncf %393 : vector<16x128xf32> to vector<16x128xbf16>
    %cst_142 = arith.constant dense<0.000000e+00> : vector<16x512xf32>
    %436 = tpu.matmul %435, %4, %cst_142 {dimension_numbers = #tpu.dot_dimension_numbers<[1], [0], [0], [1], [0, 0, 1, 1], [], []>} : vector<16x128xbf16>, vector<128x512xbf16>, vector<16x512xf32> -> vector<16x512xf32>
    %437 = arith.addf %434, %436 : vector<16x512xf32>
    %438 = arith.addf %437, %7 : vector<16x512xf32>
    %439 = vector.extract_strided_slice %438 {offsets = [0, 0], sizes = [16, 128], strides = [1, 1]} : vector<16x512xf32> to vector<16x128xf32>
    %440 = arith.negf %439 : vector<16x128xf32>
    %441 = math.exp %440 : vector<16x128xf32>
    %cst_143 = arith.constant 1.000000e+00 : f32
    %442 = vector.broadcast %cst_143 : f32 to vector<16x128xf32>
    %443 = arith.addf %442, %441 : vector<16x128xf32>
    %444 = arith.divf %442, %443 : vector<16x128xf32>
    %445 = vector.extract_strided_slice %438 {offsets = [0, 128], sizes = [16, 128], strides = [1, 1]} : vector<16x512xf32> to vector<16x128xf32>
    %446 = arith.negf %445 : vector<16x128xf32>
    %447 = math.exp %446 : vector<16x128xf32>
    %cst_144 = arith.constant 1.000000e+00 : f32
    %448 = vector.broadcast %cst_144 : f32 to vector<16x128xf32>
    %449 = arith.addf %448, %447 : vector<16x128xf32>
    %450 = arith.divf %448, %449 : vector<16x128xf32>
    %451 = vector.extract_strided_slice %438 {offsets = [0, 256], sizes = [16, 128], strides = [1, 1]} : vector<16x512xf32> to vector<16x128xf32>
    %452 = math.tanh %451 : vector<16x128xf32>
    %453 = vector.extract_strided_slice %438 {offsets = [0, 384], sizes = [16, 128], strides = [1, 1]} : vector<16x512xf32> to vector<16x128xf32>
    %454 = arith.negf %453 : vector<16x128xf32>
    %455 = math.exp %454 : vector<16x128xf32>
    %cst_145 = arith.constant 1.000000e+00 : f32
    %456 = vector.broadcast %cst_145 : f32 to vector<16x128xf32>
    %457 = arith.addf %456, %455 : vector<16x128xf32>
    %458 = arith.divf %456, %457 : vector<16x128xf32>
    %459 = arith.mulf %450, %391 : vector<16x128xf32>
    %460 = arith.mulf %444, %452 : vector<16x128xf32>
    %461 = arith.addf %459, %460 : vector<16x128xf32>
    %462 = math.tanh %461 : vector<16x128xf32>
    %463 = arith.mulf %458, %462 : vector<16x128xf32>
    %c6_146 = arith.constant 6 : index
    %c0_147 = arith.constant 0 : index
    %c0_148 = arith.constant 0 : index
    %464 = vector.load %arg6[%c6_146, %c0_147, %c0_148] : memref<8x32x128xf32, #tpu.memory_space<vmem>>, vector<1x16x128xf32>
    %465 = vector.shape_cast %464 : vector<1x16x128xf32> to vector<16x128xf32>
    %466 = vector.shape_cast %463 : vector<16x128xf32> to vector<1x16x128xf32>
    tpu.vector_store %arg6[%c6_146, %c0_147, %c0_148], %466 {strides = array<i32>} : memref<8x32x128xf32, #tpu.memory_space<vmem>>, vector<1x16x128xf32>,
    %c6_149 = arith.constant 6 : index
    %c16_150 = arith.constant 16 : index
    %c0_151 = arith.constant 0 : index
    %467 = vector.load %arg2[%c6_149, %c16_150, %c0_151] : memref<8x32x128xbf16, #tpu.memory_space<vmem>>, vector<1x16x128xbf16>
    %468 = vector.shape_cast %467 : vector<1x16x128xbf16> to vector<16x128xbf16>
    %cst_152 = arith.constant dense<0.000000e+00> : vector<16x512xf32>
    %469 = tpu.matmul %468, %3, %cst_152 {dimension_numbers = #tpu.dot_dimension_numbers<[1], [0], [0], [1], [0, 0, 1, 1], [], []>} : vector<16x128xbf16>, vector<128x512xbf16>, vector<16x512xf32> -> vector<16x512xf32>
    %470 = arith.truncf %428 : vector<16x128xf32> to vector<16x128xbf16>
    %cst_153 = arith.constant dense<0.000000e+00> : vector<16x512xf32>
    %471 = tpu.matmul %470, %4, %cst_153 {dimension_numbers = #tpu.dot_dimension_numbers<[1], [0], [0], [1], [0, 0, 1, 1], [], []>} : vector<16x128xbf16>, vector<128x512xbf16>, vector<16x512xf32> -> vector<16x512xf32>
    %472 = arith.addf %469, %471 : vector<16x512xf32>
    %473 = arith.addf %472, %7 : vector<16x512xf32>
    %474 = vector.extract_strided_slice %473 {offsets = [0, 0], sizes = [16, 128], strides = [1, 1]} : vector<16x512xf32> to vector<16x128xf32>
    %475 = arith.negf %474 : vector<16x128xf32>
    %476 = math.exp %475 : vector<16x128xf32>
    %cst_154 = arith.constant 1.000000e+00 : f32
    %477 = vector.broadcast %cst_154 : f32 to vector<16x128xf32>
    %478 = arith.addf %477, %476 : vector<16x128xf32>
    %479 = arith.divf %477, %478 : vector<16x128xf32>
    %480 = vector.extract_strided_slice %473 {offsets = [0, 128], sizes = [16, 128], strides = [1, 1]} : vector<16x512xf32> to vector<16x128xf32>
    %481 = arith.negf %480 : vector<16x128xf32>
    %482 = math.exp %481 : vector<16x128xf32>
    %cst_155 = arith.constant 1.000000e+00 : f32
    %483 = vector.broadcast %cst_155 : f32 to vector<16x128xf32>
    %484 = arith.addf %483, %482 : vector<16x128xf32>
    %485 = arith.divf %483, %484 : vector<16x128xf32>
    %486 = vector.extract_strided_slice %473 {offsets = [0, 256], sizes = [16, 128], strides = [1, 1]} : vector<16x512xf32> to vector<16x128xf32>
    %487 = math.tanh %486 : vector<16x128xf32>
    %488 = vector.extract_strided_slice %473 {offsets = [0, 384], sizes = [16, 128], strides = [1, 1]} : vector<16x512xf32> to vector<16x128xf32>
    %489 = arith.negf %488 : vector<16x128xf32>
    %490 = math.exp %489 : vector<16x128xf32>
    %cst_156 = arith.constant 1.000000e+00 : f32
    %491 = vector.broadcast %cst_156 : f32 to vector<16x128xf32>
    %492 = arith.addf %491, %490 : vector<16x128xf32>
    %493 = arith.divf %491, %492 : vector<16x128xf32>
    %494 = arith.mulf %485, %426 : vector<16x128xf32>
    %495 = arith.mulf %479, %487 : vector<16x128xf32>
    %496 = arith.addf %494, %495 : vector<16x128xf32>
    %497 = math.tanh %496 : vector<16x128xf32>
    %498 = arith.mulf %493, %497 : vector<16x128xf32>
    %c6_157 = arith.constant 6 : index
    %c16_158 = arith.constant 16 : index
    %c0_159 = arith.constant 0 : index
    %499 = vector.load %arg6[%c6_157, %c16_158, %c0_159] : memref<8x32x128xf32, #tpu.memory_space<vmem>>, vector<1x16x128xf32>
    %500 = vector.shape_cast %499 : vector<1x16x128xf32> to vector<16x128xf32>
    %501 = vector.shape_cast %498 : vector<16x128xf32> to vector<1x16x128xf32>
    tpu.vector_store %arg6[%c6_157, %c16_158, %c0_159], %501 {strides = array<i32>} : memref<8x32x128xf32, #tpu.memory_space<vmem>>, vector<1x16x128xf32>,
    %c7 = arith.constant 7 : index
    %c0_160 = arith.constant 0 : index
    %c0_161 = arith.constant 0 : index
    %502 = vector.load %arg2[%c7, %c0_160, %c0_161] : memref<8x32x128xbf16, #tpu.memory_space<vmem>>, vector<1x16x128xbf16>
    %503 = vector.shape_cast %502 : vector<1x16x128xbf16> to vector<16x128xbf16>
    %cst_162 = arith.constant dense<0.000000e+00> : vector<16x512xf32>
    %504 = tpu.matmul %503, %3, %cst_162 {dimension_numbers = #tpu.dot_dimension_numbers<[1], [0], [0], [1], [0, 0, 1, 1], [], []>} : vector<16x128xbf16>, vector<128x512xbf16>, vector<16x512xf32> -> vector<16x512xf32>
    %505 = arith.truncf %463 : vector<16x128xf32> to vector<16x128xbf16>
    %cst_163 = arith.constant dense<0.000000e+00> : vector<16x512xf32>
    %506 = tpu.matmul %505, %4, %cst_163 {dimension_numbers = #tpu.dot_dimension_numbers<[1], [0], [0], [1], [0, 0, 1, 1], [], []>} : vector<16x128xbf16>, vector<128x512xbf16>, vector<16x512xf32> -> vector<16x512xf32>
    %507 = arith.addf %504, %506 : vector<16x512xf32>
    %508 = arith.addf %507, %7 : vector<16x512xf32>
    %509 = vector.extract_strided_slice %508 {offsets = [0, 0], sizes = [16, 128], strides = [1, 1]} : vector<16x512xf32> to vector<16x128xf32>
    %510 = arith.negf %509 : vector<16x128xf32>
    %511 = math.exp %510 : vector<16x128xf32>
    %cst_164 = arith.constant 1.000000e+00 : f32
    %512 = vector.broadcast %cst_164 : f32 to vector<16x128xf32>
    %513 = arith.addf %512, %511 : vector<16x128xf32>
    %514 = arith.divf %512, %513 : vector<16x128xf32>
    %515 = vector.extract_strided_slice %508 {offsets = [0, 128], sizes = [16, 128], strides = [1, 1]} : vector<16x512xf32> to vector<16x128xf32>
    %516 = arith.negf %515 : vector<16x128xf32>
    %517 = math.exp %516 : vector<16x128xf32>
    %cst_165 = arith.constant 1.000000e+00 : f32
    %518 = vector.broadcast %cst_165 : f32 to vector<16x128xf32>
    %519 = arith.addf %518, %517 : vector<16x128xf32>
    %520 = arith.divf %518, %519 : vector<16x128xf32>
    %521 = vector.extract_strided_slice %508 {offsets = [0, 256], sizes = [16, 128], strides = [1, 1]} : vector<16x512xf32> to vector<16x128xf32>
    %522 = math.tanh %521 : vector<16x128xf32>
    %523 = vector.extract_strided_slice %508 {offsets = [0, 384], sizes = [16, 128], strides = [1, 1]} : vector<16x512xf32> to vector<16x128xf32>
    %524 = arith.negf %523 : vector<16x128xf32>
    %525 = math.exp %524 : vector<16x128xf32>
    %cst_166 = arith.constant 1.000000e+00 : f32
    %526 = vector.broadcast %cst_166 : f32 to vector<16x128xf32>
    %527 = arith.addf %526, %525 : vector<16x128xf32>
    %528 = arith.divf %526, %527 : vector<16x128xf32>
    %529 = arith.mulf %520, %461 : vector<16x128xf32>
    %530 = arith.mulf %514, %522 : vector<16x128xf32>
    %531 = arith.addf %529, %530 : vector<16x128xf32>
    %532 = math.tanh %531 : vector<16x128xf32>
    %533 = arith.mulf %528, %532 : vector<16x128xf32>
    %c7_167 = arith.constant 7 : index
    %c0_168 = arith.constant 0 : index
    %c0_169 = arith.constant 0 : index
    %534 = vector.load %arg6[%c7_167, %c0_168, %c0_169] : memref<8x32x128xf32, #tpu.memory_space<vmem>>, vector<1x16x128xf32>
    %535 = vector.shape_cast %534 : vector<1x16x128xf32> to vector<16x128xf32>
    %536 = vector.shape_cast %533 : vector<16x128xf32> to vector<1x16x128xf32>
    tpu.vector_store %arg6[%c7_167, %c0_168, %c0_169], %536 {strides = array<i32>} : memref<8x32x128xf32, #tpu.memory_space<vmem>>, vector<1x16x128xf32>,
    %c7_170 = arith.constant 7 : index
    %c16_171 = arith.constant 16 : index
    %c0_172 = arith.constant 0 : index
    %537 = vector.load %arg2[%c7_170, %c16_171, %c0_172] : memref<8x32x128xbf16, #tpu.memory_space<vmem>>, vector<1x16x128xbf16>
    %538 = vector.shape_cast %537 : vector<1x16x128xbf16> to vector<16x128xbf16>
    %cst_173 = arith.constant dense<0.000000e+00> : vector<16x512xf32>
    %539 = tpu.matmul %538, %3, %cst_173 {dimension_numbers = #tpu.dot_dimension_numbers<[1], [0], [0], [1], [0, 0, 1, 1], [], []>} : vector<16x128xbf16>, vector<128x512xbf16>, vector<16x512xf32> -> vector<16x512xf32>
    %540 = arith.truncf %498 : vector<16x128xf32> to vector<16x128xbf16>
    %cst_174 = arith.constant dense<0.000000e+00> : vector<16x512xf32>
    %541 = tpu.matmul %540, %4, %cst_174 {dimension_numbers = #tpu.dot_dimension_numbers<[1], [0], [0], [1], [0, 0, 1, 1], [], []>} : vector<16x128xbf16>, vector<128x512xbf16>, vector<16x512xf32> -> vector<16x512xf32>
    %542 = arith.addf %539, %541 : vector<16x512xf32>
    %543 = arith.addf %542, %7 : vector<16x512xf32>
    %544 = vector.extract_strided_slice %543 {offsets = [0, 0], sizes = [16, 128], strides = [1, 1]} : vector<16x512xf32> to vector<16x128xf32>
    %545 = arith.negf %544 : vector<16x128xf32>
    %546 = math.exp %545 : vector<16x128xf32>
    %cst_175 = arith.constant 1.000000e+00 : f32
    %547 = vector.broadcast %cst_175 : f32 to vector<16x128xf32>
    %548 = arith.addf %547, %546 : vector<16x128xf32>
    %549 = arith.divf %547, %548 : vector<16x128xf32>
    %550 = vector.extract_strided_slice %543 {offsets = [0, 128], sizes = [16, 128], strides = [1, 1]} : vector<16x512xf32> to vector<16x128xf32>
    %551 = arith.negf %550 : vector<16x128xf32>
    %552 = math.exp %551 : vector<16x128xf32>
    %cst_176 = arith.constant 1.000000e+00 : f32
    %553 = vector.broadcast %cst_176 : f32 to vector<16x128xf32>
    %554 = arith.addf %553, %552 : vector<16x128xf32>
    %555 = arith.divf %553, %554 : vector<16x128xf32>
    %556 = vector.extract_strided_slice %543 {offsets = [0, 256], sizes = [16, 128], strides = [1, 1]} : vector<16x512xf32> to vector<16x128xf32>
    %557 = math.tanh %556 : vector<16x128xf32>
    %558 = vector.extract_strided_slice %543 {offsets = [0, 384], sizes = [16, 128], strides = [1, 1]} : vector<16x512xf32> to vector<16x128xf32>
    %559 = arith.negf %558 : vector<16x128xf32>
    %560 = math.exp %559 : vector<16x128xf32>
    %cst_177 = arith.constant 1.000000e+00 : f32
    %561 = vector.broadcast %cst_177 : f32 to vector<16x128xf32>
    %562 = arith.addf %561, %560 : vector<16x128xf32>
    %563 = arith.divf %561, %562 : vector<16x128xf32>
    %564 = arith.mulf %555, %496 : vector<16x128xf32>
    %565 = arith.mulf %549, %557 : vector<16x128xf32>
    %566 = arith.addf %564, %565 : vector<16x128xf32>
    %567 = math.tanh %566 : vector<16x128xf32>
    %568 = arith.mulf %563, %567 : vector<16x128xf32>
    %c7_178 = arith.constant 7 : index
    %c16_179 = arith.constant 16 : index
    %c0_180 = arith.constant 0 : index
    %569 = vector.load %arg6[%c7_178, %c16_179, %c0_180] : memref<8x32x128xf32, #tpu.memory_space<vmem>>, vector<1x16x128xf32>
    %570 = vector.shape_cast %569 : vector<1x16x128xf32> to vector<16x128xf32>
    %571 = vector.shape_cast %568 : vector<16x128xf32> to vector<1x16x128xf32>
    tpu.vector_store %arg6[%c7_178, %c16_179, %c0_180], %571 {strides = array<i32>} : memref<8x32x128xf32, #tpu.memory_space<vmem>>, vector<1x16x128xf32>,
    %c0_181 = arith.constant 0 : index
    %c0_182 = arith.constant 0 : index
    %572 = vector.load %arg7[%c0_181, %c0_182] : memref<32x128xf32, #tpu.memory_space<vmem>>, vector<16x128xf32>
    tpu.vector_store %arg7[%c0_181, %c0_182], %533 {strides = array<i32>} : memref<32x128xf32, #tpu.memory_space<vmem>>, vector<16x128xf32>,
    %c0_183 = arith.constant 0 : index
    %c0_184 = arith.constant 0 : index
    %573 = vector.load %arg8[%c0_183, %c0_184] : memref<32x128xf32, #tpu.memory_space<vmem>>, vector<16x128xf32>
    tpu.vector_store %arg8[%c0_183, %c0_184], %531 {strides = array<i32>} : memref<32x128xf32, #tpu.memory_space<vmem>>, vector<16x128xf32>,
    %c16_185 = arith.constant 16 : index
    %c0_186 = arith.constant 0 : index
    %574 = vector.load %arg7[%c16_185, %c0_186] : memref<32x128xf32, #tpu.memory_space<vmem>>, vector<16x128xf32>
    tpu.vector_store %arg7[%c16_185, %c0_186], %568 {strides = array<i32>} : memref<32x128xf32, #tpu.memory_space<vmem>>, vector<16x128xf32>,
    %c16_187 = arith.constant 16 : index
    %c0_188 = arith.constant 0 : index
    %575 = vector.load %arg8[%c16_187, %c0_188] : memref<32x128xf32, #tpu.memory_space<vmem>>, vector<16x128xf32>
    tpu.vector_store %arg8[%c16_187, %c0_188], %566 {strides = array<i32>} : memref<32x128xf32, #tpu.memory_space<vmem>>, vector<16x128xf32>,
    return
  }
  func.func @transform_0(%arg0: i32, %arg1: i32) -> (i32, i32, i32) {
    %c0_i32 = arith.constant 0 : i32
    %c0_i32_0 = arith.constant 0 : i32
    return %arg1, %arg0, %c0_i32 : i32, i32, i32
  }
  func.func @transform_1(%arg0: i32, %arg1: i32) -> (i32, i32) {
    %c0_i32 = arith.constant 0 : i32
    %c0_i32_0 = arith.constant 0 : i32
    %c0_i32_1 = arith.constant 0 : i32
    return %c0_i32, %c0_i32_0 : i32, i32
  }
  func.func @transform_2(%arg0: i32, %arg1: i32) -> (i32, i32) {
    %c0_i32 = arith.constant 0 : i32
    %c0_i32_0 = arith.constant 0 : i32
    %c0_i32_1 = arith.constant 0 : i32
    return %c0_i32, %c0_i32_0 : i32, i32
  }
  func.func @transform_3(%arg0: i32, %arg1: i32) -> (i32, i32) {
    %c0_i32 = arith.constant 0 : i32
    %c0_i32_0 = arith.constant 0 : i32
    %c0_i32_1 = arith.constant 0 : i32
    return %c0_i32, %c0_i32_0 : i32, i32
  }
  func.func @transform_4(%arg0: i32, %arg1: i32) -> (i32, i32, i32) {
    %c0_i32 = arith.constant 0 : i32
    %c0_i32_0 = arith.constant 0 : i32
    return %arg1, %arg0, %c0_i32 : i32, i32, i32
  }
}

</mosaic_0001>

<bundles_post_ra>
// kernel: tpu_custom_call.1
= control target key start
LH: loop header
LB: loop body
LE: loop exit
PB: predicated region body
PF: predicated region fallthrough
CT: control target
= control target key end

     0   :  { %9 = vsyncpa [#allocation5], 0  ;;  %s8320_s0 = inlined_call_operand.hbm [shape: bf16[32,32,128], index: 0, kind: input, shape index: {}]   ;;  %s8321_s1 = inlined_call_operand.hbm [shape: bf16[128,512], index: 1, kind: input, shape index: {}]   ;;  %s8322_s2 = inlined_call_operand.hbm [shape: bf16[128,512], index: 2, kind: input, shape index: {}]   ;;  %s8323_s3 = inlined_call_operand.vmem [shape: f32[1,512], index: 3, kind: input, shape index: {}]   ;;  %s8324_s4 = inlined_call_operand.hbm [shape: f32[32,32,128], index: 4, kind: output, shape index: {}]  }
   0x1   :  { %11 = vsyncpa [#allocation5 + $0x1], 0 }
   0x2   :  { %12 = vsyncpa [#allocation8], 0 }
   0x3   :  { %13 = vsyncpa [#allocation6], 0 }
   0x4   :  { %15 = vsyncpa [#allocation6 + $0x1], 0  ;;  %s6168_s15 = smov 0   ;;  %s6170_s16 = smov 0  }
   0x5   :  { %s6172_s17 = smov 0   ;;  %s6174_s18 = smov 0  }
   0x6   :  { %s6176_s19 = smov 0   ;;  %s6178_s20 = smov 0  }
   0x7 LB: > { %s4664_s21 = sadd.s32 4294967295, %s6129_s20   ;;  %s4665_s22 = sadd.s32 4294967294, %s6129_s20   ;;  %s6129_s20 = sphi %s6178_s20, %s21_s20   ;;  %s6125_s19 = sphi %s6176_s19, %s8921_s19   ;;  %s6121_s18 = sphi %s6174_s18, %s8920_s18   ;;  %s6117_s17 = sphi %s6172_s17, %s8919_s17   ;;  %s6113_s16 = sphi %s6170_s16, %s8918_s16   ;;  %s6109_s15 = sphi %s6168_s15, %s8917_s15  }
   0x8   : > { %p55_p0 = scmp.ne.s32.totalorder %s6113_s16, %s6109_s15  ;;  %p6202_p1 = scmp.eq.s32.totalorder %s4664_s21, 0 }
   0x9   : > { %p6206_p2 = scmp.eq.s32.totalorder %s4664_s21, 3  ;;  %p150_p3 = scmp.eq.s32.totalorder %s4665_s22, 3 }
   0xa   : > { %s8563_s23 = scalar_select %p6202_p1, 1, 0 }
   0xb   : > { %s8564_s24 = scalar_select %p6206_p2, 1, 0 }
   0xc   : > { %p6212_p4 = por %p6202_p1, %p55_p0  ;;  %p4666_p5 = scmp.ge.s32.totalorder %s6129_s20, 1 }
   0xd   : > { %p6217_p6 = por %p150_p3, %p55_p0  ;;  %p157_p7 = scmp.lt.s32.totalorder %s6129_s20, 5 }
   0xe   : > { %s8565_s25 = scalar_select %p6212_p4, 1, 0 }
   0xf   : > { %s8566_s26 = scalar_select %p6217_p6, 1, 0 }
  0x10   : > { %p6222_p8 = pnand %p4666_p5, %p157_p7  ;;  %s6131_s28 = smov [#allocation7]  }
  0x11   : > { %s169_s29 = sshll.u32 %s6131_s28, 4  ;;  %s6132_s5 = smov [#allocation9]   ;;  %s170_s29 = int_to_ptr.vmem [resolvable:$true] %s169_s29 }
  0x12   : > { %s8567_s27 = scalar_select %p6222_p8, 1, 0 }
  0x13   : > { %p5062_p9 = pneg %p6222_p8  ;;  %s182_s6 = sshll.u32 %s6132_s5, 4  ;;  %s6234_s6 = int_to_ptr.vmem [resolvable:$true] %s182_s6 }
  0x14   : > { %s5957_s9 = scalar_lea.hbm %s8321_s1, 4096 }
  0x15   : > { %p6230_p10 = pnand %p5062_p9, %p6202_p1  ;;  %p5958_p11 = scmp.ne.s32.totalorder %s8321_s1, %s5957_s9 }
  0x16   : > { %p5964_p3 = scmp.lt.u32.totalorder %s5957_s9, %s8321_s1 }
  0x17   : > { %p5959_p12 = pneg %p6230_p10 }
  0x19   : > { %p5960_p13 = pnand %p5959_p12, %p5958_p11 }
  0x1b   : > { %p5961_p0 = pneg %p5960_p13 }
  0x1d   : > { %p5966_p5 = pnand %p5964_p3, %p5961_p0 }
  0x1f   : > { %5969 = shalt.err (!%p5966_p5)
}
  0x20   : > { %s5970_s14 = scalar_lea.vmem %s170_s29, 4096  ;;  %p5978_p1 = scmp.lt.s32.totalorder %s170_s29, %s170_s29 }
  0x21   : > { %p5971_p7 = scmp.ne.s32.totalorder %s170_s29, %s5970_s14  ;;  %p5979_p4 = scmp.lt.s32.totalorder %s5970_s14, %s5970_s14 }
  0x23   : > { %p5973_p9 = pnand %p5971_p7, %p5959_p12  ;;  %p5980_p8 = por %p5979_p4, %p5978_p1 }
  0x25   : > { %p5974_p6 = pneg %p5973_p9 }
  0x27   : > { %p5981_p2 = pnand %p5980_p8, %p5974_p6 }
  0x29   : > { %5984 = shalt.err (!%p5981_p2)
}
  0x2a   : > { %s6133_s21 = smov 256   ;;  %s6134_s22 = smov 16  }
  0x2b   : > { %5065 = dma.hbm_to_vmem [thread:$0]  (!%p6230_p10), %s8321_s1, 4096, %s170_s29, [#allocation8], %s6133_s21, %s6133_s21, %s6134_s22  }
  0x2c   : > { %s5985_s9 = scalar_lea.hbm %s8322_s2, 4096 }
  0x2d   : > { %p5986_p11 = scmp.ne.s32.totalorder %s8322_s2, %s5985_s9  ;;  %p5992_p4 = scmp.lt.u32.totalorder %s5985_s9, %s8322_s2 }
  0x2f   : > { %p5988_p1 = pnand %p5986_p11, %p5959_p12 }
  0x31   : > { %p5989_p2 = pneg %p5988_p1 }
  0x33   : > { %p5994_p6 = pnand %p5992_p4, %p5989_p2 }
  0x35   : > { %5997 = shalt.err (!%p5994_p6)
}
  0x36   : > { %s5998_s29 = scalar_lea.vmem %s6234_s6, 4096  ;;  %p6006_p3 = scmp.lt.s32.totalorder %s6234_s6, %s6234_s6 }
  0x37   : > { %p5999_p8 = scmp.ne.s32.totalorder %s6234_s6, %s5998_s29  ;;  %p6007_p5 = scmp.lt.s32.totalorder %s5998_s29, %s5998_s29 }
  0x39   : > { %p6001_p13 = pnand %p5999_p8, %p5959_p12  ;;  %p6008_p7 = por %p6007_p5, %p6006_p3 }
  0x3b   : > { %p6002_p0 = pneg %p6001_p13 }
  0x3d   : > { %p6009_p9 = pnand %p6008_p7, %p6002_p0 }
  0x3f   : > { %6012 = shalt.err (!%p6009_p9)
}
  0x40   : > { %5068 = dma.hbm_to_vmem [thread:$0]  (!%p6230_p10), %s8322_s2, 4096, %s6234_s6, [#allocation8], %s6133_s21, %s6133_s21, %s6134_s22  }
  0x41   : > { %s30_s5 = sadd.s32 1, %s6125_s19  ;;  %s42_s7 = sadd.s32 1, %s6117_s17 }
  0x42   : > { %p31_p12 = scmp.ge.s32.totalorder %s30_s5, 4  ;;  %p49_p11 = scmp.ne.s32.totalorder %s6117_s17, %s6113_s16 }
  0x43   : > { %p50_p1 = scmp.eq.s32.totalorder %s6129_s20, 0  ;;  %p5079_p2 = scmp.lt.s32.totalorder %s6129_s20, 4 }
  0x44   : > { %s8923_s5 = smov (%p31_p12, %s30_s5), 0  ;;  %p8569_p6 = scmp.ne.s32.totalorder %s8564_s24, 0 }
  0x45   : > { %p51_p4 = por %p50_p1, %p49_p11  ;;  %s37_s8 = ssub.s32 %s6125_s19, %s8923_s5 }
  0x46   : > { %p6293_p8 = por %p8569_p6, %p49_p11  ;;  %s199_s9 = sand.u32 1, %s6117_s17  }
  0x47   : > { %p40_p13 = scmp.eq.s32.totalorder %s37_s8, 0  ;;  %s4670_s6 = sshll.u32 %s199_s9, 7 }
  0x48   : > { %s4919_s21 = sshll.u32 %s6125_s19, 11  ;;  %s203_s24 = scalar_lea.vmem [#allocation4], %s4670_s6 }
  0x49   : > { %s6302_s22 = scalar_select %p40_p13, %s6117_s17, %s42_s7  }
  0x4a   : > { %s6307_s12 = scalar_lea.hbm %s8320_s0, %s4919_s21  ;;  %s213_s13 = sshll.u32 %s203_s24, 4  ;;  %s6315_s13 = int_to_ptr.vmem [resolvable:$true] %s213_s13 }
  0x4b   : > { %p6311_p10 = pnand %p5079_p2, %p51_p4  ;;  %s6317_s14 = scalar_lea.sflag [#allocation5], %s199_s9 }
  0x4c   : > { %s6013_s28 = scalar_lea.hbm %s6307_s12, 2048  ;;  %s6018_s6 = scalar_lea.hbm %s8320_s0, 8192 }
  0x4d   : > { %p6014_p0 = scmp.ne.s32.totalorder %s6307_s12, %s6013_s28  ;;  %p6015_p3 = pneg %p6311_p10 }
  0x4e   : > { %p6019_p9 = scmp.lt.u32.totalorder %s6307_s12, %s8320_s0  ;;  %p6020_p12 = scmp.lt.u32.totalorder %s6018_s6, %s6013_s28 }
  0x4f   : > { %p6016_p5 = pnand %p6015_p3, %p6014_p0  ;;  %p6022_p1 = scmp.lt.u32.totalorder %s6013_s28, %s6307_s12 }
  0x50   : > { %p6021_p11 = por %p6020_p12, %p6019_p9 }
  0x51   : > { %p6017_p7 = pneg %p6016_p5 }
  0x52   : > { %p6023_p2 = por %p6022_p1, %p6021_p11 }
  0x54   : > { %p6024_p4 = pnand %p6023_p2, %p6017_p7 }
  0x56   : > { %6027 = shalt.err (!%p6024_p4)
}
  0x57   : > { %s6028_s9 = scalar_lea.vmem %s6315_s13, 2048  ;;  %s6135_s11 = smov [#allocation4]  }
  0x58   : > { %p6029_p6 = scmp.ne.s32.totalorder %s6315_s13, %s6028_s9  ;;  %s6033_s24 = sshll.u32 %s6135_s11, 4  ;;  %s6034_s24 = int_to_ptr.vmem [resolvable:$false] %s6033_s24 }
  0x59   : > { %s6035_s7 = scalar_lea.vmem %s6034_s24, 4096  ;;  %p6036_p5 = scmp.lt.s32.totalorder %s6315_s13, %s6034_s24 }
  0x5a   : > { %p6031_p13 = pnand %p6029_p6, %p6015_p3  ;;  %p6037_p9 = scmp.lt.s32.totalorder %s6035_s7, %s6028_s9 }
  0x5c   : > { %p6032_p0 = pneg %p6031_p13  ;;  %p6038_p12 = por %p6037_p9, %p6036_p5 }
  0x5e   : > { %p6039_p11 = pnand %p6038_p12, %p6032_p0 }
  0x60   : > { %6042 = shalt.err (!%p6039_p11)
}
  0x61   : > { %s6136_s28 = smov 64   ;;  %s6137_s8 = smov 4  }
  0x62   : > { %5072 = dma.hbm_to_vmem [thread:$0]  (!%p6311_p10), %s6307_s12, 2048, %s6315_s13, %s6317_s14, %s6136_s28, %s6136_s28, %s6137_s8  }
  0x63   : > { %p8572_p3 = scmp.ne.s32.totalorder %s8567_s27, 0 }
  0x65   : > { %225 = sbr.rel (%p8572_p3) target bundleno = 2595 (0xa23), region = 36 }
  0x6c   : > { %s6348_s6 = sand.u32 1, %s6113_s16   ;;  %p8573_p7 = scmp.ne.s32.totalorder %s8565_s25, 0 }
  0x6d   : > { %s4675_s21 = sshll.u32 %s6348_s6, 7  ;;  %s228_s10 = scalar_lea.sflag [#allocation5], %s6348_s6 }
  0x6e   : > { %s6352_s9 = scalar_lea.vmem [#allocation4], %s4675_s21 }
  0x6f   : > { %6096 = dma.done.wait (%p8573_p7), %s228_s10, 2048  }
  0x70   : > { %6098 = vsyncadd (%p8573_p7), %s228_s10, 4294965248  ;;  %p8574_p10 = scmp.ne.s32.totalorder %s8563_s23, 0 }
  0x72   : > { %6100 = dma.done.wait (%p8574_p10), [#allocation8], 8192  }
  0x73   : > { %6102 = vsyncadd (%p8574_p10), [#allocation8], 4294959104  ;;  %s4678_s27 = sshll.u32 %s6348_s6, 8  ;;  %p4679_p1 = scmp.ne.s32.totalorder %s6121_s18, 0 }
  0x74   : > { %s6363_s12 = scalar_lea.vmem [#allocation10], %s4678_s27  ;;  %v6138_v0 = vmov (!%p4679_p1), 0.0  }
  0x75   : > { %272 = sbr.rel (%p4679_p1) target bundleno = 124 (0x7c), region = 52  ;;  %273 = vst [vmem:[#allocation2] sm:$0xff] (!%p4679_p1), %v6138_v0  ;;  %274 = vst [vmem:[#allocation2 + $0x8] sm:$0xff] (!%p4679_p1), %v6138_v0 }
  0x76   : > { %275 = vst [vmem:[#allocation2 + $0x10] sm:$0xff] (!%p4679_p1), %v6138_v0  ;;  %276 = vst [vmem:[#allocation2 + $0x18] sm:$0xff] (!%p4679_p1), %v6138_v0 }
  0x77   : > { %277 = vst [vmem:[#allocation3] sm:$0xff] (!%p4679_p1), %v6138_v0  ;;  %278 = vst [vmem:[#allocation3 + $0x8] sm:$0xff] (!%p4679_p1), %v6138_v0 }
  0x78   : > { %279 = vst [vmem:[#allocation3 + $0x10] sm:$0xff] (!%p4679_p1), %v6138_v0  ;;  %280 = vst [vmem:[#allocation3 + $0x18] sm:$0xff] (!%p4679_p1), %v6138_v0 }
  0x7c PF: > { %v6366_v1 = vld [vmem:[#allocation9 + $0x4] ss:$16 sps:$4 sm:$0xff]   ;;  %v6368_v2 = vld [vmem:[#allocation9 + $0xc] ss:$16 sps:$4 sm:$0xff]   ;;  %v8329_v3 = vmov 0   ;;  %s4921_s13 = sshll.u32 %s6121_s18, 12 }
  0x7d   : > { %570 = vmatprep.mubr.bf16.mxu0 %v8329_v3  ;;  %613 = vmatprep.mubr.bf16.mxu1 %v8329_v3  ;;  %v6373_v4 = vld [vmem:[#allocation9] ss:$16 sps:$4 sm:$0xff]   ;;  %v6375_v5 = vld [vmem:[#allocation9 + $0x8] ss:$16 sps:$4 sm:$0xff]   ;;  %v6378_v6 = vld [vmem:[#allocation9 + $0x24] ss:$16 sps:$4 sm:$0xff]   ;;  %s8269_s24 = scalar_lea.hbm %s8324_s4, %s4921_s13 }
  0x7e   : > { %538 = vmatprep.subr.bf16.mxu0 %v6366_v1  ;;  %581 = vmatprep.subr.bf16.mxu1 %v6368_v2  ;;  %v6382_v7 = vld [vmem:[#allocation9 + $0x2c] ss:$16 sps:$4 sm:$0xff]   ;;  %v6384_v8 = vld [vmem:[#allocation9 + $0x20] ss:$16 sps:$4 sm:$0xff]   ;;  %v6387_v9 = vld [vmem:[#allocation9 + $0x28] ss:$16 sps:$4 sm:$0xff]  }
  0x7f   : > { %539 = vmatpush1.bf16.msra.mxu0 %v6373_v4  ;;  %582 = vmatpush1.bf16.msra.mxu1 %v6375_v5  ;;  %v6390_v10 = vld [vmem:[#allocation9 + $0x44] ss:$16 sps:$4 sm:$0xff]   ;;  %v6392_v11 = vld [vmem:[#allocation9 + $0x4c] ss:$16 sps:$4 sm:$0xff]   ;;  %v6394_v12 = vld [vmem:[#allocation9 + $0x40] ss:$16 sps:$4 sm:$0xff]  }
  0x80   : > { %540 = vmatprep.subr.bf16.mxu0 %v6378_v6  ;;  %583 = vmatprep.subr.bf16.mxu1 %v6382_v7  ;;  %8575 = vst [vmem:[#allocation14_spill] sm:$0xff] %v6392_v11  ;;  %v6396_v13 = vld [vmem:[#allocation9 + $0x48] ss:$16 sps:$4 sm:$0xff]   ;;  %v6400_v14 = vld [vmem:[#allocation9 + $0x64] ss:$16 sps:$4 sm:$0xff]   ;;  %s4558_s29 = sshll.u32 %s6363_s12, 4  ;;  %s8271_s29 = int_to_ptr.vmem [resolvable:$true] %s4558_s29 }
  0x81   : > { %8576 = vst [vmem:[#allocation15_spill] sm:$0xff] %v6396_v13  ;;  %8577 = vst [vmem:[#allocation16_spill] sm:$0xff] %v6400_v14  ;;  %v6404_v15 = vld [vmem:[#allocation9 + $0x6c] ss:$16 sps:$4 sm:$0xff]   ;;  %v6406_v16 = vld [vmem:[#allocation9 + $0x60] ss:$16 sps:$4 sm:$0xff]  }
  0x82   : > { %8578 = vst [vmem:[#allocation17_spill] sm:$0xff] %v6404_v15  ;;  %8579 = vst [vmem:[#allocation18_spill] sm:$0xff] %v6406_v16  ;;  %v6410_v17 = vld [vmem:[#allocation9 + $0x68] ss:$16 sps:$4 sm:$0xff]   ;;  %v6412_v18 = vld [vmem:[#allocation9 + $0x84] ss:$16 sps:$4 sm:$0xff]  }
  0x83   : > { %541 = vmatpush1.bf16.msra.mxu0 %v6384_v8  ;;  %584 = vmatpush1.bf16.msra.mxu1 %v6387_v9  ;;  %8580 = vst [vmem:[#allocation19_spill] sm:$0xff] %v6410_v17  ;;  %8581 = vst [vmem:[#allocation20_spill] sm:$0xff] %v6412_v18  ;;  %v6416_v19 = vld [vmem:[#allocation9 + $0x8c] ss:$16 sps:$4 sm:$0xff]   ;;  %v6418_v20 = vld [vmem:[#allocation9 + $0x80] ss:$16 sps:$4 sm:$0xff]  }
  0x84   : > { %542 = vmatprep.subr.bf16.mxu0 %v6390_v10  ;;  %585 = vmatprep.subr.bf16.mxu1 %v6392_v11  ;;  %8582 = vst [vmem:[#allocation21_spill] sm:$0xff] %v6416_v19  ;;  %8583 = vst [vmem:[#allocation22_spill] sm:$0xff] %v6418_v20  ;;  %v6420_v21 = vld [vmem:[#allocation9 + $0x88] ss:$16 sps:$4 sm:$0xff]   ;;  %v6424_v22 = vld [vmem:[#allocation9 + $0xa4] ss:$16 sps:$4 sm:$0xff]  }
  0x85   : > { %8584 = vst [vmem:[#allocation23_spill] sm:$0xff] %v6420_v21  ;;  %8585 = vst [vmem:[#allocation24_spill] sm:$0xff] %v6424_v22  ;;  %v6428_v23 = vld [vmem:[#allocation9 + $0xac] ss:$16 sps:$4 sm:$0xff]   ;;  %v6430_v24 = vld [vmem:[#allocation9 + $0xa0] ss:$16 sps:$4 sm:$0xff]  }
  0x86   : > { %8586 = vst [vmem:[#allocation25_spill] sm:$0xff] %v6428_v23  ;;  %8587 = vst [vmem:[#allocation26_spill] sm:$0xff] %v6430_v24  ;;  %v6434_v25 = vld [vmem:[#allocation9 + $0xa8] ss:$16 sps:$4 sm:$0xff]   ;;  %v6436_v26 = vld [vmem:[#allocation9 + $0xc4] ss:$16 sps:$4 sm:$0xff]  }
  0x87   : > { %543 = vmatpush1.bf16.msra.mxu0 %v6394_v12  ;;  %586 = vmatpush1.bf16.msra.mxu1 %v6396_v13  ;;  %8588 = vst [vmem:[#allocation27_spill] sm:$0xff] %v6434_v25  ;;  %8589 = vst [vmem:[#allocation28_spill] sm:$0xff] %v6436_v26  ;;  %v6440_v27 = vld [vmem:[#allocation9 + $0xcc] ss:$16 sps:$4 sm:$0xff]   ;;  %v6442_v28 = vld [vmem:[#allocation9 + $0xc0] ss:$16 sps:$4 sm:$0xff]  }
  0x88   : > { %544 = vmatprep.subr.bf16.mxu0 %v6400_v14  ;;  %587 = vmatprep.subr.bf16.mxu1 %v6404_v15  ;;  %8590 = vst [vmem:[#allocation29_spill] sm:$0xff] %v6440_v27  ;;  %8591 = vst [vmem:[#allocation30_spill] sm:$0xff] %v6442_v28  ;;  %v6446_v29 = vld [vmem:[#allocation9 + $0xc8] ss:$16 sps:$4 sm:$0xff]   ;;  %v6448_v30 = vld [vmem:[#allocation9 + $0xe4] ss:$16 sps:$4 sm:$0xff]  }
  0x89   : > { %8592 = vst [vmem:[#allocation31_spill] sm:$0xff] %v6446_v29  ;;  %8593 = vst [vmem:[#allocation32_spill] sm:$0xff] %v6448_v30  ;;  %v6452_v31 = vld [vmem:[#allocation9 + $0xec] ss:$16 sps:$4 sm:$0xff]   ;;  %v6454_v32 = vld [vmem:[#allocation9 + $0xe0] ss:$16 sps:$4 sm:$0xff]  }
  0x8a   : > { %8594 = vst [vmem:[#allocation33_spill] sm:$0xff] %v6452_v31  ;;  %8595 = vst [vmem:[#allocation34_spill] sm:$0xff] %v6454_v32  ;;  %v6456_v33 = vld [vmem:[#allocation9 + $0xe8] ss:$16 sps:$4 sm:$0xff]   ;;  %v367_v34 = vld [vmem:[#allocation2] sm:$0xff]  ;;  %s4542_s7 = scalar_lea.sflag [#allocation6], %s6348_s6 }
  0x8b   : > { %545 = vmatpush1.bf16.msra.mxu0 %v6406_v16  ;;  %588 = vmatpush1.bf16.msra.mxu1 %v6410_v17  ;;  %8596 = vst [vmem:[#allocation35_spill] sm:$0xff] %v6456_v33  ;;  %v368_v35 = vld [vmem:[#allocation2 + $0x8] sm:$0xff]  ;;  %v6462_v36 = vld [vmem:[#allocation7 + $0x4] ss:$16 sps:$4 sm:$0xff]   ;;  %v6466_v39 = vld [vmem:[#allocation7] ss:$16 sps:$4 sm:$0xff]  }
  0x8c   : > { %546 = vmatprep.subr.bf16.mxu0 %v6412_v18  ;;  %589 = vmatprep.subr.bf16.mxu1 %v6416_v19  ;;  %8597 = vst [vmem:[#allocation36_spill] sm:$0xff] %v6462_v36  ;;  %v6464_v37 = vld [vmem:[#allocation7 + $0xc] ss:$16 sps:$4 sm:$0xff]   ;;  %v377_v38 = vpack.c.bf16 %v368_v35, %v367_v34  ;;  %v6470_v40 = vld [vmem:[#allocation7 + $0x8] ss:$16 sps:$4 sm:$0xff]   ;;  %s6043_s18 = scalar_lea.vmem %s8271_s29, 4096 }
  0x8d   : > { %8598 = vst [vmem:[#allocation37_spill] sm:$0xff] %v6464_v37  ;;  %v6472_v41 = vld [vmem:[#allocation7 + $0x24] ss:$16 sps:$4 sm:$0xff]   ;;  %v6476_v42 = vld [vmem:[#allocation7 + $0x2c] ss:$16 sps:$4 sm:$0xff]   ;;  %p6044_p2 = scmp.ne.s32.totalorder %s8271_s29, %s6043_s18  ;;  %s6140_s28 = smov [#allocation10]  }
  0x8e   : > { %v6478_v43 = vld [vmem:[#allocation7 + $0x20] ss:$16 sps:$4 sm:$0xff]   ;;  %v6482_v44 = vld [vmem:[#allocation7 + $0x28] ss:$16 sps:$4 sm:$0xff]   ;;  %v6486_v45 = vld [vmem:[#allocation7 + $0x44] ss:$16 sps:$4 sm:$0xff]  }
  0x8f   : > { %547 = vmatpush1.bf16.msra.mxu0 %v6418_v20  ;;  %590 = vmatpush1.bf16.msra.mxu1 %v6420_v21  ;;  %v6488_v46 = vld [vmem:[#allocation7 + $0x4c] ss:$16 sps:$4 sm:$0xff]   ;;  %v6492_v47 = vld [vmem:[#allocation7 + $0x40] ss:$16 sps:$4 sm:$0xff]   ;;  %v6496_v48 = vld [vmem:[#allocation7 + $0x48] ss:$16 sps:$4 sm:$0xff]   ;;  %p6045_p4 = pnand %p6044_p2, %p6293_p8 }
  0x90   : > { %548 = vmatprep.subr.bf16.mxu0 %v6424_v22  ;;  %591 = vmatprep.subr.bf16.mxu1 %v6428_v23  ;;  %v6498_v49 = vld [vmem:[#allocation7 + $0x64] ss:$16 sps:$4 sm:$0xff]   ;;  %v6502_v50 = vld [vmem:[#allocation7 + $0x6c] ss:$16 sps:$4 sm:$0xff]   ;;  %v6506_v51 = vld [vmem:[#allocation7 + $0x60] ss:$16 sps:$4 sm:$0xff]  }
  0x91   : > { %v6508_v52 = vld [vmem:[#allocation7 + $0x68] ss:$16 sps:$4 sm:$0xff]   ;;  %v6510_v53 = vld [vmem:[#allocation7 + $0x84] ss:$16 sps:$4 sm:$0xff]   ;;  %v6514_v54 = vld [vmem:[#allocation7 + $0x8c] ss:$16 sps:$4 sm:$0xff]   ;;  %p6046_p6 = pneg %p6045_p4 }
  0x92   : > { %v6516_v55 = vld [vmem:[#allocation7 + $0x80] ss:$16 sps:$4 sm:$0xff]   ;;  %v6518_v56 = vld [vmem:[#allocation7 + $0x88] ss:$16 sps:$4 sm:$0xff]   ;;  %v6520_v57 = vld [vmem:[#allocation7 + $0xa4] ss:$16 sps:$4 sm:$0xff]  }
  0x93   : > { %549 = vmatpush1.bf16.msra.mxu0 %v6430_v24  ;;  %592 = vmatpush1.bf16.msra.mxu1 %v6434_v25  ;;  %v6522_v58 = vld [vmem:[#allocation7 + $0xac] ss:$16 sps:$4 sm:$0xff]   ;;  %v6528_v59 = vld [vmem:[#allocation7 + $0xa0] ss:$16 sps:$4 sm:$0xff]   ;;  %v6530_v60 = vld [vmem:[#allocation7 + $0xa8] ss:$16 sps:$4 sm:$0xff]  }
  0x94   : > { %550 = vmatprep.subr.bf16.mxu0 %v6436_v26  ;;  %593 = vmatprep.subr.bf16.mxu1 %v6440_v27  ;;  %8599 = vst [vmem:[#allocation38_spill] sm:$0xff] %v6530_v60  ;;  %v6532_v61 = vld [vmem:[#allocation7 + $0xc4] ss:$16 sps:$4 sm:$0xff]   ;;  %v6534_v62 = vld [vmem:[#allocation7 + $0xcc] ss:$16 sps:$4 sm:$0xff]   ;;  %s6047_s8 = sshll.u32 %s6140_s28, 4  ;;  %s6048_s8 = int_to_ptr.vmem [resolvable:$false] %s6047_s8 }
  0x95   : > { %v6542_v63 = vld [vmem:[#allocation7 + $0xc0] ss:$16 sps:$4 sm:$0xff]   ;;  %v6544_v0 = vld [vmem:[#allocation7 + $0xc8] ss:$16 sps:$4 sm:$0xff]   ;;  %v6548_v34 = vld [vmem:[#allocation7 + $0xe4] ss:$16 sps:$4 sm:$0xff]   ;;  %p6050_p13 = scmp.lt.s32.totalorder %s8271_s29, %s6048_s8 }
  0x96   : > { %v6550_v35 = vld [vmem:[#allocation7 + $0xec] ss:$16 sps:$4 sm:$0xff]   ;;  %s6049_s21 = scalar_lea.vmem %s6048_s8, 8192 }
  0x97   : > { %551 = vmatpush1.bf16.msra.mxu0 %v6442_v28  ;;  %594 = vmatpush1.bf16.msra.mxu1 %v6446_v29  ;;  %8600 = vst [vmem:[#allocation39_spill] sm:$0xff] %v6550_v35  ;;  %p6051_p0 = scmp.lt.s32.totalorder %s6049_s21, %s6043_s18 }
  0x98   : > { %552 = vmatprep.subr.bf16.mxu0 %v6448_v30  ;;  %595 = vmatprep.subr.bf16.mxu1 %v6452_v31 }
  0x99   : > { %p6052_p5 = por %p6051_p0, %p6050_p13 }
  0x9b   : > { %553 = vmatpush1.bf16.msra.mxu0 %v6454_v32  ;;  %596 = vmatpush1.bf16.msra.mxu1 %v6456_v33  ;;  %p6053_p9 = pnand %p6052_p5, %p6046_p6 }
  0x9c   : > { %790 = vmatprep.subr.bf16.mxu0 %v6462_v36  ;;  %833 = vmatprep.subr.bf16.mxu1 %v6464_v37 }
  0x9e   : > { %571 = vmatmul.mubr.bf16.vlgmr.msra.gmra.mrb[0].mxu0 %v377_v38  ;;  %614 = vmatmul.mubr.bf16.vlgmr.msra.gmra.mrb[0].mxu1 %v377_v38  ;;  %v6554_v38 = vld [vmem:[#allocation7 + $0xe0] ss:$16 sps:$4 sm:$0xff]  }
  0x9f   : > { %791 = vmatpush1.bf16.msra.mxu0 %v6466_v39  ;;  %834 = vmatpush1.bf16.msra.mxu1 %v6470_v40 }
  0xa0   : > { %792 = vmatprep.subr.bf16.mxu0 %v6472_v41  ;;  %835 = vmatprep.subr.bf16.mxu1 %v6476_v42 }
  0xa1   : > { %822 = vmatprep.mubr.bf16.mxu0 %v8329_v3  ;;  %865 = vmatprep.mubr.bf16.mxu1 %v8329_v3  ;;  %v6556_v3 = vld [vmem:[#allocation7 + $0xe8] ss:$16 sps:$4 sm:$0xff]  }
  0xa3   : > { %793 = vmatpush1.bf16.msra.mxu0 %v6478_v43  ;;  %836 = vmatpush1.bf16.msra.mxu1 %v6482_v44 }
  0xa4   : > { %794 = vmatprep.subr.bf16.mxu0 %v6486_v45  ;;  %837 = vmatprep.subr.bf16.mxu1 %v6488_v46 }
  0xa7   : > { %795 = vmatpush1.bf16.msra.mxu0 %v6492_v47  ;;  %838 = vmatpush1.bf16.msra.mxu1 %v6496_v48 }
  0xa8   : > { %796 = vmatprep.subr.bf16.mxu0 %v6498_v49  ;;  %839 = vmatprep.subr.bf16.mxu1 %v6502_v50 }
  0xab   : > { %797 = vmatpush1.bf16.msra.mxu0 %v6506_v51  ;;  %840 = vmatpush1.bf16.msra.mxu1 %v6508_v52 }
  0xac   : > { %798 = vmatprep.subr.bf16.mxu0 %v6510_v53  ;;  %841 = vmatprep.subr.bf16.mxu1 %v6514_v54 }
  0xaf   : > { %799 = vmatpush1.bf16.msra.mxu0 %v6516_v55  ;;  %842 = vmatpush1.bf16.msra.mxu1 %v6518_v56 }
  0xb0   : > { %800 = vmatprep.subr.bf16.mxu0 %v6520_v57  ;;  %843 = vmatprep.subr.bf16.mxu1 %v6522_v58 }
  0xb3   : > { %801 = vmatpush1.bf16.msra.mxu0 %v6528_v59  ;;  %844 = vmatpush1.bf16.msra.mxu1 %v6530_v60  ;;  %v5237_v60 = vld [vmem:[%s6352_s9] sm:$0xff]  }
  0xb4   : > { %802 = vmatprep.subr.bf16.mxu0 %v6532_v61  ;;  %845 = vmatprep.subr.bf16.mxu1 %v6534_v62 }
  0xb7   : > { %803 = vmatpush1.bf16.msra.mxu0 %v6542_v63  ;;  %846 = vmatpush1.bf16.msra.mxu1 %v6544_v0 }
  0xb8   : > { %804 = vmatprep.subr.bf16.mxu0 %v6548_v34  ;;  %847 = vmatprep.subr.bf16.mxu1 %v6550_v35  ;;  %v8601_v35 = vmov 0  }
  0xbb   : > { %805 = vmatpush1.bf16.msra.mxu0 %v6554_v38  ;;  %848 = vmatpush1.bf16.msra.mxu1 %v6556_v3 }
  0xbc   : > { %937 = vmatprep.subr.bf16.mxu0 %v6366_v1  ;;  %980 = vmatprep.subr.bf16.mxu1 %v6368_v2 }
  0xbe   : > { %823 = vmatmul.mubr.bf16.vlgmr.msra.gmra.mrb[0].mxu0 %v5237_v60  ;;  %866 = vmatmul.mubr.bf16.vlgmr.msra.gmra.mrb[0].mxu1 %v5237_v60  ;;  %v369_v60 = vld [vmem:[#allocation2 + $0x10] sm:$0xff] }
  0xbf   : > { %938 = vmatpush1.bf16.msra.mxu0 %v6373_v4  ;;  %981 = vmatpush1.bf16.msra.mxu1 %v6375_v5 }
  0xc0   : > { %939 = vmatprep.subr.bf16.mxu0 %v6378_v6  ;;  %982 = vmatprep.subr.bf16.mxu1 %v6382_v7 }
  0xc1   : > { %969 = vmatprep.mubr.bf16.mxu0 %v8601_v35  ;;  %1012 = vmatprep.mubr.bf16.mxu1 %v8601_v35 }
  0xc3   : > { %940 = vmatpush1.bf16.msra.mxu0 %v6384_v8  ;;  %983 = vmatpush1.bf16.msra.mxu1 %v6387_v9 }
  0xc4   : > { %941 = vmatprep.subr.bf16.mxu0 %v6390_v10  ;;  %984 = vmatprep.subr.bf16.mxu1 %v6392_v11 }
  0xc7   : > { %942 = vmatpush1.bf16.msra.mxu0 %v6394_v12  ;;  %985 = vmatpush1.bf16.msra.mxu1 %v6396_v13 }
  0xc8   : > { %943 = vmatprep.subr.bf16.mxu0 %v6400_v14  ;;  %986 = vmatprep.subr.bf16.mxu1 %v6404_v15 }
  0xcb   : > { %944 = vmatpush1.bf16.msra.mxu0 %v6406_v16  ;;  %987 = vmatpush1.bf16.msra.mxu1 %v6410_v17 }
  0xcc   : > { %945 = vmatprep.subr.bf16.mxu0 %v6412_v18  ;;  %988 = vmatprep.subr.bf16.mxu1 %v6416_v19 }
  0xcf   : > { %946 = vmatpush1.bf16.msra.mxu0 %v6418_v20  ;;  %989 = vmatpush1.bf16.msra.mxu1 %v6420_v21  ;;  %v370_v20 = vld [vmem:[#allocation2 + $0x18] sm:$0xff] }
  0xd0   : > { %947 = vmatprep.subr.bf16.mxu0 %v6424_v22  ;;  %990 = vmatprep.subr.bf16.mxu1 %v6428_v23  ;;  %v936_v22 = vpack.c.bf16 %v370_v20, %v369_v60  ;;  %v8602_v20 = vld [vmem:[#allocation38_spill] sm:$0xff]  ;;  %v5238_v60 = vld [vmem:[%s6352_s9 + $0x8] sm:$0xff]  }
  0xd3   : > { %948 = vmatpush1.bf16.msra.mxu0 %v6430_v24  ;;  %991 = vmatpush1.bf16.msra.mxu1 %v6434_v25 }
  0xd4   : > { %949 = vmatprep.subr.bf16.mxu0 %v6436_v26  ;;  %992 = vmatprep.subr.bf16.mxu1 %v6440_v27 }
  0xd7   : > { %950 = vmatpush1.bf16.msra.mxu0 %v6442_v28  ;;  %993 = vmatpush1.bf16.msra.mxu1 %v6446_v29 }
  0xd8   : > { %951 = vmatprep.subr.bf16.mxu0 %v6448_v30  ;;  %994 = vmatprep.subr.bf16.mxu1 %v6452_v31 }
  0xdb   : > { %952 = vmatpush1.bf16.msra.mxu0 %v6454_v32  ;;  %995 = vmatpush1.bf16.msra.mxu1 %v6456_v33 }
  0xdc   : > { %1029 = vmatprep.subr.bf16.mxu0 %v6462_v36  ;;  %1072 = vmatprep.subr.bf16.mxu1 %v6464_v37 }
  0xde   : > { %970 = vmatmul.mubr.bf16.vlgmr.msra.gmra.mrb[4].mxu0 %v936_v22  ;;  %1013 = vmatmul.mubr.bf16.vlgmr.msra.gmra.mrb[4].mxu1 %v936_v22  ;;  %v8603_v22 = vld [vmem:[#allocation39_spill] sm:$0xff] }
  0xdf   : > { %1030 = vmatpush1.bf16.msra.mxu0 %v6466_v39  ;;  %1073 = vmatpush1.bf16.msra.mxu1 %v6470_v40 }
  0xe0   : > { %1031 = vmatprep.subr.bf16.mxu0 %v6472_v41  ;;  %1074 = vmatprep.subr.bf16.mxu1 %v6476_v42 }
  0xe1   : > { %1061 = vmatprep.mubr.bf16.mxu0 %v8601_v35  ;;  %1104 = vmatprep.mubr.bf16.mxu1 %v8601_v35 }
  0xe3   : > { %1032 = vmatpush1.bf16.msra.mxu0 %v6478_v43  ;;  %1075 = vmatpush1.bf16.msra.mxu1 %v6482_v44 }
  0xe4   : > { %1033 = vmatprep.subr.bf16.mxu0 %v6486_v45  ;;  %1076 = vmatprep.subr.bf16.mxu1 %v6488_v46 }
  0xe7   : > { %1034 = vmatpush1.bf16.msra.mxu0 %v6492_v47  ;;  %1077 = vmatpush1.bf16.msra.mxu1 %v6496_v48 }
  0xe8   : > { %1035 = vmatprep.subr.bf16.mxu0 %v6498_v49  ;;  %1078 = vmatprep.subr.bf16.mxu1 %v6502_v50 }
  0xeb   : > { %1036 = vmatpush1.bf16.msra.mxu0 %v6506_v51  ;;  %1079 = vmatpush1.bf16.msra.mxu1 %v6508_v52 }
  0xec   : > { %1037 = vmatprep.subr.bf16.mxu0 %v6510_v53  ;;  %1080 = vmatprep.subr.bf16.mxu1 %v6514_v54 }
  0xef   : > { %1038 = vmatpush1.bf16.msra.mxu0 %v6516_v55  ;;  %1081 = vmatpush1.bf16.msra.mxu1 %v6518_v56 }
  0xf0   : > { %1039 = vmatprep.subr.bf16.mxu0 %v6520_v57  ;;  %1082 = vmatprep.subr.bf16.mxu1 %v6522_v58 }
  0xf3   : > { %1040 = vmatpush1.bf16.msra.mxu0 %v6528_v59  ;;  %1083 = vmatpush1.bf16.msra.mxu1 %v8602_v20 }
  0xf4   : > { %1041 = vmatprep.subr.bf16.mxu0 %v6532_v61  ;;  %1084 = vmatprep.subr.bf16.mxu1 %v6534_v62 }
  0xf7   : > { %1042 = vmatpush1.bf16.msra.mxu0 %v6542_v63  ;;  %1085 = vmatpush1.bf16.msra.mxu1 %v6544_v0 }
  0xf8   : > { %1043 = vmatprep.subr.bf16.mxu0 %v6548_v34  ;;  %1086 = vmatprep.subr.bf16.mxu1 %v8603_v22 }
  0xfb   : > { %1044 = vmatpush1.bf16.msra.mxu0 %v6554_v38  ;;  %1087 = vmatpush1.bf16.msra.mxu1 %v6556_v3 }
  0xfc   : > { %1177 = vmatprep.subr.bf16.mxu0 %v6366_v1  ;;  %1220 = vmatprep.subr.bf16.mxu1 %v6368_v2 }
  0xfe   : > { %1062 = vmatmul.mubr.bf16.vlgmr.msra.gmra.mrb[4].mxu0 %v5238_v60  ;;  %1105 = vmatmul.mubr.bf16.vlgmr.msra.gmra.mrb[4].mxu1 %v5238_v60  ;;  %v8604_v60 = vld [vmem:[#allocation22_spill] sm:$0xff] }
  0xff   : > { %1178 = vmatpush1.bf16.msra.mxu0 %v6373_v4  ;;  %1221 = vmatpush1.bf16.msra.mxu1 %v6375_v5 }
 0x100   : > { %1179 = vmatprep.subr.bf16.mxu0 %v6378_v6  ;;  %1222 = vmatprep.subr.bf16.mxu1 %v6382_v7 }
 0x101   : > { %1209 = vmatprep.mubr.bf16.mxu0 %v8601_v35  ;;  %1252 = vmatprep.mubr.bf16.mxu1 %v8601_v35 }
 0x103   : > { %1180 = vmatpush1.bf16.msra.mxu0 %v6384_v8  ;;  %1223 = vmatpush1.bf16.msra.mxu1 %v6387_v9 }
 0x104   : > { %1181 = vmatprep.subr.bf16.mxu0 %v6390_v10  ;;  %1224 = vmatprep.subr.bf16.mxu1 %v6392_v11  ;;  %v8605_v11 = vld [vmem:[#allocation24_spill] sm:$0xff] }
 0x107   : > { %1182 = vmatpush1.bf16.msra.mxu0 %v6394_v12  ;;  %1225 = vmatpush1.bf16.msra.mxu1 %v6396_v13 }
 0x108   : > { %1183 = vmatprep.subr.bf16.mxu0 %v6400_v14  ;;  %1226 = vmatprep.subr.bf16.mxu1 %v6404_v15 }
 0x10b   : > { %1184 = vmatpush1.bf16.msra.mxu0 %v6406_v16  ;;  %1227 = vmatpush1.bf16.msra.mxu1 %v6410_v17 }
 0x10c   : > { %1185 = vmatprep.subr.bf16.mxu0 %v6412_v18  ;;  %1228 = vmatprep.subr.bf16.mxu1 %v6416_v19 }
 0x10f   : > { %1186 = vmatpush1.bf16.msra.mxu0 %v8604_v60  ;;  %1229 = vmatpush1.bf16.msra.mxu1 %v6420_v21 }
 0x110   : > { %1187 = vmatprep.subr.bf16.mxu0 %v8605_v11  ;;  %1230 = vmatprep.subr.bf16.mxu1 %v6428_v23 }
 0x113   : > { %1188 = vmatpush1.bf16.msra.mxu0 %v6430_v24  ;;  %1231 = vmatpush1.bf16.msra.mxu1 %v6434_v25  ;;  %v347_v25 = vlaneseq }
 0x114   : > { %1189 = vmatprep.subr.bf16.mxu0 %v6436_v26  ;;  %1232 = vmatprep.subr.bf16.mxu1 %v6440_v27 }
 0x115   : > { %v348_v26 = vshrl.u32 %v347_v25, 7 }
 0x117   : > { %1190 = vmatpush1.bf16.msra.mxu0 %v6442_v28  ;;  %1233 = vmatpush1.bf16.msra.mxu1 %v6446_v29  ;;  %v349_v24 = vsub.s32 0, %v348_v26  ;;  %v345_v28 = vld [vmem:[%s8323_s3] sm:$0xf]  ;;  %v353_v29 = vsub.s32 1, %v348_v26  ;;  %v361_v23 = vsub.s32 3, %v348_v26  ;;  %v357_v19 = vsub.s32 2, %v348_v26 }
 0x118   : > { %1191 = vmatprep.subr.bf16.mxu0 %v6448_v30  ;;  %1234 = vmatprep.subr.bf16.mxu1 %v6452_v31 }
 0x119   : > { %v6671_v27 = vrot.slane %v345_v28, %v349_v24  ;;  %v6673_v30 = vrot.slane %v345_v28, %v353_v29  ;;  %v6678_v29 = vrot.slane %v345_v28, %v361_v23  ;;  %v6681_v13 = vrot.slane %v345_v28, %v357_v19 }
 0x11b   : > { %1192 = vmatpush1.bf16.msra.mxu0 %v6454_v32  ;;  %1235 = vmatpush1.bf16.msra.mxu1 %v6456_v33  ;;  %8606 = vst [vmem:[#allocation38_spill] sm:$0xff] %v6671_v27  ;;  %8607 = vst [vmem:[#allocation39_spill] sm:$0xff] %v6673_v30 }
 0x11c   : > { %1269 = vmatprep.subr.bf16.mxu0 %v6462_v36  ;;  %1312 = vmatprep.subr.bf16.mxu1 %v6464_v37  ;;  %8608 = vst [vmem:[#allocation40_spill] sm:$0xff] %v6678_v29  ;;  %8609 = vst [vmem:[#allocation41_spill] sm:$0xff] %v6681_v13 }
 0x191   : > { %v824_v31 = vpop.f32.mrb[0].mxu0  ;;  %v867_v32 = vpop.f32.mrb[0].mxu1 }
 0x192   : > { %v876_v33 = vadd.f32 %v824_v31, %v6671_v27  ;;  %v826_v36 = vpop.f32.mrb[1].mxu0  ;;  %v869_v11 = vpop.f32.mrb[1].mxu1  ;;  %v878_v26 = vadd.f32 %v867_v32, %v6681_v13 }
 0x193   : > { %v877_v37 = vadd.f32 %v826_v36, %v6673_v30  ;;  %v828_v25 = vpop.f32.mrb[2].mxu0  ;;  %v871_v21 = vpop.f32.mrb[2].mxu1  ;;  %v879_v36 = vadd.f32 %v869_v11, %v6678_v29 }
 0x194   : > { %v4745_v60 = vmul.f32 -1.442695, %v876_v33  ;;  %v880_v18 = vadd.f32 %v828_v25, %v6671_v27  ;;  %v830_v17 = vpop.f32.mrb[3].mxu0  ;;  %v873_v24 = vpop.f32.mrb[3].mxu1  ;;  %v882_v23 = vadd.f32 %v871_v21, %v6681_v13 }
 0x195   : > { %v4747_v16 = vmul.f32 -1.442695, %v877_v37  ;;  %v881_v15 = vadd.f32 %v830_v17, %v6673_v30  ;;  %v4749_v33 = vmul.f32 -1.442695, %v879_v36  ;;  %v883_v25 = vadd.f32 %v873_v24, %v6678_v29  ;;  %v371_v24 = vld [vmem:[#allocation3] sm:$0xff] }
 0x196   : > { %5253 = vpow2.f32 %v4745_v60  ;;  %v4746_v14 = vmul.f32 -1.442695, %v880_v18 }
 0x197   : > { %5255 = vpow2.f32 %v4747_v16  ;;  %v4748_v31 = vmul.f32 -1.442695, %v881_v15  ;;  %v4750_v16 = vmul.f32 -1.442695, %v883_v25 }
 0x198   : > { %5257 = vpow2.f32 %v4746_v14 }
 0x199   : > { %5259 = vpow2.f32 %v4748_v31 }
 0x19a   : > { %5261 = vtanh.f32 %v878_v26 }
 0x19b   : > { %5263 = vpow2.f32 %v4749_v33 }
 0x19c   : > { %5265 = vtanh.f32 %v882_v23 }
 0x1a0   : > { %v5254_v37 = vpop.eup %5253 }
 0x1a1   : > { %v5256_v17 = vpop.eup %5255  ;;  %v890_v60 = vadd.f32 1.0, %v5254_v37 }
 0x1a2   : > { %v902_v15 = vadd.f32 1.0, %v5256_v17  ;;  %v5258_v18 = vpop.eup %5257  ;;  %v372_v17 = vld [vmem:[#allocation3 + $0x8] sm:$0xff] }
 0x1a3   : > { %5267 = vrcp.f32 %v890_v60  ;;  %v891_v11 = vadd.f32 1.0, %v5258_v18  ;;  %v5260_v14 = vpop.eup %5259 }
 0x1a4   : > { %5269 = vrcp.f32 %v902_v15  ;;  %v903_v19 = vadd.f32 1.0, %v5260_v14  ;;  %v5262_v28 = vpop.eup %5261 }
 0x1a5   : > { %5271 = vpow2.f32 %v4750_v16  ;;  %v5264_v32 = vpop.eup %5263 }
 0x1a6   : > { %5273 = vrcp.f32 %v891_v11  ;;  %v5266_v21 = vpop.eup %5265  ;;  %v916_v33 = vadd.f32 1.0, %v5264_v32 }
 0x1a7   : > { %5275 = vrcp.f32 %v903_v19 }
 0x1a8   : > { %5277 = vrcp.f32 %v916_v33 }
 0x1ad   : > { %v5268_v31 = vpop.eup %5267 }
 0x1ae   : > { %v5270_v36 = vpop.eup %5269  ;;  %v924_v26 = vmul.f32 %v5268_v31, %v5262_v28 }
 0x1af   : > { %v5272_v25 = vpop.eup %5271  ;;  %v922_v37 = vmul.f32 %v5270_v36, %v371_v24 }
 0x1b0   : > { %v5274_v23 = vpop.eup %5273  ;;  %v917_v18 = vadd.f32 1.0, %v5272_v25 }
 0x1b1   : > { %v6687_v60 = vadd.f32 %v924_v26, %v922_v37  ;;  %v925_v15 = vmul.f32 %v5274_v23, %v5266_v21  ;;  %v5276_v16 = vpop.eup %5275 }
 0x1b2   : > { %v923_v11 = vmul.f32 %v5276_v16, %v372_v17  ;;  %v5278_v19 = vpop.eup %5277 }
 0x1b3   : > { %5279 = vtanh.f32 %v6687_v60 }
 0x1b4   : > { %v6690_v14 = vadd.f32 %v925_v15, %v923_v11  ;;  %5281 = vrcp.f32 %v917_v18 }
 0x1b6   : > { %5283 = vtanh.f32 %v6690_v14 }
 0x1bd   : > { %v5280_v28 = vpop.eup %5279 }
 0x1be   : > { %v930_v32 = vmul.f32 %v5280_v28, %v5278_v19  ;;  %v5282_v24 = vpop.eup %5281 }
 0x1c0   : > { %932 = vst [vmem:[%s6363_s12] sm:$0xff] %v930_v32  ;;  %v5284_v31 = vpop.eup %5283 }
 0x1c1   : > { %v931_v36 = vmul.f32 %v5284_v31, %v5282_v24 }
 0x1c3   : > { %933 = vst [vmem:[%s6363_s12 + $0x8] sm:$0xff] %v931_v36  ;;  %v1176_v21 = vpack.c.bf16 %v931_v36, %v930_v32 }
 0x1c5   : > { %1210 = vmatmul.mubr.bf16.vlgmr.msra.gmra.mrb[8].mxu0 %v1176_v21  ;;  %1253 = vmatmul.mubr.bf16.vlgmr.msra.gmra.mrb[8].mxu1 %v1176_v21 }
 0x1c6   : > { %1270 = vmatpush1.bf16.msra.mxu0 %v6466_v39  ;;  %1313 = vmatpush1.bf16.msra.mxu1 %v6470_v40 }
 0x1c7   : > { %1271 = vmatprep.subr.bf16.mxu0 %v6472_v41  ;;  %1314 = vmatprep.subr.bf16.mxu1 %v6476_v42 }
 0x1c8   : > { %1301 = vmatprep.mubr.bf16.mxu0 %v8601_v35  ;;  %1344 = vmatprep.mubr.bf16.mxu1 %v8601_v35 }
 0x1ca   : > { %1272 = vmatpush1.bf16.msra.mxu0 %v6478_v43  ;;  %1315 = vmatpush1.bf16.msra.mxu1 %v6482_v44 }
 0x1cb   : > { %1273 = vmatprep.subr.bf16.mxu0 %v6486_v45  ;;  %1316 = vmatprep.subr.bf16.mxu1 %v6488_v46 }
 0x1ce   : > { %1274 = vmatpush1.bf16.msra.mxu0 %v6492_v47  ;;  %1317 = vmatpush1.bf16.msra.mxu1 %v6496_v48 }
 0x1cf   : > { %1275 = vmatprep.subr.bf16.mxu0 %v6498_v49  ;;  %1318 = vmatprep.subr.bf16.mxu1 %v6502_v50 }
 0x1d1   : > { %v1063_v26 = vpop.f32.mrb[4].mxu0  ;;  %v1106_v33 = vpop.f32.mrb[4].mxu1 }
 0x1d2   : > { %v1115_v25 = vadd.f32 %v1063_v26, %v6671_v27  ;;  %v1065_v37 = vpop.f32.mrb[5].mxu0  ;;  %v1108_v23 = vpop.f32.mrb[5].mxu1  ;;  %1276 = vmatpush1.bf16.msra.mxu0 %v6506_v51  ;;  %1319 = vmatpush1.bf16.msra.mxu1 %v6508_v52  ;;  %v1117_v26 = vadd.f32 %v1106_v33, %v6681_v13 }
 0x1d3   : > { %v1116_v17 = vadd.f32 %v1065_v37, %v6673_v30  ;;  %v1067_v15 = vpop.f32.mrb[6].mxu0  ;;  %v1110_v16 = vpop.f32.mrb[6].mxu1  ;;  %1277 = vmatprep.subr.bf16.mxu0 %v6510_v53  ;;  %1320 = vmatprep.subr.bf16.mxu1 %v6514_v54  ;;  %v1118_v21 = vadd.f32 %v1108_v23, %v6678_v29 }
 0x1d4   : > { %v4752_v18 = vmul.f32 -1.442695, %v1115_v25  ;;  %v1119_v11 = vadd.f32 %v1067_v15, %v6671_v27  ;;  %v1069_v19 = vpop.f32.mrb[7].mxu0  ;;  %v1112_v28 = vpop.f32.mrb[7].mxu1 }
 0x1d5   : > { %v4754_v32 = vmul.f32 -1.442695, %v1116_v17  ;;  %v1120_v24 = vadd.f32 %v1069_v19, %v6673_v30  ;;  %v4756_v25 = vmul.f32 -1.442695, %v1118_v21  ;;  %v1122_v37 = vadd.f32 %v1112_v28, %v6678_v29  ;;  %v5239_v19 = vld [vmem:[%s6352_s9 + $0x10] sm:$0xff]  }
 0x1d6   : > { %5285 = vpow2.f32 %v4752_v18  ;;  %v4753_v31 = vmul.f32 -1.442695, %v1119_v11  ;;  %1278 = vmatpush1.bf16.msra.mxu0 %v6516_v55  ;;  %1321 = vmatpush1.bf16.msra.mxu1 %v6518_v56  ;;  %v1121_v17 = vadd.f32 %v1110_v16, %v6681_v13 }
 0x1d7   : > { %5287 = vpow2.f32 %v4754_v32  ;;  %v4755_v36 = vmul.f32 -1.442695, %v1120_v24  ;;  %1279 = vmatprep.subr.bf16.mxu0 %v6520_v57  ;;  %1322 = vmatprep.subr.bf16.mxu1 %v6522_v58  ;;  %v4757_v18 = vmul.f32 -1.442695, %v1122_v37  ;;  %v8611_v37 = vld [vmem:[#allocation15_spill] sm:$0xff] }
 0x1d8   : > { %5289 = vpow2.f32 %v4753_v31 }
 0x1d9   : > { %5291 = vpow2.f32 %v4755_v36  ;;  %v373_v36 = vld [vmem:[#allocation3 + $0x10] sm:$0xff] }
 0x1da   : > { %1280 = vmatpush1.bf16.msra.mxu0 %v6528_v59  ;;  %1323 = vmatpush1.bf16.msra.mxu1 %v8602_v20  ;;  %5293 = vtanh.f32 %v1117_v26 }
 0x1db   : > { %1281 = vmatprep.subr.bf16.mxu0 %v6532_v61  ;;  %1324 = vmatprep.subr.bf16.mxu1 %v6534_v62  ;;  %5295 = vpow2.f32 %v4756_v25 }
 0x1dc   : > { %5297 = vtanh.f32 %v1121_v17 }
 0x1de   : > { %1282 = vmatpush1.bf16.msra.mxu0 %v6542_v63  ;;  %1325 = vmatpush1.bf16.msra.mxu1 %v6544_v0 }
 0x1df   : > { %1283 = vmatprep.subr.bf16.mxu0 %v6548_v34  ;;  %1326 = vmatprep.subr.bf16.mxu1 %v8603_v22 }
 0x1e0   : > { %v5286_v23 = vpop.eup %5285 }
 0x1e1   : > { %v5288_v33 = vpop.eup %5287  ;;  %v1129_v15 = vadd.f32 1.0, %v5286_v23  ;;  %v8612_v23 = vld [vmem:[#allocation16_spill] sm:$0xff] }
 0x1e2   : > { %v1141_v11 = vadd.f32 1.0, %v5288_v33  ;;  %v5290_v28 = vpop.eup %5289  ;;  %1284 = vmatpush1.bf16.msra.mxu0 %v6554_v38  ;;  %1327 = vmatpush1.bf16.msra.mxu1 %v6556_v3 }
 0x1e3   : > { %5299 = vrcp.f32 %v1129_v15  ;;  %v1130_v16 = vadd.f32 1.0, %v5290_v28  ;;  %1417 = vmatprep.subr.bf16.mxu0 %v6366_v1  ;;  %1460 = vmatprep.subr.bf16.mxu1 %v6368_v2  ;;  %v5292_v32 = vpop.eup %5291  ;;  %v8616_v28 = vld [vmem:[#allocation20_spill] sm:$0xff] }
 0x1e4   : > { %5301 = vrcp.f32 %v1141_v11  ;;  %v1142_v24 = vadd.f32 1.0, %v5292_v32  ;;  %v5294_v1 = vpop.eup %5293 }
 0x1e5   : > { %5303 = vpow2.f32 %v4757_v18  ;;  %1302 = vmatmul.mubr.bf16.vlgmr.msra.gmra.mrb[8].mxu0 %v5239_v19  ;;  %1345 = vmatmul.mubr.bf16.vlgmr.msra.gmra.mrb[8].mxu1 %v5239_v19  ;;  %v5296_v2 = vpop.eup %5295  ;;  %v8614_v19 = vld [vmem:[#allocation18_spill] sm:$0xff] }
 0x1e6   : > { %5305 = vrcp.f32 %v1130_v16  ;;  %1418 = vmatpush1.bf16.msra.mxu0 %v6373_v4  ;;  %1461 = vmatpush1.bf16.msra.mxu1 %v6375_v5  ;;  %v5298_v31 = vpop.eup %5297  ;;  %v8610_v4 = vld [vmem:[#allocation14_spill] sm:$0xff]  ;;  %v8617_v16 = vld [vmem:[#allocation21_spill] sm:$0xff] }
 0x1e7   : > { %5307 = vrcp.f32 %v1142_v24  ;;  %1419 = vmatprep.subr.bf16.mxu0 %v6378_v6  ;;  %1462 = vmatprep.subr.bf16.mxu1 %v6382_v7  ;;  %v1155_v7 = vadd.f32 1.0, %v5296_v2  ;;  %v8618_v24 = vld [vmem:[#allocation22_spill] sm:$0xff]  ;;  %v8620_v2 = vld [vmem:[#allocation24_spill] sm:$0xff] }
 0x1e8   : > { %1449 = vmatprep.mubr.bf16.mxu0 %v8601_v35  ;;  %1492 = vmatprep.mubr.bf16.mxu1 %v8601_v35 }
 0x1e9   : > { %5309 = vrcp.f32 %v1155_v7 }
 0x1ea   : > { %1420 = vmatpush1.bf16.msra.mxu0 %v6384_v8  ;;  %1463 = vmatpush1.bf16.msra.mxu1 %v6387_v9  ;;  %v374_v8 = vld [vmem:[#allocation3 + $0x18] sm:$0xff] }
 0x1eb   : > { %1421 = vmatprep.subr.bf16.mxu0 %v6390_v10  ;;  %1464 = vmatprep.subr.bf16.mxu1 %v8610_v4  ;;  %v8613_v9 = vld [vmem:[#allocation17_spill] sm:$0xff]  ;;  %v8623_v4 = vld [vmem:[#allocation27_spill] sm:$0xff] }
 0x1ed   : > { %v5300_v5 = vpop.eup %5299 }
 0x1ee   : > { %v5302_v6 = vpop.eup %5301  ;;  %v1163_v21 = vmul.f32 %v5300_v5, %v5294_v1  ;;  %1422 = vmatpush1.bf16.msra.mxu0 %v6394_v12  ;;  %1465 = vmatpush1.bf16.msra.mxu1 %v8611_v37  ;;  %v8615_v12 = vld [vmem:[#allocation19_spill] sm:$0xff] }
 0x1ef   : > { %v5304_v26 = vpop.eup %5303  ;;  %v1161_v25 = vmul.f32 %v5302_v6, %v373_v36  ;;  %1423 = vmatprep.subr.bf16.mxu0 %v8612_v23  ;;  %1466 = vmatprep.subr.bf16.mxu1 %v8613_v9  ;;  %v8619_v1 = vld [vmem:[#allocation23_spill] sm:$0xff]  ;;  %v8622_v36 = vld [vmem:[#allocation26_spill] sm:$0xff]  ;;  %v8624_v6 = vld [vmem:[#allocation28_spill] sm:$0xff] }
 0x1f0   : > { %v5306_v17 = vpop.eup %5305  ;;  %v1156_v18 = vadd.f32 1.0, %v5304_v26  ;;  %v8627_v37 = vld [vmem:[#allocation31_spill] sm:$0xff]  ;;  %v8629_v23 = vld [vmem:[#allocation33_spill] sm:$0xff] }
 0x1f1   : > { %v6752_v33 = vadd.f32 %v1163_v21, %v1161_v25  ;;  %v1164_v10 = vmul.f32 %v5306_v17, %v5298_v31  ;;  %v5308_v15 = vpop.eup %5307  ;;  %v8621_v31 = vld [vmem:[#allocation25_spill] sm:$0xff]  ;;  %v8626_v25 = vld [vmem:[#allocation30_spill] sm:$0xff] }
 0x1f2   : > { %v1162_v11 = vmul.f32 %v5308_v15, %v374_v8  ;;  %1424 = vmatpush1.bf16.msra.mxu0 %v8614_v19  ;;  %1467 = vmatpush1.bf16.msra.mxu1 %v8615_v12  ;;  %v8625_v21 = vld [vmem:[#allocation29_spill] sm:$0xff]  ;;  %v8628_v8 = vld [vmem:[#allocation32_spill] sm:$0xff]  ;;  %v8630_v15 = vld [vmem:[#allocation34_spill] sm:$0xff] }
 0x1f3   : > { %5311 = vtanh.f32 %v6752_v33  ;;  %1425 = vmatprep.subr.bf16.mxu0 %v8616_v28  ;;  %1468 = vmatprep.subr.bf16.mxu1 %v8617_v16  ;;  %v5310_v5 = vpop.eup %5309  ;;  %v8633_v19 = vld [vmem:[#allocation37_spill] sm:$0xff]  ;;  %v6905_v16 = vld [vmem:[#allocation9 + $0xe0] ss:$16 sps:$4 sm:$0xff]  }
 0x1f4   : > { %v6759_v32 = vadd.f32 %v1164_v10, %v1162_v11  ;;  %5313 = vrcp.f32 %v1156_v18  ;;  %v8631_v18 = vld [vmem:[#allocation35_spill] sm:$0xff]  ;;  %v8632_v11 = vld [vmem:[#allocation36_spill] sm:$0xff]  ;;  %8657 = vst [vmem:[#allocation37_spill] sm:$0xff] %v6905_v16 }
 0x1f5   : > { %v6902_v28 = vld [vmem:[#allocation9 + $0xec] ss:$16 sps:$4 sm:$0xff]  }
 0x1f6   : > { %5315 = vtanh.f32 %v6759_v32  ;;  %1426 = vmatpush1.bf16.msra.mxu0 %v8618_v24  ;;  %1469 = vmatpush1.bf16.msra.mxu1 %v8619_v1  ;;  %8656 = vst [vmem:[#allocation36_spill] sm:$0xff] %v6902_v28  ;;  %v6908_v24 = vld [vmem:[#allocation9 + $0xe8] ss:$16 sps:$4 sm:$0xff]   ;;  %v6911_v1 = vld [vmem:[#allocation7 + $0x4] ss:$16 sps:$4 sm:$0xff]  }
 0x1f7   : > { %1427 = vmatprep.subr.bf16.mxu0 %v8620_v2  ;;  %1470 = vmatprep.subr.bf16.mxu1 %v8621_v31  ;;  %8658 = vst [vmem:[#allocation42_spill] sm:$0xff] %v6908_v24  ;;  %8659 = vst [vmem:[#allocation43_spill] sm:$0xff] %v6911_v1  ;;  %v6914_v2 = vld [vmem:[#allocation7 + $0xc] ss:$16 sps:$4 sm:$0xff]  }
 0x1f8   : > { %8660 = vst [vmem:[#allocation44_spill] sm:$0xff] %v6914_v2 }
 0x1fa   : > { %1428 = vmatpush1.bf16.msra.mxu0 %v8622_v36  ;;  %1471 = vmatpush1.bf16.msra.mxu1 %v8623_v4 }
 0x1fb   : > { %1429 = vmatprep.subr.bf16.mxu0 %v8624_v6  ;;  %1472 = vmatprep.subr.bf16.mxu1 %v8625_v21 }
 0x1fd   : > { %v5312_v7 = vpop.eup %5311 }
 0x1fe   : > { %v1169_v26 = vmul.f32 %v5312_v7, %v5310_v5  ;;  %1430 = vmatpush1.bf16.msra.mxu0 %v8626_v25  ;;  %1473 = vmatpush1.bf16.msra.mxu1 %v8627_v37  ;;  %v5314_v17 = vpop.eup %5313 }
 0x1ff   : > { %1431 = vmatprep.subr.bf16.mxu0 %v8628_v8  ;;  %1474 = vmatprep.subr.bf16.mxu1 %v8629_v23 }
 0x200   : > { %1171 = vst [vmem:[%s6363_s12 + $0x10] sm:$0xff] %v1169_v26  ;;  %v5316_v9 = vpop.eup %5315 }
 0x201   : > { %v1170_v10 = vmul.f32 %v5316_v9, %v5314_v17 }
 0x202   : > { %1432 = vmatpush1.bf16.msra.mxu0 %v8630_v15  ;;  %1475 = vmatpush1.bf16.msra.mxu1 %v8631_v18 }
 0x203   : > { %1509 = vmatprep.subr.bf16.mxu0 %v8632_v11  ;;  %1552 = vmatprep.subr.bf16.mxu1 %v8633_v19  ;;  %1172 = vst [vmem:[%s6363_s12 + $0x18] sm:$0xff] %v1170_v10  ;;  %v1416_v12 = vpack.c.bf16 %v1170_v10, %v1169_v26 }
 0x205   : > { %1450 = vmatmul.mubr.bf16.vlgmr.msra.gmra.mrb[12].mxu0 %v1416_v12  ;;  %1493 = vmatmul.mubr.bf16.vlgmr.msra.gmra.mrb[12].mxu1 %v1416_v12 }
 0x206   : > { %1510 = vmatpush1.bf16.msra.mxu0 %v6466_v39  ;;  %1553 = vmatpush1.bf16.msra.mxu1 %v6470_v40  ;;  %v5240_v39 = vld [vmem:[%s6352_s9 + $0x18] sm:$0xff]   ;;  %v6813_v40 = vld [vmem:[#allocation9 + $0x4] ss:$16 sps:$4 sm:$0xff]  }
 0x207   : > { %1511 = vmatprep.subr.bf16.mxu0 %v6472_v41  ;;  %1554 = vmatprep.subr.bf16.mxu1 %v6476_v42  ;;  %8634 = vst [vmem:[#allocation14_spill] sm:$0xff] %v6813_v40  ;;  %v6816_v41 = vld [vmem:[#allocation9 + $0xc] ss:$16 sps:$4 sm:$0xff]   ;;  %v6819_v42 = vld [vmem:[#allocation9] ss:$16 sps:$4 sm:$0xff]  }
 0x208   : > { %1541 = vmatprep.mubr.bf16.mxu0 %v8601_v35  ;;  %1584 = vmatprep.mubr.bf16.mxu1 %v8601_v35  ;;  %8635 = vst [vmem:[#allocation15_spill] sm:$0xff] %v6816_v41 }
 0x20a   : > { %1512 = vmatpush1.bf16.msra.mxu0 %v6478_v43  ;;  %1555 = vmatpush1.bf16.msra.mxu1 %v6482_v44  ;;  %v6822_v43 = vld [vmem:[#allocation9 + $0x8] ss:$16 sps:$4 sm:$0xff]   ;;  %v6825_v44 = vld [vmem:[#allocation9 + $0x24] ss:$16 sps:$4 sm:$0xff]  }
 0x20b   : > { %1513 = vmatprep.subr.bf16.mxu0 %v6486_v45  ;;  %1556 = vmatprep.subr.bf16.mxu1 %v6488_v46  ;;  %v6833_v45 = vld [vmem:[#allocation9 + $0x20] ss:$16 sps:$4 sm:$0xff]   ;;  %v6836_v46 = vld [vmem:[#allocation9 + $0x28] ss:$16 sps:$4 sm:$0xff]  }
 0x20c   : > { %8636 = vst [vmem:[#allocation16_spill] sm:$0xff] %v6836_v46 }
 0x20e   : > { %1514 = vmatpush1.bf16.msra.mxu0 %v6492_v47  ;;  %1557 = vmatpush1.bf16.msra.mxu1 %v6496_v48  ;;  %v6839_v47 = vld [vmem:[#allocation9 + $0x44] ss:$16 sps:$4 sm:$0xff]   ;;  %v6842_v48 = vld [vmem:[#allocation9 + $0x4c] ss:$16 sps:$4 sm:$0xff]  }
 0x20f   : > { %1515 = vmatprep.subr.bf16.mxu0 %v6498_v49  ;;  %1558 = vmatprep.subr.bf16.mxu1 %v6502_v50  ;;  %8637 = vst [vmem:[#allocation17_spill] sm:$0xff] %v6839_v47  ;;  %8638 = vst [vmem:[#allocation18_spill] sm:$0xff] %v6842_v48  ;;  %v6845_v49 = vld [vmem:[#allocation9 + $0x40] ss:$16 sps:$4 sm:$0xff]   ;;  %v6848_v50 = vld [vmem:[#allocation9 + $0x48] ss:$16 sps:$4 sm:$0xff]  }
 0x212   : > { %1516 = vmatpush1.bf16.msra.mxu0 %v6506_v51  ;;  %1559 = vmatpush1.bf16.msra.mxu1 %v6508_v52  ;;  %v6851_v51 = vld [vmem:[#allocation9 + $0x64] ss:$16 sps:$4 sm:$0xff]   ;;  %v6854_v52 = vld [vmem:[#allocation9 + $0x6c] ss:$16 sps:$4 sm:$0xff]  }
 0x213   : > { %1517 = vmatprep.subr.bf16.mxu0 %v6510_v53  ;;  %1560 = vmatprep.subr.bf16.mxu1 %v6514_v54  ;;  %8639 = vst [vmem:[#allocation19_spill] sm:$0xff] %v6851_v51  ;;  %8640 = vst [vmem:[#allocation20_spill] sm:$0xff] %v6854_v52  ;;  %v6857_v53 = vld [vmem:[#allocation9 + $0x60] ss:$16 sps:$4 sm:$0xff]   ;;  %v6860_v54 = vld [vmem:[#allocation9 + $0x68] ss:$16 sps:$4 sm:$0xff]  }
 0x214   : > { %8641 = vst [vmem:[#allocation21_spill] sm:$0xff] %v6857_v53  ;;  %8642 = vst [vmem:[#allocation22_spill] sm:$0xff] %v6860_v54 }
 0x216   : > { %1518 = vmatpush1.bf16.msra.mxu0 %v6516_v55  ;;  %1561 = vmatpush1.bf16.msra.mxu1 %v6518_v56  ;;  %v6863_v55 = vld [vmem:[#allocation9 + $0x84] ss:$16 sps:$4 sm:$0xff]   ;;  %v6866_v56 = vld [vmem:[#allocation9 + $0x8c] ss:$16 sps:$4 sm:$0xff]  }
 0x217   : > { %1519 = vmatprep.subr.bf16.mxu0 %v6520_v57  ;;  %1562 = vmatprep.subr.bf16.mxu1 %v6522_v58  ;;  %8643 = vst [vmem:[#allocation23_spill] sm:$0xff] %v6863_v55  ;;  %8644 = vst [vmem:[#allocation24_spill] sm:$0xff] %v6866_v56  ;;  %v6869_v57 = vld [vmem:[#allocation9 + $0x80] ss:$16 sps:$4 sm:$0xff]   ;;  %v6872_v58 = vld [vmem:[#allocation9 + $0x88] ss:$16 sps:$4 sm:$0xff]  }
 0x218   : > { %8645 = vst [vmem:[#allocation25_spill] sm:$0xff] %v6869_v57  ;;  %8646 = vst [vmem:[#allocation26_spill] sm:$0xff] %v6872_v58 }
 0x21a   : > { %1520 = vmatpush1.bf16.msra.mxu0 %v6528_v59  ;;  %1563 = vmatpush1.bf16.msra.mxu1 %v8602_v20  ;;  %v6875_v59 = vld [vmem:[#allocation9 + $0xa4] ss:$16 sps:$4 sm:$0xff]   ;;  %v6896_v20 = vld [vmem:[#allocation9 + $0xc8] ss:$16 sps:$4 sm:$0xff]  }
 0x21b   : > { %1521 = vmatprep.subr.bf16.mxu0 %v6532_v61  ;;  %1564 = vmatprep.subr.bf16.mxu1 %v6534_v62  ;;  %8647 = vst [vmem:[#allocation27_spill] sm:$0xff] %v6875_v59  ;;  %v6878_v61 = vld [vmem:[#allocation9 + $0xac] ss:$16 sps:$4 sm:$0xff]   ;;  %v6881_v62 = vld [vmem:[#allocation9 + $0xa0] ss:$16 sps:$4 sm:$0xff]   ;;  %8654 = vst [vmem:[#allocation34_spill] sm:$0xff] %v6896_v20 }
 0x21c   : > { %8648 = vst [vmem:[#allocation28_spill] sm:$0xff] %v6878_v61  ;;  %8649 = vst [vmem:[#allocation29_spill] sm:$0xff] %v6881_v62 }
 0x21e   : > { %1522 = vmatpush1.bf16.msra.mxu0 %v6542_v63  ;;  %1565 = vmatpush1.bf16.msra.mxu1 %v6544_v0  ;;  %v6884_v63 = vld [vmem:[#allocation9 + $0xa8] ss:$16 sps:$4 sm:$0xff]   ;;  %v6887_v0 = vld [vmem:[#allocation9 + $0xc4] ss:$16 sps:$4 sm:$0xff]  }
 0x21f   : > { %1523 = vmatprep.subr.bf16.mxu0 %v6548_v34  ;;  %1566 = vmatprep.subr.bf16.mxu1 %v8603_v22  ;;  %8650 = vst [vmem:[#allocation30_spill] sm:$0xff] %v6884_v63  ;;  %8651 = vst [vmem:[#allocation31_spill] sm:$0xff] %v6887_v0  ;;  %v6890_v34 = vld [vmem:[#allocation9 + $0xcc] ss:$16 sps:$4 sm:$0xff]   ;;  %v6899_v22 = vld [vmem:[#allocation9 + $0xe4] ss:$16 sps:$4 sm:$0xff]  }
 0x220   : > { %8652 = vst [vmem:[#allocation32_spill] sm:$0xff] %v6890_v34  ;;  %8655 = vst [vmem:[#allocation35_spill] sm:$0xff] %v6899_v22 }
 0x222   : > { %1524 = vmatpush1.bf16.msra.mxu0 %v6554_v38  ;;  %1567 = vmatpush1.bf16.msra.mxu1 %v6556_v3  ;;  %v6828_v3 = vld [vmem:[#allocation9 + $0x2c] ss:$16 sps:$4 sm:$0xff]   ;;  %v6893_v38 = vld [vmem:[#allocation9 + $0xc0] ss:$16 sps:$4 sm:$0xff]  }
 0x223   : > { %1657 = vmatprep.subr.bf16.mxu0 %v6813_v40  ;;  %1700 = vmatprep.subr.bf16.mxu1 %v6816_v41  ;;  %8653 = vst [vmem:[#allocation33_spill] sm:$0xff] %v6893_v38 }
 0x225   : > { %1542 = vmatmul.mubr.bf16.vlgmr.msra.gmra.mrb[12].mxu0 %v5240_v39  ;;  %1585 = vmatmul.mubr.bf16.vlgmr.msra.gmra.mrb[12].mxu1 %v5240_v39 }
 0x226   : > { %1658 = vmatpush1.bf16.msra.mxu0 %v6819_v42  ;;  %1701 = vmatpush1.bf16.msra.mxu1 %v6822_v43 }
 0x227   : > { %1659 = vmatprep.subr.bf16.mxu0 %v6825_v44  ;;  %1702 = vmatprep.subr.bf16.mxu1 %v6828_v3 }
 0x228   : > { %1689 = vmatprep.mubr.bf16.mxu0 %v8601_v35  ;;  %1732 = vmatprep.mubr.bf16.mxu1 %v8601_v35 }
 0x22a   : > { %1660 = vmatpush1.bf16.msra.mxu0 %v6833_v45  ;;  %1703 = vmatpush1.bf16.msra.mxu1 %v6836_v46 }
 0x22b   : > { %1661 = vmatprep.subr.bf16.mxu0 %v6839_v47  ;;  %1704 = vmatprep.subr.bf16.mxu1 %v6842_v48 }
 0x22e   : > { %1662 = vmatpush1.bf16.msra.mxu0 %v6845_v49  ;;  %1705 = vmatpush1.bf16.msra.mxu1 %v6848_v50 }
 0x22f   : > { %1663 = vmatprep.subr.bf16.mxu0 %v6851_v51  ;;  %1706 = vmatprep.subr.bf16.mxu1 %v6854_v52 }
 0x232   : > { %1664 = vmatpush1.bf16.msra.mxu0 %v6857_v53  ;;  %1707 = vmatpush1.bf16.msra.mxu1 %v6860_v54 }
 0x233   : > { %1665 = vmatprep.subr.bf16.mxu0 %v6863_v55  ;;  %1708 = vmatprep.subr.bf16.mxu1 %v6866_v56 }
 0x236   : > { %1666 = vmatpush1.bf16.msra.mxu0 %v6869_v57  ;;  %1709 = vmatpush1.bf16.msra.mxu1 %v6872_v58 }
 0x237   : > { %1667 = vmatprep.subr.bf16.mxu0 %v6875_v59  ;;  %1710 = vmatprep.subr.bf16.mxu1 %v6878_v61 }
 0x23a   : > { %1668 = vmatpush1.bf16.msra.mxu0 %v6881_v62  ;;  %1711 = vmatpush1.bf16.msra.mxu1 %v6884_v63 }
 0x23b   : > { %1669 = vmatprep.subr.bf16.mxu0 %v6887_v0  ;;  %1712 = vmatprep.subr.bf16.mxu1 %v6890_v34 }
 0x23e   : > { %1670 = vmatpush1.bf16.msra.mxu0 %v6893_v38  ;;  %1713 = vmatpush1.bf16.msra.mxu1 %v6896_v20 }
 0x23f   : > { %1671 = vmatprep.subr.bf16.mxu0 %v6899_v22  ;;  %1714 = vmatprep.subr.bf16.mxu1 %v6902_v28 }
 0x242   : > { %1672 = vmatpush1.bf16.msra.mxu0 %v6905_v16  ;;  %1715 = vmatpush1.bf16.msra.mxu1 %v6908_v24 }
 0x243   : > { %1749 = vmatprep.subr.bf16.mxu0 %v6911_v1  ;;  %1792 = vmatprep.subr.bf16.mxu1 %v6914_v2 }
 0x2b8   : > { %v1303_v31 = vpop.f32.mrb[8].mxu0  ;;  %v1346_v36 = vpop.f32.mrb[8].mxu1 }
 0x2b9   : > { %v1355_v4 = vadd.f32 %v1303_v31, %v6671_v27  ;;  %v1305_v5 = vpop.f32.mrb[9].mxu0  ;;  %v1348_v6 = vpop.f32.mrb[9].mxu1  ;;  %v1357_v11 = vadd.f32 %v1346_v36, %v6681_v13 }
 0x2ba   : > { %v1356_v21 = vadd.f32 %v1305_v5, %v6673_v30  ;;  %v1307_v7 = vpop.f32.mrb[10].mxu0  ;;  %v1350_v26 = vpop.f32.mrb[10].mxu1  ;;  %v1358_v18 = vadd.f32 %v1348_v6, %v6678_v29 }
 0x2bb   : > { %v4761_v25 = vmul.f32 -1.442695, %v1355_v4  ;;  %v1359_v37 = vadd.f32 %v1307_v7, %v6671_v27  ;;  %v1309_v17 = vpop.f32.mrb[11].mxu0  ;;  %v1352_v8 = vpop.f32.mrb[11].mxu1  ;;  %v1361_v39 = vadd.f32 %v1350_v26, %v6681_v13 }
 0x2bc   : > { %v4763_v23 = vmul.f32 -1.442695, %v1356_v21  ;;  %v1360_v9 = vadd.f32 %v1309_v17, %v6673_v30  ;;  %v4765_v19 = vmul.f32 -1.442695, %v1358_v18  ;;  %v1362_v12 = vadd.f32 %v1352_v8, %v6678_v29 }
 0x2bd   : > { %5317 = vpow2.f32 %v4761_v25  ;;  %v4762_v10 = vmul.f32 -1.442695, %v1359_v37 }
 0x2be   : > { %5319 = vpow2.f32 %v4763_v23  ;;  %v4764_v15 = vmul.f32 -1.442695, %v1360_v9  ;;  %v4766_v21 = vmul.f32 -1.442695, %v1362_v12 }
 0x2bf   : > { %5321 = vpow2.f32 %v4762_v10 }
 0x2c0   : > { %5323 = vpow2.f32 %v4764_v15 }
 0x2c1   : > { %5325 = vtanh.f32 %v1357_v11 }
 0x2c2   : > { %5327 = vpow2.f32 %v4765_v19 }
 0x2c3   : > { %5329 = vtanh.f32 %v1361_v39 }
 0x2c7   : > { %v5318_v31 = vpop.eup %5317 }
 0x2c8   : > { %v5320_v4 = vpop.eup %5319  ;;  %v1369_v5 = vadd.f32 1.0, %v5318_v31 }
 0x2c9   : > { %v1381_v7 = vadd.f32 1.0, %v5320_v4  ;;  %v5322_v25 = vpop.eup %5321 }
 0x2ca   : > { %5331 = vrcp.f32 %v1369_v5  ;;  %v1370_v6 = vadd.f32 1.0, %v5322_v25  ;;  %v5324_v37 = vpop.eup %5323 }
 0x2cb   : > { %5333 = vrcp.f32 %v1381_v7  ;;  %v1382_v36 = vadd.f32 1.0, %v5324_v37  ;;  %v5326_v17 = vpop.eup %5325 }
 0x2cc   : > { %5335 = vpow2.f32 %v4766_v21  ;;  %v5328_v8 = vpop.eup %5327 }
 0x2cd   : > { %5337 = vrcp.f32 %v1370_v6  ;;  %v5330_v26 = vpop.eup %5329  ;;  %v1395_v15 = vadd.f32 1.0, %v5328_v8  ;;  %v6935_v8 = vld [vmem:[#allocation7] ss:$16 sps:$4 sm:$0xff]  }
 0x2ce   : > { %5339 = vrcp.f32 %v1382_v36 }
 0x2cf   : > { %5341 = vrcp.f32 %v1395_v15  ;;  %v6955_v15 = vld [vmem:[#allocation7 + $0x44] ss:$16 sps:$4 sm:$0xff]  }
 0x2d4   : > { %v5332_v23 = vpop.eup %5331 }
 0x2d5   : > { %v5334_v9 = vpop.eup %5333  ;;  %v1403_v10 = vmul.f32 %v5332_v23, %v5326_v17  ;;  %v6944_v23 = vld [vmem:[#allocation7 + $0x2c] ss:$16 sps:$4 sm:$0xff]  }
 0x2d6   : > { %v5336_v18 = vpop.eup %5335  ;;  %v1401_v11 = vmul.f32 %v5334_v9, %v6687_v60  ;;  %v6949_v9 = vld [vmem:[#allocation7 + $0x20] ss:$16 sps:$4 sm:$0xff]  }
 0x2d7   : > { %v5338_v19 = vpop.eup %5337  ;;  %v1396_v4 = vadd.f32 1.0, %v5336_v18  ;;  %v6958_v18 = vld [vmem:[#allocation7 + $0x4c] ss:$16 sps:$4 sm:$0xff]  }
 0x2d8   : > { %v6926_v12 = vadd.f32 %v1403_v10, %v1401_v11  ;;  %v1404_v39 = vmul.f32 %v5338_v19, %v5330_v26  ;;  %v5340_v31 = vpop.eup %5339  ;;  %v6941_v26 = vld [vmem:[#allocation7 + $0x24] ss:$16 sps:$4 sm:$0xff]   ;;  %v6952_v10 = vld [vmem:[#allocation7 + $0x28] ss:$16 sps:$4 sm:$0xff]   ;;  %8663 = vst [vmem:[#allocation47_spill] sm:$0xff] %v6958_v18 }
 0x2d9   : > { %v1402_v5 = vmul.f32 %v5340_v31, %v6690_v14  ;;  %v5342_v7 = vpop.eup %5341  ;;  %v6938_v14 = vld [vmem:[#allocation7 + $0x8] ss:$16 sps:$4 sm:$0xff]   ;;  %v6961_v11 = vld [vmem:[#allocation7 + $0x40] ss:$16 sps:$4 sm:$0xff]   ;;  %v6970_v31 = vld [vmem:[#allocation7 + $0x6c] ss:$16 sps:$4 sm:$0xff]  }
 0x2da   : > { %8661 = vst [vmem:[#allocation45_spill] sm:$0xff] %v6926_v12  ;;  %5343 = vtanh.f32 %v6926_v12  ;;  %8664 = vst [vmem:[#allocation48_spill] sm:$0xff] %v6961_v11  ;;  %v6964_v19 = vld [vmem:[#allocation7 + $0x48] ss:$16 sps:$4 sm:$0xff]  }
 0x2db   : > { %v6930_v21 = vadd.f32 %v1404_v39, %v1402_v5  ;;  %5345 = vrcp.f32 %v1396_v4  ;;  %8665 = vst [vmem:[#allocation49_spill] sm:$0xff] %v6964_v19  ;;  %v6967_v39 = vld [vmem:[#allocation7 + $0x64] ss:$16 sps:$4 sm:$0xff]   ;;  %8667 = vst [vmem:[#allocation51_spill] sm:$0xff] %v6970_v31 }
 0x2dc   : > { %8666 = vst [vmem:[#allocation50_spill] sm:$0xff] %v6967_v39 }
 0x2dd   : > { %8662 = vst [vmem:[#allocation46_spill] sm:$0xff] %v6930_v21  ;;  %5347 = vtanh.f32 %v6930_v21 }
 0x2e4   : > { %v5344_v60 = vpop.eup %5343 }
 0x2e5   : > { %v1409_v25 = vmul.f32 %v5344_v60, %v5342_v7  ;;  %v5346_v6 = vpop.eup %5345 }
 0x2e7   : > { %4767 = vst [vmem:[%s6363_s12 + $0x20] sm:$0xff] %v1409_v25  ;;  %v5348_v37 = vpop.eup %5347 }
 0x2e8   : > { %v1410_v36 = vmul.f32 %v5348_v37, %v5346_v6  ;;  %v6974_v6 = vld [vmem:[#allocation7 + $0x60] ss:$16 sps:$4 sm:$0xff]   ;;  %v6977_v37 = vld [vmem:[#allocation7 + $0x68] ss:$16 sps:$4 sm:$0xff]  }
 0x2e9   : > { %8668 = vst [vmem:[#allocation52_spill] sm:$0xff] %v6974_v6  ;;  %8669 = vst [vmem:[#allocation53_spill] sm:$0xff] %v6977_v37 }
 0x2ea   : > { %4768 = vst [vmem:[%s6363_s12 + $0x28] sm:$0xff] %v1410_v36  ;;  %v1656_v17 = vpack.c.bf16 %v1410_v36, %v1409_v25 }
 0x2ec   : > { %1690 = vmatmul.mubr.bf16.vlgmr.msra.gmra.mrb[16].mxu0 %v1656_v17  ;;  %1733 = vmatmul.mubr.bf16.vlgmr.msra.gmra.mrb[16].mxu1 %v1656_v17 }
 0x2ed   : > { %1750 = vmatpush1.bf16.msra.mxu0 %v6935_v8  ;;  %1793 = vmatpush1.bf16.msra.mxu1 %v6938_v14 }
 0x2ee   : > { %1751 = vmatprep.subr.bf16.mxu0 %v6941_v26  ;;  %1794 = vmatprep.subr.bf16.mxu1 %v6944_v23 }
 0x2ef   : > { %1781 = vmatprep.mubr.bf16.mxu0 %v8601_v35  ;;  %1824 = vmatprep.mubr.bf16.mxu1 %v8601_v35 }
 0x2f1   : > { %1752 = vmatpush1.bf16.msra.mxu0 %v6949_v9  ;;  %1795 = vmatpush1.bf16.msra.mxu1 %v6952_v10 }
 0x2f2   : > { %1753 = vmatprep.subr.bf16.mxu0 %v6955_v15  ;;  %1796 = vmatprep.subr.bf16.mxu1 %v6958_v18 }
 0x2f5   : > { %1754 = vmatpush1.bf16.msra.mxu0 %v6961_v11  ;;  %1797 = vmatpush1.bf16.msra.mxu1 %v6964_v19 }
 0x2f6   : > { %1755 = vmatprep.subr.bf16.mxu0 %v6967_v39  ;;  %1798 = vmatprep.subr.bf16.mxu1 %v6970_v31  ;;  %v6982_v39 = vld [vmem:[#allocation7 + $0x84] ss:$16 sps:$4 sm:$0xff]  }
 0x2f8   : > { %v1543_v4 = vpop.f32.mrb[12].mxu0  ;;  %v1586_v5 = vpop.f32.mrb[12].mxu1 }
 0x2f9   : > { %v1595_v7 = vadd.f32 %v1543_v4, %v6671_v27  ;;  %v1545_v60 = vpop.f32.mrb[13].mxu0  ;;  %v1588_v25 = vpop.f32.mrb[13].mxu1  ;;  %1756 = vmatpush1.bf16.msra.mxu0 %v6974_v6  ;;  %1799 = vmatpush1.bf16.msra.mxu1 %v6977_v37  ;;  %v6985_v4 = vld [vmem:[#allocation7 + $0x8c] ss:$16 sps:$4 sm:$0xff]  }
 0x2fa   : > { %v1596_v36 = vadd.f32 %v1545_v60, %v6673_v30  ;;  %v1547_v17 = vpop.f32.mrb[14].mxu0  ;;  %v1590_v21 = vpop.f32.mrb[14].mxu1  ;;  %1757 = vmatprep.subr.bf16.mxu0 %v6982_v39  ;;  %8670 = vst [vmem:[#allocation54_spill] sm:$0xff] %v6985_v4  ;;  %1800 = vmatprep.subr.bf16.mxu1 %v6985_v4  ;;  %v6998_v4 = vld [vmem:[#allocation7 + $0xac] ss:$16 sps:$4 sm:$0xff]  }
 0x2fb   : > { %v4772_v12 = vmul.f32 -1.442695, %v1595_v7  ;;  %v1599_v31 = vadd.f32 %v1547_v17, %v6671_v27  ;;  %v1549_v6 = vpop.f32.mrb[15].mxu0  ;;  %v1592_v19 = vpop.f32.mrb[15].mxu1  ;;  %v6989_v7 = vld [vmem:[#allocation7 + $0x80] ss:$16 sps:$4 sm:$0xff]  }
 0x2fc   : > { %v4774_v11 = vmul.f32 -1.442695, %v1596_v36  ;;  %v1600_v37 = vadd.f32 %v1549_v6, %v6673_v30  ;;  %v6992_v17 = vld [vmem:[#allocation7 + $0x88] ss:$16 sps:$4 sm:$0xff]   ;;  %v6995_v27 = vld [vmem:[#allocation7 + $0xa4] ss:$16 sps:$4 sm:$0xff]   ;;  %v1597_v6 = vadd.f32 %v1586_v5, %v6681_v13 }
 0x2fd   : > { %5349 = vpow2.f32 %v4772_v12  ;;  %v4773_v60 = vmul.f32 -1.442695, %v1599_v31  ;;  %1758 = vmatpush1.bf16.msra.mxu0 %v6989_v7  ;;  %1801 = vmatpush1.bf16.msra.mxu1 %v6992_v17  ;;  %v1598_v12 = vadd.f32 %v1588_v25, %v6678_v29  ;;  %v7005_v31 = vld [vmem:[#allocation7 + $0xa8] ss:$16 sps:$4 sm:$0xff]   ;;  %v7012_v36 = vld [vmem:[#allocation7 + $0xcc] ss:$16 sps:$4 sm:$0xff]  }
 0x2fe   : > { %5351 = vpow2.f32 %v4774_v11  ;;  %v4775_v18 = vmul.f32 -1.442695, %v1600_v37  ;;  %1759 = vmatprep.subr.bf16.mxu0 %v6995_v27  ;;  %1802 = vmatprep.subr.bf16.mxu1 %v6998_v4  ;;  %v7002_v11 = vld [vmem:[#allocation7 + $0xa0] ss:$16 sps:$4 sm:$0xff]   ;;  %8671 = vst [vmem:[#allocation55_spill] sm:$0xff] %v7005_v31  ;;  %8673 = vst [vmem:[#allocation57_spill] sm:$0xff] %v7012_v36 }
 0x2ff   : > { %5353 = vpow2.f32 %v4773_v60  ;;  %v7009_v37 = vld [vmem:[#allocation7 + $0xc4] ss:$16 sps:$4 sm:$0xff]   ;;  %v4776_v25 = vmul.f32 -1.442695, %v1598_v12  ;;  %v1601_v60 = vadd.f32 %v1590_v21, %v6681_v13  ;;  %v7017_v30 = vld [vmem:[#allocation7 + $0xc0] ss:$16 sps:$4 sm:$0xff]  }
 0x300   : > { %5355 = vpow2.f32 %v4775_v18  ;;  %8672 = vst [vmem:[#allocation56_spill] sm:$0xff] %v7009_v37  ;;  %v1602_v18 = vadd.f32 %v1592_v19, %v6678_v29  ;;  %8674 = vst [vmem:[#allocation58_spill] sm:$0xff] %v7017_v30  ;;  %v7026_v12 = vld [vmem:[#allocation7 + $0xec] ss:$16 sps:$4 sm:$0xff]  }
 0x301   : > { %1760 = vmatpush1.bf16.msra.mxu0 %v7002_v11  ;;  %1803 = vmatpush1.bf16.msra.mxu1 %v7005_v31  ;;  %v7020_v31 = vld [vmem:[#allocation7 + $0xc8] ss:$16 sps:$4 sm:$0xff]   ;;  %5357 = vtanh.f32 %v1597_v6 }
 0x302   : > { %1761 = vmatprep.subr.bf16.mxu0 %v7009_v37  ;;  %1804 = vmatprep.subr.bf16.mxu1 %v7012_v36  ;;  %8675 = vst [vmem:[#allocation59_spill] sm:$0xff] %v7020_v31  ;;  %v7023_v37 = vld [vmem:[#allocation7 + $0xe4] ss:$16 sps:$4 sm:$0xff]   ;;  %5359 = vpow2.f32 %v4776_v25  ;;  %v4777_v13 = vmul.f32 -1.442695, %v1602_v18 }
 0x303   : > { %8676 = vst [vmem:[#allocation60_spill] sm:$0xff] %v7023_v37  ;;  %5361 = vtanh.f32 %v1601_v60  ;;  %v7033_v6 = vld [vmem:[#allocation7 + $0xe8] ss:$16 sps:$4 sm:$0xff]  }
 0x305   : > { %1762 = vmatpush1.bf16.msra.mxu0 %v7017_v30  ;;  %1805 = vmatpush1.bf16.msra.mxu1 %v7020_v31  ;;  %v5241_v30 = vld [vmem:[%s6352_s9 + $0x20] sm:$0xff]  }
 0x306   : > { %1763 = vmatprep.subr.bf16.mxu0 %v7023_v37  ;;  %1806 = vmatprep.subr.bf16.mxu1 %v7026_v12  ;;  %v7030_v31 = vld [vmem:[#allocation7 + $0xe0] ss:$16 sps:$4 sm:$0xff]  }
 0x307   : > { %v5350_v5 = vpop.eup %5349 }
 0x308   : > { %v5352_v21 = vpop.eup %5351  ;;  %v1609_v19 = vadd.f32 1.0, %v5350_v5 }
 0x309   : > { %v1621_v29 = vadd.f32 1.0, %v5352_v21  ;;  %v5354_v36 = vpop.eup %5353  ;;  %1764 = vmatpush1.bf16.msra.mxu0 %v7030_v31  ;;  %1807 = vmatpush1.bf16.msra.mxu1 %v7033_v6 }
 0x30a   : > { %5363 = vrcp.f32 %v1609_v19  ;;  %v1610_v37 = vadd.f32 1.0, %v5354_v36  ;;  %1897 = vmatprep.subr.bf16.mxu0 %v6813_v40  ;;  %1940 = vmatprep.subr.bf16.mxu1 %v6816_v41  ;;  %v5356_v25 = vpop.eup %5355 }
 0x30b   : > { %5365 = vrcp.f32 %v1621_v29  ;;  %v1622_v18 = vadd.f32 1.0, %v5356_v25  ;;  %v5358_v29 = vpop.eup %5357 }
 0x30c   : > { %5367 = vpow2.f32 %v4777_v13  ;;  %1782 = vmatmul.mubr.bf16.vlgmr.msra.gmra.mrb[16].mxu0 %v5241_v30  ;;  %1825 = vmatmul.mubr.bf16.vlgmr.msra.gmra.mrb[16].mxu1 %v5241_v30  ;;  %v5360_v36 = vpop.eup %5359 }
 0x30d   : > { %5369 = vrcp.f32 %v1610_v37  ;;  %1898 = vmatpush1.bf16.msra.mxu0 %v6819_v42  ;;  %1941 = vmatpush1.bf16.msra.mxu1 %v6822_v43  ;;  %v5362_v13 = vpop.eup %5361  ;;  %v1635_v5 = vadd.f32 1.0, %v5360_v36 }
 0x30e   : > { %5371 = vrcp.f32 %v1622_v18  ;;  %1899 = vmatprep.subr.bf16.mxu0 %v6825_v44  ;;  %1942 = vmatprep.subr.bf16.mxu1 %v6828_v3 }
 0x30f   : > { %1929 = vmatprep.mubr.bf16.mxu0 %v8601_v35  ;;  %1972 = vmatprep.mubr.bf16.mxu1 %v8601_v35  ;;  %5373 = vrcp.f32 %v1635_v5  ;;  %v8681_v5 = vld [vmem:[#allocation49_spill] sm:$0xff] }
 0x311   : > { %1900 = vmatpush1.bf16.msra.mxu0 %v6833_v45  ;;  %1943 = vmatpush1.bf16.msra.mxu1 %v6836_v46 }
 0x312   : > { %1901 = vmatprep.subr.bf16.mxu0 %v6839_v47  ;;  %1944 = vmatprep.subr.bf16.mxu1 %v6842_v48 }
 0x314   : > { %v5364_v30 = vpop.eup %5363 }
 0x315   : > { %v5366_v37 = vpop.eup %5365  ;;  %v1643_v60 = vmul.f32 %v5364_v30, %v5358_v29  ;;  %1902 = vmatpush1.bf16.msra.mxu0 %v6845_v49  ;;  %1945 = vmatpush1.bf16.msra.mxu1 %v6848_v50 }
 0x316   : > { %v5368_v21 = vpop.eup %5367  ;;  %v1641_v19 = vmul.f32 %v5366_v37, %v6752_v33  ;;  %1903 = vmatprep.subr.bf16.mxu0 %v6851_v51  ;;  %1946 = vmatprep.subr.bf16.mxu1 %v6854_v52  ;;  %v8679_v37 = vld [vmem:[#allocation47_spill] sm:$0xff] }
 0x317   : > { %v5370_v25 = vpop.eup %5369  ;;  %v1636_v46 = vadd.f32 1.0, %v5368_v21  ;;  %v8682_v21 = vld [vmem:[#allocation50_spill] sm:$0xff] }
 0x318   : > { %v7053_v18 = vadd.f32 %v1643_v60, %v1641_v19  ;;  %v1644_v47 = vmul.f32 %v5370_v25, %v5362_v13  ;;  %v5372_v48 = vpop.eup %5371  ;;  %v8680_v60 = vld [vmem:[#allocation48_spill] sm:$0xff]  ;;  %v8683_v19 = vld [vmem:[#allocation51_spill] sm:$0xff] }
 0x319   : > { %v1642_v29 = vmul.f32 %v5372_v48, %v6759_v32  ;;  %1904 = vmatpush1.bf16.msra.mxu0 %v6857_v53  ;;  %1947 = vmatpush1.bf16.msra.mxu1 %v6860_v54  ;;  %v5374_v32 = vpop.eup %5373  ;;  %v8684_v25 = vld [vmem:[#allocation52_spill] sm:$0xff] }
 0x31a   : > { %8677 = vst [vmem:[#allocation61_spill] sm:$0xff] %v7053_v18  ;;  %5375 = vtanh.f32 %v7053_v18  ;;  %1905 = vmatprep.subr.bf16.mxu0 %v6863_v55  ;;  %1948 = vmatprep.subr.bf16.mxu1 %v6866_v56  ;;  %v8693_v18 = vld [vmem:[#allocation16_spill] sm:$0xff] }
 0x31b   : > { %v7061_v33 = vadd.f32 %v1644_v47, %v1642_v29  ;;  %5377 = vrcp.f32 %v1636_v46  ;;  %v8685_v29 = vld [vmem:[#allocation53_spill] sm:$0xff] }
 0x31d   : > { %8678 = vst [vmem:[#allocation62_spill] sm:$0xff] %v7061_v33  ;;  %5379 = vtanh.f32 %v7061_v33  ;;  %1906 = vmatpush1.bf16.msra.mxu0 %v6869_v57  ;;  %1949 = vmatpush1.bf16.msra.mxu1 %v6872_v58  ;;  %v5242_v33 = vld [vmem:[%s6352_s9 + $0x28] sm:$0xff]  }
 0x31e   : > { %1907 = vmatprep.subr.bf16.mxu0 %v6875_v59  ;;  %1950 = vmatprep.subr.bf16.mxu1 %v6878_v61 }
 0x321   : > { %1908 = vmatpush1.bf16.msra.mxu0 %v6881_v62  ;;  %1951 = vmatpush1.bf16.msra.mxu1 %v6884_v63 }
 0x322   : > { %1909 = vmatprep.subr.bf16.mxu0 %v6887_v0  ;;  %1952 = vmatprep.subr.bf16.mxu1 %v6890_v34 }
 0x324   : > { %v5376_v46 = vpop.eup %5375 }
 0x325   : > { %v1649_v47 = vmul.f32 %v5376_v46, %v5374_v32  ;;  %1910 = vmatpush1.bf16.msra.mxu0 %v6893_v38  ;;  %1953 = vmatpush1.bf16.msra.mxu1 %v6896_v20  ;;  %v5378_v48 = vpop.eup %5377  ;;  %v8686_v32 = vld [vmem:[#allocation54_spill] sm:$0xff]  ;;  %v8687_v46 = vld [vmem:[#allocation55_spill] sm:$0xff] }
 0x326   : > { %1911 = vmatprep.subr.bf16.mxu0 %v6899_v22  ;;  %1954 = vmatprep.subr.bf16.mxu1 %v6902_v28 }
 0x327   : > { %4778 = vst [vmem:[%s6363_s12 + $0x30] sm:$0xff] %v1649_v47  ;;  %v5380_v36 = vpop.eup %5379 }
 0x328   : > { %v1650_v13 = vmul.f32 %v5380_v36, %v5378_v48  ;;  %v8689_v48 = vld [vmem:[#allocation57_spill] sm:$0xff]  ;;  %v8690_v36 = vld [vmem:[#allocation58_spill] sm:$0xff] }
 0x329   : > { %1912 = vmatpush1.bf16.msra.mxu0 %v6905_v16  ;;  %1955 = vmatpush1.bf16.msra.mxu1 %v6908_v24 }
 0x32a   : > { %1989 = vmatprep.subr.bf16.mxu0 %v6911_v1  ;;  %2032 = vmatprep.subr.bf16.mxu1 %v6914_v2  ;;  %4779 = vst [vmem:[%s6363_s12 + $0x38] sm:$0xff] %v1650_v13  ;;  %v1896_v30 = vpack.c.bf16 %v1650_v13, %v1649_v47  ;;  %v8688_v47 = vld [vmem:[#allocation56_spill] sm:$0xff]  ;;  %v8691_v13 = vld [vmem:[#allocation59_spill] sm:$0xff] }
 0x32c   : > { %1930 = vmatmul.mubr.bf16.vlgmr.msra.gmra.mrb[20].mxu0 %v1896_v30  ;;  %1973 = vmatmul.mubr.bf16.vlgmr.msra.gmra.mrb[20].mxu1 %v1896_v30  ;;  %v8692_v30 = vld [vmem:[#allocation60_spill] sm:$0xff] }
 0x32d   : > { %1990 = vmatpush1.bf16.msra.mxu0 %v6935_v8  ;;  %2033 = vmatpush1.bf16.msra.mxu1 %v6938_v14 }
 0x32e   : > { %1991 = vmatprep.subr.bf16.mxu0 %v6941_v26  ;;  %2034 = vmatprep.subr.bf16.mxu1 %v6944_v23 }
 0x32f   : > { %2021 = vmatprep.mubr.bf16.mxu0 %v8601_v35  ;;  %2064 = vmatprep.mubr.bf16.mxu1 %v8601_v35 }
 0x331   : > { %1992 = vmatpush1.bf16.msra.mxu0 %v6949_v9  ;;  %2035 = vmatpush1.bf16.msra.mxu1 %v6952_v10 }
 0x332   : > { %1993 = vmatprep.subr.bf16.mxu0 %v6955_v15  ;;  %2036 = vmatprep.subr.bf16.mxu1 %v8679_v37 }
 0x335   : > { %1994 = vmatpush1.bf16.msra.mxu0 %v8680_v60  ;;  %2037 = vmatpush1.bf16.msra.mxu1 %v8681_v5 }
 0x336   : > { %1995 = vmatprep.subr.bf16.mxu0 %v8682_v21  ;;  %2038 = vmatprep.subr.bf16.mxu1 %v8683_v19 }
 0x339   : > { %1996 = vmatpush1.bf16.msra.mxu0 %v8684_v25  ;;  %2039 = vmatpush1.bf16.msra.mxu1 %v8685_v29 }
 0x33a   : > { %1997 = vmatprep.subr.bf16.mxu0 %v6982_v39  ;;  %2040 = vmatprep.subr.bf16.mxu1 %v8686_v32 }
 0x33d   : > { %1998 = vmatpush1.bf16.msra.mxu0 %v6989_v7  ;;  %2041 = vmatpush1.bf16.msra.mxu1 %v6992_v17 }
 0x33e   : > { %1999 = vmatprep.subr.bf16.mxu0 %v6995_v27  ;;  %2042 = vmatprep.subr.bf16.mxu1 %v6998_v4 }
 0x341   : > { %2000 = vmatpush1.bf16.msra.mxu0 %v7002_v11  ;;  %2043 = vmatpush1.bf16.msra.mxu1 %v8687_v46 }
 0x342   : > { %2001 = vmatprep.subr.bf16.mxu0 %v8688_v47  ;;  %2044 = vmatprep.subr.bf16.mxu1 %v8689_v48 }
 0x345   : > { %2002 = vmatpush1.bf16.msra.mxu0 %v8690_v36  ;;  %2045 = vmatpush1.bf16.msra.mxu1 %v8691_v13 }
 0x346   : > { %2003 = vmatprep.subr.bf16.mxu0 %v8692_v30  ;;  %2046 = vmatprep.subr.bf16.mxu1 %v7026_v12 }
 0x349   : > { %2004 = vmatpush1.bf16.msra.mxu0 %v7030_v31  ;;  %2047 = vmatpush1.bf16.msra.mxu1 %v7033_v6 }
 0x34a   : > { %2137 = vmatprep.subr.bf16.mxu0 %v6813_v40  ;;  %2180 = vmatprep.subr.bf16.mxu1 %v6816_v41  ;;  %v8694_v40 = vld [vmem:[#allocation17_spill] sm:$0xff]  ;;  %v8695_v41 = vld [vmem:[#allocation18_spill] sm:$0xff] }
 0x34c   : > { %2022 = vmatmul.mubr.bf16.vlgmr.msra.gmra.mrb[20].mxu0 %v5242_v33  ;;  %2065 = vmatmul.mubr.bf16.vlgmr.msra.gmra.mrb[20].mxu1 %v5242_v33 }
 0x34d   : > { %2138 = vmatpush1.bf16.msra.mxu0 %v6819_v42  ;;  %2181 = vmatpush1.bf16.msra.mxu1 %v6822_v43 }
 0x34e   : > { %2139 = vmatprep.subr.bf16.mxu0 %v6825_v44  ;;  %2182 = vmatprep.subr.bf16.mxu1 %v6828_v3 }
 0x34f   : > { %2169 = vmatprep.mubr.bf16.mxu0 %v8601_v35  ;;  %2212 = vmatprep.mubr.bf16.mxu1 %v8601_v35 }
 0x351   : > { %2140 = vmatpush1.bf16.msra.mxu0 %v6833_v45  ;;  %2183 = vmatpush1.bf16.msra.mxu1 %v8693_v18 }
 0x352   : > { %2141 = vmatprep.subr.bf16.mxu0 %v8694_v40  ;;  %2184 = vmatprep.subr.bf16.mxu1 %v8695_v41 }
 0x355   : > { %2142 = vmatpush1.bf16.msra.mxu0 %v6845_v49  ;;  %2185 = vmatpush1.bf16.msra.mxu1 %v6848_v50 }
 0x356   : > { %2143 = vmatprep.subr.bf16.mxu0 %v6851_v51  ;;  %2186 = vmatprep.subr.bf16.mxu1 %v6854_v52 }
 0x359   : > { %2144 = vmatpush1.bf16.msra.mxu0 %v6857_v53  ;;  %2187 = vmatpush1.bf16.msra.mxu1 %v6860_v54  ;;  %v8699_v54 = vld [vmem:[#allocation41_spill] sm:$0xff] }
 0x35a   : > { %2145 = vmatprep.subr.bf16.mxu0 %v6863_v55  ;;  %2188 = vmatprep.subr.bf16.mxu1 %v6866_v56  ;;  %v8698_v55 = vld [vmem:[#allocation40_spill] sm:$0xff] }
 0x35d   : > { %2146 = vmatpush1.bf16.msra.mxu0 %v6869_v57  ;;  %2189 = vmatpush1.bf16.msra.mxu1 %v6872_v58 }
 0x35e   : > { %2147 = vmatprep.subr.bf16.mxu0 %v6875_v59  ;;  %2190 = vmatprep.subr.bf16.mxu1 %v6878_v61  ;;  %v8697_v61 = vld [vmem:[#allocation39_spill] sm:$0xff] }
 0x361   : > { %2148 = vmatpush1.bf16.msra.mxu0 %v6881_v62  ;;  %2191 = vmatpush1.bf16.msra.mxu1 %v6884_v63  ;;  %v8696_v63 = vld [vmem:[#allocation38_spill] sm:$0xff] }
 0x362   : > { %2149 = vmatprep.subr.bf16.mxu0 %v6887_v0  ;;  %2192 = vmatprep.subr.bf16.mxu1 %v6890_v34 }
 0x365   : > { %2150 = vmatpush1.bf16.msra.mxu0 %v6893_v38  ;;  %2193 = vmatpush1.bf16.msra.mxu1 %v6896_v20 }
 0x366   : > { %2151 = vmatprep.subr.bf16.mxu0 %v6899_v22  ;;  %2194 = vmatprep.subr.bf16.mxu1 %v6902_v28 }
 0x369   : > { %2152 = vmatpush1.bf16.msra.mxu0 %v6905_v16  ;;  %2195 = vmatpush1.bf16.msra.mxu1 %v6908_v24 }
 0x36a   : > { %2229 = vmatprep.subr.bf16.mxu0 %v6911_v1  ;;  %2272 = vmatprep.subr.bf16.mxu1 %v6914_v2 }
 0x3df   : > { %v1783_v33 = vpop.f32.mrb[16].mxu0  ;;  %v1826_v0 = vpop.f32.mrb[16].mxu1 }
 0x3e0   : > { %v1835_v34 = vadd.f32 %v1783_v33, %v8696_v63  ;;  %v1785_v62 = vpop.f32.mrb[17].mxu0  ;;  %v1828_v38 = vpop.f32.mrb[17].mxu1 }
 0x3e1   : > { %v1836_v20 = vadd.f32 %v1785_v62, %v8697_v61  ;;  %v1787_v59 = vpop.f32.mrb[18].mxu0  ;;  %v1830_v22 = vpop.f32.mrb[18].mxu1  ;;  %v1838_v33 = vadd.f32 %v1828_v38, %v8698_v55  ;;  %v1837_v62 = vadd.f32 %v1826_v0, %v8699_v54 }
 0x3e2   : > { %v4783_v58 = vmul.f32 -1.442695, %v1835_v34  ;;  %v1839_v28 = vadd.f32 %v1787_v59, %v8696_v63  ;;  %v1789_v16 = vpop.f32.mrb[19].mxu0  ;;  %v1832_v57 = vpop.f32.mrb[19].mxu1  ;;  %v1841_v59 = vadd.f32 %v1830_v22, %v8699_v54 }
 0x3e3   : > { %v4785_v24 = vmul.f32 -1.442695, %v1836_v20  ;;  %v1840_v1 = vadd.f32 %v1789_v16, %v8697_v61  ;;  %v4787_v53 = vmul.f32 -1.442695, %v1838_v33  ;;  %v1842_v34 = vadd.f32 %v1832_v57, %v8698_v55 }
 0x3e4   : > { %5381 = vpow2.f32 %v4783_v58  ;;  %v4784_v2 = vmul.f32 -1.442695, %v1839_v28 }
 0x3e5   : > { %5383 = vpow2.f32 %v4785_v24  ;;  %v4786_v56 = vmul.f32 -1.442695, %v1840_v1  ;;  %v4788_v58 = vmul.f32 -1.442695, %v1842_v34 }
 0x3e6   : > { %5385 = vpow2.f32 %v4784_v2 }
 0x3e7   : > { %5387 = vpow2.f32 %v4786_v56 }
 0x3e8   : > { %5389 = vtanh.f32 %v1837_v62  ;;  %v8700_v62 = vld [vmem:[#allocation45_spill] sm:$0xff] }
 0x3e9   : > { %5391 = vpow2.f32 %v4787_v53 }
 0x3ea   : > { %5393 = vtanh.f32 %v1841_v59 }
 0x3ee   : > { %v5382_v52 = vpop.eup %5381 }
 0x3ef   : > { %v5384_v20 = vpop.eup %5383  ;;  %v1849_v51 = vadd.f32 1.0, %v5382_v52 }
 0x3f0   : > { %v1861_v28 = vadd.f32 1.0, %v5384_v20  ;;  %v5386_v16 = vpop.eup %5385 }
 0x3f1   : > { %5395 = vrcp.f32 %v1849_v51  ;;  %v1850_v38 = vadd.f32 1.0, %v5386_v16  ;;  %v5388_v56 = vpop.eup %5387  ;;  %v8701_v16 = vld [vmem:[#allocation46_spill] sm:$0xff] }
 0x3f2   : > { %5397 = vrcp.f32 %v1861_v28  ;;  %v1862_v0 = vadd.f32 1.0, %v5388_v56  ;;  %v5390_v57 = vpop.eup %5389 }
 0x3f3   : > { %5399 = vpow2.f32 %v4788_v58  ;;  %v5392_v24 = vpop.eup %5391 }
 0x3f4   : > { %5401 = vrcp.f32 %v1850_v38  ;;  %v5394_v22 = vpop.eup %5393  ;;  %v1875_v52 = vadd.f32 1.0, %v5392_v24 }
 0x3f5   : > { %5403 = vrcp.f32 %v1862_v0 }
 0x3f6   : > { %5405 = vrcp.f32 %v1875_v52 }
 0x3fb   : > { %v5396_v1 = vpop.eup %5395 }
 0x3fc   : > { %v5398_v2 = vpop.eup %5397  ;;  %v1883_v33 = vmul.f32 %v5396_v1, %v5390_v57 }
 0x3fd   : > { %v5400_v53 = vpop.eup %5399  ;;  %v1881_v34 = vmul.f32 %v5398_v2, %v8700_v62 }
 0x3fe   : > { %v5402_v59 = vpop.eup %5401  ;;  %v1876_v28 = vadd.f32 1.0, %v5400_v53 }
 0x3ff   : > { %v7160_v51 = vadd.f32 %v1883_v33, %v1881_v34  ;;  %v1884_v20 = vmul.f32 %v5402_v59, %v5394_v22  ;;  %v5404_v58 = vpop.eup %5403 }
 0x400   : > { %v1882_v38 = vmul.f32 %v5404_v58, %v8701_v16  ;;  %v5406_v0 = vpop.eup %5405 }
 0x401   : > { %5407 = vtanh.f32 %v7160_v51 }
 0x402   : > { %v7164_v56 = vadd.f32 %v1884_v20, %v1882_v38  ;;  %5409 = vrcp.f32 %v1876_v28 }
 0x404   : > { %5411 = vtanh.f32 %v7164_v56 }
 0x40b   : > { %v5408_v57 = vpop.eup %5407 }
 0x40c   : > { %v1889_v24 = vmul.f32 %v5408_v57, %v5406_v0  ;;  %v5410_v1 = vpop.eup %5409 }
 0x40e   : > { %4789 = vst [vmem:[%s6363_s12 + $0x40] sm:$0xff] %v1889_v24  ;;  %v5412_v2 = vpop.eup %5411 }
 0x40f   : > { %v1890_v22 = vmul.f32 %v5412_v2, %v5410_v1 }
 0x411   : > { %4790 = vst [vmem:[%s6363_s12 + $0x48] sm:$0xff] %v1890_v22  ;;  %v2136_v33 = vpack.c.bf16 %v1890_v22, %v1889_v24 }
 0x413   : > { %2170 = vmatmul.mubr.bf16.vlgmr.msra.gmra.mrb[24].mxu0 %v2136_v33  ;;  %2213 = vmatmul.mubr.bf16.vlgmr.msra.gmra.mrb[24].mxu1 %v2136_v33 }
 0x414   : > { %2230 = vmatpush1.bf16.msra.mxu0 %v6935_v8  ;;  %2273 = vmatpush1.bf16.msra.mxu1 %v6938_v14 }
 0x415   : > { %2231 = vmatprep.subr.bf16.mxu0 %v6941_v26  ;;  %2274 = vmatprep.subr.bf16.mxu1 %v6944_v23 }
 0x416   : > { %2261 = vmatprep.mubr.bf16.mxu0 %v8601_v35  ;;  %2304 = vmatprep.mubr.bf16.mxu1 %v8601_v35 }
 0x418   : > { %2232 = vmatpush1.bf16.msra.mxu0 %v6949_v9  ;;  %2275 = vmatpush1.bf16.msra.mxu1 %v6952_v10 }
 0x419   : > { %2233 = vmatprep.subr.bf16.mxu0 %v6955_v15  ;;  %2276 = vmatprep.subr.bf16.mxu1 %v8679_v37 }
 0x41c   : > { %2234 = vmatpush1.bf16.msra.mxu0 %v8680_v60  ;;  %2277 = vmatpush1.bf16.msra.mxu1 %v8681_v5 }
 0x41d   : > { %2235 = vmatprep.subr.bf16.mxu0 %v8682_v21  ;;  %2278 = vmatprep.subr.bf16.mxu1 %v8683_v19 }
 0x41f   : > { %v2023_v52 = vpop.f32.mrb[20].mxu0  ;;  %v2066_v53 = vpop.f32.mrb[20].mxu1 }
 0x420   : > { %v2075_v62 = vadd.f32 %v2023_v52, %v8696_v63  ;;  %v2025_v34 = vpop.f32.mrb[21].mxu0  ;;  %v2068_v59 = vpop.f32.mrb[21].mxu1  ;;  %2236 = vmatpush1.bf16.msra.mxu0 %v8684_v25  ;;  %2279 = vmatpush1.bf16.msra.mxu1 %v8685_v29  ;;  %v2077_v52 = vadd.f32 %v2066_v53, %v8699_v54 }
 0x421   : > { %v2076_v20 = vadd.f32 %v2025_v34, %v8697_v61  ;;  %v2027_v58 = vpop.f32.mrb[22].mxu0  ;;  %v2070_v28 = vpop.f32.mrb[22].mxu1  ;;  %2237 = vmatprep.subr.bf16.mxu0 %v6982_v39  ;;  %2280 = vmatprep.subr.bf16.mxu1 %v8686_v32  ;;  %v2078_v33 = vadd.f32 %v2068_v59, %v8698_v55 }
 0x422   : > { %v4794_v16 = vmul.f32 -1.442695, %v2075_v62  ;;  %v2079_v38 = vadd.f32 %v2027_v58, %v8696_v63  ;;  %v2029_v0 = vpop.f32.mrb[23].mxu0  ;;  %v2072_v57 = vpop.f32.mrb[23].mxu1 }
 0x423   : > { %v4796_v24 = vmul.f32 -1.442695, %v2076_v20  ;;  %v2080_v1 = vadd.f32 %v2029_v0, %v8697_v61  ;;  %v4798_v62 = vmul.f32 -1.442695, %v2078_v33  ;;  %v2082_v34 = vadd.f32 %v2072_v57, %v8698_v55  ;;  %v5243_v0 = vld [vmem:[%s6352_s9 + $0x30] sm:$0xff]  }
 0x424   : > { %5413 = vpow2.f32 %v4794_v16  ;;  %v4795_v2 = vmul.f32 -1.442695, %v2079_v38  ;;  %2238 = vmatpush1.bf16.msra.mxu0 %v6989_v7  ;;  %2281 = vmatpush1.bf16.msra.mxu1 %v6992_v17  ;;  %v2081_v20 = vadd.f32 %v2070_v28, %v8699_v54 }
 0x425   : > { %5415 = vpow2.f32 %v4796_v24  ;;  %v4797_v22 = vmul.f32 -1.442695, %v2080_v1  ;;  %2239 = vmatprep.subr.bf16.mxu0 %v6995_v27  ;;  %2282 = vmatprep.subr.bf16.mxu1 %v6998_v4  ;;  %v4799_v16 = vmul.f32 -1.442695, %v2082_v34  ;;  %v8702_v24 = vld [vmem:[#allocation14_spill] sm:$0xff]  ;;  %v8703_v1 = vld [vmem:[#allocation15_spill] sm:$0xff] }
 0x426   : > { %5417 = vpow2.f32 %v4795_v2 }
 0x427   : > { %5419 = vpow2.f32 %v4797_v22 }
 0x428   : > { %2240 = vmatpush1.bf16.msra.mxu0 %v7002_v11  ;;  %2283 = vmatpush1.bf16.msra.mxu1 %v8687_v46  ;;  %5421 = vtanh.f32 %v2077_v52 }
 0x429   : > { %2241 = vmatprep.subr.bf16.mxu0 %v8688_v47  ;;  %2284 = vmatprep.subr.bf16.mxu1 %v8689_v48  ;;  %5423 = vpow2.f32 %v4798_v62 }
 0x42a   : > { %5425 = vtanh.f32 %v2081_v20  ;;  %v8704_v20 = vld [vmem:[#allocation61_spill] sm:$0xff] }
 0x42c   : > { %2242 = vmatpush1.bf16.msra.mxu0 %v8690_v36  ;;  %2285 = vmatpush1.bf16.msra.mxu1 %v8691_v13 }
 0x42d   : > { %2243 = vmatprep.subr.bf16.mxu0 %v8692_v30  ;;  %2286 = vmatprep.subr.bf16.mxu1 %v7026_v12 }
 0x42e   : > { %v5414_v59 = vpop.eup %5413 }
 0x42f   : > { %v5416_v53 = vpop.eup %5415  ;;  %v2089_v58 = vadd.f32 1.0, %v5414_v59 }
 0x430   : > { %v2101_v38 = vadd.f32 1.0, %v5416_v53  ;;  %v5418_v57 = vpop.eup %5417  ;;  %2244 = vmatpush1.bf16.msra.mxu0 %v7030_v31  ;;  %2287 = vmatpush1.bf16.msra.mxu1 %v7033_v6 }
 0x431   : > { %5427 = vrcp.f32 %v2089_v58  ;;  %v2090_v28 = vadd.f32 1.0, %v5418_v57  ;;  %2377 = vmatprep.subr.bf16.mxu0 %v8702_v24  ;;  %2420 = vmatprep.subr.bf16.mxu1 %v8703_v1  ;;  %v5420_v2 = vpop.eup %5419  ;;  %v8708_v57 = vld [vmem:[#allocation21_spill] sm:$0xff] }
 0x432   : > { %5429 = vrcp.f32 %v2101_v38  ;;  %v2102_v22 = vadd.f32 1.0, %v5420_v2  ;;  %v5422_v33 = vpop.eup %5421  ;;  %v8707_v38 = vld [vmem:[#allocation62_spill] sm:$0xff]  ;;  %v8712_v1 = vld [vmem:[#allocation25_spill] sm:$0xff] }
 0x433   : > { %5431 = vpow2.f32 %v4799_v16  ;;  %2262 = vmatmul.mubr.bf16.vlgmr.msra.gmra.mrb[24].mxu0 %v5243_v0  ;;  %2305 = vmatmul.mubr.bf16.vlgmr.msra.gmra.mrb[24].mxu1 %v5243_v0  ;;  %v5424_v52 = vpop.eup %5423  ;;  %v8713_v2 = vld [vmem:[#allocation26_spill] sm:$0xff] }
 0x434   : > { %5433 = vrcp.f32 %v2090_v28  ;;  %2378 = vmatpush1.bf16.msra.mxu0 %v6819_v42  ;;  %2421 = vmatpush1.bf16.msra.mxu1 %v6822_v43  ;;  %v5426_v62 = vpop.eup %5425  ;;  %v2115_v34 = vadd.f32 1.0, %v5424_v52  ;;  %v8711_v28 = vld [vmem:[#allocation24_spill] sm:$0xff]  ;;  %v8716_v52 = vld [vmem:[#allocation29_spill] sm:$0xff] }
 0x435   : > { %5435 = vrcp.f32 %v2102_v22  ;;  %2379 = vmatprep.subr.bf16.mxu0 %v6825_v44  ;;  %2422 = vmatprep.subr.bf16.mxu1 %v6828_v3  ;;  %v8714_v22 = vld [vmem:[#allocation27_spill] sm:$0xff] }
 0x436   : > { %2409 = vmatprep.mubr.bf16.mxu0 %v8601_v35  ;;  %2452 = vmatprep.mubr.bf16.mxu1 %v8601_v35  ;;  %5437 = vrcp.f32 %v2115_v34 }
 0x438   : > { %2380 = vmatpush1.bf16.msra.mxu0 %v6833_v45  ;;  %2423 = vmatpush1.bf16.msra.mxu1 %v8693_v18  ;;  %v8705_v45 = vld [vmem:[#allocation19_spill] sm:$0xff]  ;;  %v8706_v18 = vld [vmem:[#allocation20_spill] sm:$0xff] }
 0x439   : > { %2381 = vmatprep.subr.bf16.mxu0 %v8694_v40  ;;  %2424 = vmatprep.subr.bf16.mxu1 %v8695_v41 }
 0x43b   : > { %v5428_v42 = vpop.eup %5427 }
 0x43c   : > { %v5430_v43 = vpop.eup %5429  ;;  %v2123_v44 = vmul.f32 %v5428_v42, %v5422_v33  ;;  %2382 = vmatpush1.bf16.msra.mxu0 %v6845_v49  ;;  %2425 = vmatpush1.bf16.msra.mxu1 %v6848_v50  ;;  %v8709_v49 = vld [vmem:[#allocation22_spill] sm:$0xff]  ;;  %v8710_v50 = vld [vmem:[#allocation23_spill] sm:$0xff]  ;;  %v8715_v33 = vld [vmem:[#allocation28_spill] sm:$0xff] }
 0x43d   : > { %v5432_v3 = vpop.eup %5431  ;;  %v2121_v59 = vmul.f32 %v5430_v43, %v8704_v20  ;;  %2383 = vmatprep.subr.bf16.mxu0 %v8705_v45  ;;  %2426 = vmatprep.subr.bf16.mxu1 %v8706_v18  ;;  %v8718_v43 = vld [vmem:[#allocation31_spill] sm:$0xff]  ;;  %v8720_v20 = vld [vmem:[#allocation33_spill] sm:$0xff]  ;;  %v8723_v18 = vld [vmem:[#allocation36_spill] sm:$0xff] }
 0x43e   : > { %v5434_v53 = vpop.eup %5433  ;;  %v2116_v16 = vadd.f32 1.0, %v5432_v3  ;;  %v8722_v45 = vld [vmem:[#allocation35_spill] sm:$0xff] }
 0x43f   : > { %v7227_v58 = vadd.f32 %v2123_v44, %v2121_v59  ;;  %v2124_v40 = vmul.f32 %v5434_v53, %v5426_v62  ;;  %v5436_v41 = vpop.eup %5435  ;;  %v8717_v62 = vld [vmem:[#allocation30_spill] sm:$0xff]  ;;  %v8719_v44 = vld [vmem:[#allocation32_spill] sm:$0xff] }
 0x440   : > { %v2122_v0 = vmul.f32 %v5436_v41, %v8707_v38  ;;  %2384 = vmatpush1.bf16.msra.mxu0 %v8708_v57  ;;  %2427 = vmatpush1.bf16.msra.mxu1 %v8709_v49  ;;  %v5438_v42 = vpop.eup %5437  ;;  %v8721_v59 = vld [vmem:[#allocation34_spill] sm:$0xff]  ;;  %v8727_v57 = vld [vmem:[#allocation44_spill] sm:$0xff] }
 0x441   : > { %5439 = vtanh.f32 %v7227_v58  ;;  %2385 = vmatprep.subr.bf16.mxu0 %v8710_v50  ;;  %2428 = vmatprep.subr.bf16.mxu1 %v8711_v28  ;;  %v8725_v38 = vld [vmem:[#allocation42_spill] sm:$0xff]  ;;  %v7378_v50 = vld [vmem:[#allocation9 + $0xec] ss:$16 sps:$4 sm:$0xff]  }
 0x442   : > { %v7235_v24 = vadd.f32 %v2124_v40, %v2122_v0  ;;  %5441 = vrcp.f32 %v2116_v16  ;;  %v8724_v16 = vld [vmem:[#allocation37_spill] sm:$0xff]  ;;  %v8726_v0 = vld [vmem:[#allocation43_spill] sm:$0xff]  ;;  %8750 = vst [vmem:[#allocation19_spill] sm:$0xff] %v7378_v50  ;;  %v7381_v28 = vld [vmem:[#allocation9 + $0xe0] ss:$16 sps:$4 sm:$0xff]  }
 0x443   : > { %8751 = vst [vmem:[#allocation20_spill] sm:$0xff] %v7381_v28 }
 0x444   : > { %5443 = vtanh.f32 %v7235_v24  ;;  %2386 = vmatpush1.bf16.msra.mxu0 %v8712_v1  ;;  %2429 = vmatpush1.bf16.msra.mxu1 %v8713_v2  ;;  %v7384_v1 = vld [vmem:[#allocation9 + $0xe8] ss:$16 sps:$4 sm:$0xff]   ;;  %v7387_v2 = vld [vmem:[#allocation7 + $0x4] ss:$16 sps:$4 sm:$0xff]  }
 0x445   : > { %2387 = vmatprep.subr.bf16.mxu0 %v8714_v22  ;;  %2430 = vmatprep.subr.bf16.mxu1 %v8715_v33  ;;  %8752 = vst [vmem:[#allocation62_spill] sm:$0xff] %v7384_v1  ;;  %8753 = vst [vmem:[#allocation21_spill] sm:$0xff] %v7387_v2  ;;  %v7390_v22 = vld [vmem:[#allocation7 + $0xc] ss:$16 sps:$4 sm:$0xff]  }
 0x446   : > { %8754 = vst [vmem:[#allocation22_spill] sm:$0xff] %v7390_v22 }
 0x448   : > { %2388 = vmatpush1.bf16.msra.mxu0 %v8716_v52  ;;  %2431 = vmatpush1.bf16.msra.mxu1 %v8717_v62 }
 0x449   : > { %2389 = vmatprep.subr.bf16.mxu0 %v8718_v43  ;;  %2432 = vmatprep.subr.bf16.mxu1 %v8719_v44 }
 0x44b   : > { %v5440_v34 = vpop.eup %5439 }
 0x44c   : > { %v2129_v3 = vmul.f32 %v5440_v34, %v5438_v42  ;;  %2390 = vmatpush1.bf16.msra.mxu0 %v8720_v20  ;;  %2433 = vmatpush1.bf16.msra.mxu1 %v8721_v59  ;;  %v5442_v53 = vpop.eup %5441 }
 0x44d   : > { %2391 = vmatprep.subr.bf16.mxu0 %v8722_v45  ;;  %2434 = vmatprep.subr.bf16.mxu1 %v8723_v18 }
 0x44e   : > { %4800 = vst [vmem:[%s6363_s12 + $0x50] sm:$0xff] %v2129_v3  ;;  %v5444_v40 = vpop.eup %5443 }
 0x44f   : > { %v2130_v41 = vmul.f32 %v5444_v40, %v5442_v53 }
 0x450   : > { %2392 = vmatpush1.bf16.msra.mxu0 %v8724_v16  ;;  %2435 = vmatpush1.bf16.msra.mxu1 %v8725_v38 }
 0x451   : > { %2469 = vmatprep.subr.bf16.mxu0 %v8726_v0  ;;  %2512 = vmatprep.subr.bf16.mxu1 %v8727_v57  ;;  %4801 = vst [vmem:[%s6363_s12 + $0x58] sm:$0xff] %v2130_v41  ;;  %v2376_v49 = vpack.c.bf16 %v2130_v41, %v2129_v3 }
 0x453   : > { %2410 = vmatmul.mubr.bf16.vlgmr.msra.gmra.mrb[28].mxu0 %v2376_v49  ;;  %2453 = vmatmul.mubr.bf16.vlgmr.msra.gmra.mrb[28].mxu1 %v2376_v49 }
 0x454   : > { %2470 = vmatpush1.bf16.msra.mxu0 %v6935_v8  ;;  %2513 = vmatpush1.bf16.msra.mxu1 %v6938_v14  ;;  %v5244_v8 = vld [vmem:[%s6352_s9 + $0x38] sm:$0xff]  }
 0x455   : > { %2471 = vmatprep.subr.bf16.mxu0 %v6941_v26  ;;  %2514 = vmatprep.subr.bf16.mxu1 %v6944_v23  ;;  %v7292_v14 = vld [vmem:[#allocation9 + $0xc] ss:$16 sps:$4 sm:$0xff]   ;;  %v7295_v26 = vld [vmem:[#allocation9] ss:$16 sps:$4 sm:$0xff]   ;;  %v7298_v23 = vld [vmem:[#allocation9 + $0x8] ss:$16 sps:$4 sm:$0xff]  }
 0x456   : > { %2501 = vmatprep.mubr.bf16.mxu0 %v8601_v35  ;;  %2544 = vmatprep.mubr.bf16.mxu1 %v8601_v35  ;;  %8729 = vst [vmem:[#allocation48_spill] sm:$0xff] %v7292_v14 }
 0x458   : > { %2472 = vmatpush1.bf16.msra.mxu0 %v6949_v9  ;;  %2515 = vmatpush1.bf16.msra.mxu1 %v6952_v10  ;;  %v7301_v9 = vld [vmem:[#allocation9 + $0x24] ss:$16 sps:$4 sm:$0xff]   ;;  %v7304_v10 = vld [vmem:[#allocation9 + $0x2c] ss:$16 sps:$4 sm:$0xff]  }
 0x459   : > { %2473 = vmatprep.subr.bf16.mxu0 %v6955_v15  ;;  %2516 = vmatprep.subr.bf16.mxu1 %v8679_v37  ;;  %v7309_v15 = vld [vmem:[#allocation9 + $0x20] ss:$16 sps:$4 sm:$0xff]   ;;  %v7336_v37 = vld [vmem:[#allocation9 + $0x68] ss:$16 sps:$4 sm:$0xff]  }
 0x45a   : > { %8736 = vst [vmem:[#allocation55_spill] sm:$0xff] %v7336_v37 }
 0x45c   : > { %2474 = vmatpush1.bf16.msra.mxu0 %v8680_v60  ;;  %2517 = vmatpush1.bf16.msra.mxu1 %v8681_v5  ;;  %v7339_v60 = vld [vmem:[#allocation9 + $0x84] ss:$16 sps:$4 sm:$0xff]   ;;  %v7342_v5 = vld [vmem:[#allocation9 + $0x8c] ss:$16 sps:$4 sm:$0xff]  }
 0x45d   : > { %2475 = vmatprep.subr.bf16.mxu0 %v8682_v21  ;;  %2518 = vmatprep.subr.bf16.mxu1 %v8683_v19  ;;  %8737 = vst [vmem:[#allocation56_spill] sm:$0xff] %v7339_v60  ;;  %8738 = vst [vmem:[#allocation57_spill] sm:$0xff] %v7342_v5  ;;  %v7345_v21 = vld [vmem:[#allocation9 + $0x80] ss:$16 sps:$4 sm:$0xff]   ;;  %v7348_v19 = vld [vmem:[#allocation9 + $0x88] ss:$16 sps:$4 sm:$0xff]  }
 0x45e   : > { %8739 = vst [vmem:[#allocation58_spill] sm:$0xff] %v7345_v21  ;;  %8740 = vst [vmem:[#allocation59_spill] sm:$0xff] %v7348_v19 }
 0x460   : > { %2476 = vmatpush1.bf16.msra.mxu0 %v8684_v25  ;;  %2519 = vmatpush1.bf16.msra.mxu1 %v8685_v29  ;;  %v7351_v25 = vld [vmem:[#allocation9 + $0xa4] ss:$16 sps:$4 sm:$0xff]   ;;  %v7354_v29 = vld [vmem:[#allocation9 + $0xac] ss:$16 sps:$4 sm:$0xff]  }
 0x461   : > { %2477 = vmatprep.subr.bf16.mxu0 %v6982_v39  ;;  %2520 = vmatprep.subr.bf16.mxu1 %v8686_v32  ;;  %v7312_v39 = vld [vmem:[#allocation9 + $0x28] ss:$16 sps:$4 sm:$0xff]   ;;  %8741 = vst [vmem:[#allocation60_spill] sm:$0xff] %v7351_v25  ;;  %8742 = vst [vmem:[#allocation16_spill] sm:$0xff] %v7354_v29  ;;  %v7357_v32 = vld [vmem:[#allocation9 + $0xa0] ss:$16 sps:$4 sm:$0xff]  }
 0x462   : > { %8730 = vst [vmem:[#allocation49_spill] sm:$0xff] %v7312_v39  ;;  %8743 = vst [vmem:[#allocation17_spill] sm:$0xff] %v7357_v32 }
 0x464   : > { %2478 = vmatpush1.bf16.msra.mxu0 %v6989_v7  ;;  %2521 = vmatpush1.bf16.msra.mxu1 %v6992_v17  ;;  %v7318_v7 = vld [vmem:[#allocation9 + $0x4c] ss:$16 sps:$4 sm:$0xff]   ;;  %v7321_v17 = vld [vmem:[#allocation9 + $0x40] ss:$16 sps:$4 sm:$0xff]  }
 0x465   : > { %2479 = vmatprep.subr.bf16.mxu0 %v6995_v27  ;;  %2522 = vmatprep.subr.bf16.mxu1 %v6998_v4  ;;  %v7289_v27 = vld [vmem:[#allocation9 + $0x4] ss:$16 sps:$4 sm:$0xff]   ;;  %8732 = vst [vmem:[#allocation51_spill] sm:$0xff] %v7318_v7 }
 0x466   : > { %8728 = vst [vmem:[#allocation47_spill] sm:$0xff] %v7289_v27  ;;  %v7315_v4 = vld [vmem:[#allocation9 + $0x44] ss:$16 sps:$4 sm:$0xff]  }
 0x467   : > { %8731 = vst [vmem:[#allocation50_spill] sm:$0xff] %v7315_v4 }
 0x468   : > { %2480 = vmatpush1.bf16.msra.mxu0 %v7002_v11  ;;  %2523 = vmatpush1.bf16.msra.mxu1 %v8687_v46  ;;  %v7324_v11 = vld [vmem:[#allocation9 + $0x48] ss:$16 sps:$4 sm:$0xff]  }
 0x469   : > { %2481 = vmatprep.subr.bf16.mxu0 %v8688_v47  ;;  %2524 = vmatprep.subr.bf16.mxu1 %v8689_v48  ;;  %v7360_v46 = vld [vmem:[#allocation9 + $0xa8] ss:$16 sps:$4 sm:$0xff]   ;;  %v7363_v47 = vld [vmem:[#allocation9 + $0xc4] ss:$16 sps:$4 sm:$0xff]   ;;  %v7366_v48 = vld [vmem:[#allocation9 + $0xcc] ss:$16 sps:$4 sm:$0xff]  }
 0x46a   : > { %8744 = vst [vmem:[#allocation18_spill] sm:$0xff] %v7360_v46  ;;  %8745 = vst [vmem:[#allocation45_spill] sm:$0xff] %v7363_v47 }
 0x46b   : > { %8746 = vst [vmem:[#allocation46_spill] sm:$0xff] %v7366_v48 }
 0x46c   : > { %2482 = vmatpush1.bf16.msra.mxu0 %v8690_v36  ;;  %2525 = vmatpush1.bf16.msra.mxu1 %v8691_v13  ;;  %v7369_v36 = vld [vmem:[#allocation9 + $0xc0] ss:$16 sps:$4 sm:$0xff]   ;;  %v7372_v13 = vld [vmem:[#allocation9 + $0xc8] ss:$16 sps:$4 sm:$0xff]  }
 0x46d   : > { %2483 = vmatprep.subr.bf16.mxu0 %v8692_v30  ;;  %2526 = vmatprep.subr.bf16.mxu1 %v7026_v12  ;;  %v7330_v12 = vld [vmem:[#allocation9 + $0x6c] ss:$16 sps:$4 sm:$0xff]   ;;  %8747 = vst [vmem:[#allocation14_spill] sm:$0xff] %v7369_v36  ;;  %8748 = vst [vmem:[#allocation15_spill] sm:$0xff] %v7372_v13  ;;  %v7375_v30 = vld [vmem:[#allocation9 + $0xe4] ss:$16 sps:$4 sm:$0xff]  }
 0x46e   : > { %8734 = vst [vmem:[#allocation53_spill] sm:$0xff] %v7330_v12  ;;  %8749 = vst [vmem:[#allocation61_spill] sm:$0xff] %v7375_v30 }
 0x470   : > { %2484 = vmatpush1.bf16.msra.mxu0 %v7030_v31  ;;  %2527 = vmatpush1.bf16.msra.mxu1 %v7033_v6  ;;  %v7327_v31 = vld [vmem:[#allocation9 + $0x64] ss:$16 sps:$4 sm:$0xff]   ;;  %v7333_v6 = vld [vmem:[#allocation9 + $0x60] ss:$16 sps:$4 sm:$0xff]  }
 0x471   : > { %2617 = vmatprep.subr.bf16.mxu0 %v7289_v27  ;;  %2660 = vmatprep.subr.bf16.mxu1 %v7292_v14  ;;  %8733 = vst [vmem:[#allocation52_spill] sm:$0xff] %v7327_v31  ;;  %8735 = vst [vmem:[#allocation54_spill] sm:$0xff] %v7333_v6 }
 0x473   : > { %2502 = vmatmul.mubr.bf16.vlgmr.msra.gmra.mrb[28].mxu0 %v5244_v8  ;;  %2545 = vmatmul.mubr.bf16.vlgmr.msra.gmra.mrb[28].mxu1 %v5244_v8 }
 0x474   : > { %2618 = vmatpush1.bf16.msra.mxu0 %v7295_v26  ;;  %2661 = vmatpush1.bf16.msra.mxu1 %v7298_v23 }
 0x475   : > { %2619 = vmatprep.subr.bf16.mxu0 %v7301_v9  ;;  %2662 = vmatprep.subr.bf16.mxu1 %v7304_v10 }
 0x476   : > { %2649 = vmatprep.mubr.bf16.mxu0 %v8601_v35  ;;  %2692 = vmatprep.mubr.bf16.mxu1 %v8601_v35 }
 0x478   : > { %2620 = vmatpush1.bf16.msra.mxu0 %v7309_v15  ;;  %2663 = vmatpush1.bf16.msra.mxu1 %v7312_v39 }
 0x479   : > { %2621 = vmatprep.subr.bf16.mxu0 %v7315_v4  ;;  %2664 = vmatprep.subr.bf16.mxu1 %v7318_v7 }
 0x47c   : > { %2622 = vmatpush1.bf16.msra.mxu0 %v7321_v17  ;;  %2665 = vmatpush1.bf16.msra.mxu1 %v7324_v11 }
 0x47d   : > { %2623 = vmatprep.subr.bf16.mxu0 %v7327_v31  ;;  %2666 = vmatprep.subr.bf16.mxu1 %v7330_v12 }
 0x480   : > { %2624 = vmatpush1.bf16.msra.mxu0 %v7333_v6  ;;  %2667 = vmatpush1.bf16.msra.mxu1 %v7336_v37 }
 0x481   : > { %2625 = vmatprep.subr.bf16.mxu0 %v7339_v60  ;;  %2668 = vmatprep.subr.bf16.mxu1 %v7342_v5 }
 0x484   : > { %2626 = vmatpush1.bf16.msra.mxu0 %v7345_v21  ;;  %2669 = vmatpush1.bf16.msra.mxu1 %v7348_v19 }
 0x485   : > { %2627 = vmatprep.subr.bf16.mxu0 %v7351_v25  ;;  %2670 = vmatprep.subr.bf16.mxu1 %v7354_v29 }
 0x488   : > { %2628 = vmatpush1.bf16.msra.mxu0 %v7357_v32  ;;  %2671 = vmatpush1.bf16.msra.mxu1 %v7360_v46 }
 0x489   : > { %2629 = vmatprep.subr.bf16.mxu0 %v7363_v47  ;;  %2672 = vmatprep.subr.bf16.mxu1 %v7366_v48 }
 0x48c   : > { %2630 = vmatpush1.bf16.msra.mxu0 %v7369_v36  ;;  %2673 = vmatpush1.bf16.msra.mxu1 %v7372_v13 }
 0x48d   : > { %2631 = vmatprep.subr.bf16.mxu0 %v7375_v30  ;;  %2674 = vmatprep.subr.bf16.mxu1 %v7378_v50 }
 0x490   : > { %2632 = vmatpush1.bf16.msra.mxu0 %v7381_v28  ;;  %2675 = vmatpush1.bf16.msra.mxu1 %v7384_v1 }
 0x491   : > { %2709 = vmatprep.subr.bf16.mxu0 %v7387_v2  ;;  %2752 = vmatprep.subr.bf16.mxu1 %v7390_v22 }
 0x506   : > { %v2263_v33 = vpop.f32.mrb[24].mxu0  ;;  %v2306_v52 = vpop.f32.mrb[24].mxu1 }
 0x507   : > { %v2315_v62 = vadd.f32 %v2263_v33, %v8696_v63  ;;  %v2265_v42 = vpop.f32.mrb[25].mxu0  ;;  %v2308_v43 = vpop.f32.mrb[25].mxu1  ;;  %v2317_v0 = vadd.f32 %v2306_v52, %v8699_v54 }
 0x508   : > { %v2316_v44 = vadd.f32 %v2265_v42, %v8697_v61  ;;  %v2267_v34 = vpop.f32.mrb[26].mxu0  ;;  %v2310_v3 = vpop.f32.mrb[26].mxu1  ;;  %v2318_v38 = vadd.f32 %v2308_v43, %v8698_v55 }
 0x509   : > { %v4805_v20 = vmul.f32 -1.442695, %v2315_v62  ;;  %v2319_v59 = vadd.f32 %v2267_v34, %v8696_v63  ;;  %v2269_v53 = vpop.f32.mrb[27].mxu0  ;;  %v2312_v45 = vpop.f32.mrb[27].mxu1  ;;  %v2321_v8 = vadd.f32 %v2310_v3, %v8699_v54 }
 0x50a   : > { %v4807_v18 = vmul.f32 -1.442695, %v2316_v44  ;;  %v2320_v40 = vadd.f32 %v2269_v53, %v8697_v61  ;;  %v4809_v57 = vmul.f32 -1.442695, %v2318_v38  ;;  %v2322_v49 = vadd.f32 %v2312_v45, %v8698_v55 }
 0x50b   : > { %5445 = vpow2.f32 %v4805_v20  ;;  %v4806_v41 = vmul.f32 -1.442695, %v2319_v59 }
 0x50c   : > { %5447 = vpow2.f32 %v4807_v18  ;;  %v4808_v16 = vmul.f32 -1.442695, %v2320_v40  ;;  %v4810_v44 = vmul.f32 -1.442695, %v2322_v49 }
 0x50d   : > { %5449 = vpow2.f32 %v4806_v41 }
 0x50e   : > { %5451 = vpow2.f32 %v4808_v16 }
 0x50f   : > { %5453 = vtanh.f32 %v2317_v0 }
 0x510   : > { %5455 = vpow2.f32 %v4809_v57 }
 0x511   : > { %5457 = vtanh.f32 %v2321_v8 }
 0x515   : > { %v5446_v33 = vpop.eup %5445 }
 0x516   : > { %v5448_v62 = vpop.eup %5447  ;;  %v2329_v42 = vadd.f32 1.0, %v5446_v33 }
 0x517   : > { %v2341_v34 = vadd.f32 1.0, %v5448_v62  ;;  %v5450_v20 = vpop.eup %5449 }
 0x518   : > { %5459 = vrcp.f32 %v2329_v42  ;;  %v2330_v43 = vadd.f32 1.0, %v5450_v20  ;;  %v5452_v59 = vpop.eup %5451 }
 0x519   : > { %5461 = vrcp.f32 %v2341_v34  ;;  %v2342_v52 = vadd.f32 1.0, %v5452_v59  ;;  %v5454_v53 = vpop.eup %5453 }
 0x51a   : > { %5463 = vpow2.f32 %v4810_v44  ;;  %v5456_v45 = vpop.eup %5455 }
 0x51b   : > { %5465 = vrcp.f32 %v2330_v43  ;;  %v5458_v3 = vpop.eup %5457  ;;  %v2355_v16 = vadd.f32 1.0, %v5456_v45  ;;  %v7411_v45 = vld [vmem:[#allocation7] ss:$16 sps:$4 sm:$0xff]  }
 0x51c   : > { %5467 = vrcp.f32 %v2342_v52 }
 0x51d   : > { %5469 = vrcp.f32 %v2355_v16  ;;  %v7431_v16 = vld [vmem:[#allocation7 + $0x44] ss:$16 sps:$4 sm:$0xff]  }
 0x522   : > { %v5460_v18 = vpop.eup %5459 }
 0x523   : > { %v5462_v40 = vpop.eup %5461  ;;  %v2363_v41 = vmul.f32 %v5460_v18, %v5454_v53  ;;  %v7420_v18 = vld [vmem:[#allocation7 + $0x2c] ss:$16 sps:$4 sm:$0xff]  }
 0x524   : > { %v5464_v38 = vpop.eup %5463  ;;  %v2361_v0 = vmul.f32 %v5462_v40, %v7160_v51  ;;  %v7425_v40 = vld [vmem:[#allocation7 + $0x20] ss:$16 sps:$4 sm:$0xff]  }
 0x525   : > { %v5466_v57 = vpop.eup %5465  ;;  %v2356_v62 = vadd.f32 1.0, %v5464_v38  ;;  %v7434_v38 = vld [vmem:[#allocation7 + $0x4c] ss:$16 sps:$4 sm:$0xff]  }
 0x526   : > { %v7402_v49 = vadd.f32 %v2363_v41, %v2361_v0  ;;  %v2364_v8 = vmul.f32 %v5466_v57, %v5458_v3  ;;  %v5468_v33 = vpop.eup %5467  ;;  %v7417_v3 = vld [vmem:[#allocation7 + $0x24] ss:$16 sps:$4 sm:$0xff]   ;;  %v7428_v41 = vld [vmem:[#allocation7 + $0x28] ss:$16 sps:$4 sm:$0xff]   ;;  %8757 = vst [vmem:[#allocation25_spill] sm:$0xff] %v7434_v38 }
 0x527   : > { %v2362_v42 = vmul.f32 %v5468_v33, %v7164_v56  ;;  %v5470_v34 = vpop.eup %5469  ;;  %v7414_v56 = vld [vmem:[#allocation7 + $0x8] ss:$16 sps:$4 sm:$0xff]   ;;  %v7437_v0 = vld [vmem:[#allocation7 + $0x40] ss:$16 sps:$4 sm:$0xff]   ;;  %v7446_v33 = vld [vmem:[#allocation7 + $0x6c] ss:$16 sps:$4 sm:$0xff]  }
 0x528   : > { %8755 = vst [vmem:[#allocation23_spill] sm:$0xff] %v7402_v49  ;;  %5471 = vtanh.f32 %v7402_v49  ;;  %8758 = vst [vmem:[#allocation26_spill] sm:$0xff] %v7437_v0  ;;  %v7440_v57 = vld [vmem:[#allocation7 + $0x48] ss:$16 sps:$4 sm:$0xff]  }
 0x529   : > { %v7406_v44 = vadd.f32 %v2364_v8, %v2362_v42  ;;  %5473 = vrcp.f32 %v2356_v62  ;;  %8759 = vst [vmem:[#allocation27_spill] sm:$0xff] %v7440_v57  ;;  %v7443_v8 = vld [vmem:[#allocation7 + $0x64] ss:$16 sps:$4 sm:$0xff]   ;;  %8761 = vst [vmem:[#allocation29_spill] sm:$0xff] %v7446_v33 }
 0x52a   : > { %8760 = vst [vmem:[#allocation28_spill] sm:$0xff] %v7443_v8 }
 0x52b   : > { %8756 = vst [vmem:[#allocation24_spill] sm:$0xff] %v7406_v44  ;;  %5475 = vtanh.f32 %v7406_v44 }
 0x532   : > { %v5472_v51 = vpop.eup %5471 }
 0x533   : > { %v2369_v20 = vmul.f32 %v5472_v51, %v5470_v34  ;;  %v5474_v43 = vpop.eup %5473 }
 0x535   : > { %4811 = vst [vmem:[%s6363_s12 + $0x60] sm:$0xff] %v2369_v20  ;;  %v5476_v59 = vpop.eup %5475 }
 0x536   : > { %v2370_v52 = vmul.f32 %v5476_v59, %v5474_v43  ;;  %v7450_v43 = vld [vmem:[#allocation7 + $0x60] ss:$16 sps:$4 sm:$0xff]   ;;  %v7453_v59 = vld [vmem:[#allocation7 + $0x68] ss:$16 sps:$4 sm:$0xff]  }
 0x537   : > { %8762 = vst [vmem:[#allocation30_spill] sm:$0xff] %v7450_v43  ;;  %8763 = vst [vmem:[#allocation31_spill] sm:$0xff] %v7453_v59 }
 0x538   : > { %4812 = vst [vmem:[%s6363_s12 + $0x68] sm:$0xff] %v2370_v52  ;;  %v2616_v53 = vpack.c.bf16 %v2370_v52, %v2369_v20 }
 0x53a   : > { %2650 = vmatmul.mubr.bf16.vlgmr.msra.gmra.mrb[32].mxu0 %v2616_v53  ;;  %2693 = vmatmul.mubr.bf16.vlgmr.msra.gmra.mrb[32].mxu1 %v2616_v53 }
 0x53b   : > { %2710 = vmatpush1.bf16.msra.mxu0 %v7411_v45  ;;  %2753 = vmatpush1.bf16.msra.mxu1 %v7414_v56 }
 0x53c   : > { %2711 = vmatprep.subr.bf16.mxu0 %v7417_v3  ;;  %2754 = vmatprep.subr.bf16.mxu1 %v7420_v18 }
 0x53d   : > { %2741 = vmatprep.mubr.bf16.mxu0 %v8601_v35  ;;  %2784 = vmatprep.mubr.bf16.mxu1 %v8601_v35 }
 0x53f   : > { %2712 = vmatpush1.bf16.msra.mxu0 %v7425_v40  ;;  %2755 = vmatpush1.bf16.msra.mxu1 %v7428_v41 }
 0x540   : > { %2713 = vmatprep.subr.bf16.mxu0 %v7431_v16  ;;  %2756 = vmatprep.subr.bf16.mxu1 %v7434_v38 }
 0x543   : > { %2714 = vmatpush1.bf16.msra.mxu0 %v7437_v0  ;;  %2757 = vmatpush1.bf16.msra.mxu1 %v7440_v57 }
 0x544   : > { %2715 = vmatprep.subr.bf16.mxu0 %v7443_v8  ;;  %2758 = vmatprep.subr.bf16.mxu1 %v7446_v33  ;;  %v7458_v8 = vld [vmem:[#allocation7 + $0x84] ss:$16 sps:$4 sm:$0xff]  }
 0x546   : > { %v2503_v62 = vpop.f32.mrb[28].mxu0  ;;  %v2546_v42 = vpop.f32.mrb[28].mxu1 }
 0x547   : > { %v2555_v34 = vadd.f32 %v2503_v62, %v8696_v63  ;;  %v2505_v51 = vpop.f32.mrb[29].mxu0  ;;  %v2548_v20 = vpop.f32.mrb[29].mxu1  ;;  %2716 = vmatpush1.bf16.msra.mxu0 %v7450_v43  ;;  %2759 = vmatpush1.bf16.msra.mxu1 %v7453_v59  ;;  %v7461_v62 = vld [vmem:[#allocation7 + $0x8c] ss:$16 sps:$4 sm:$0xff]  }
 0x548   : > { %v2556_v52 = vadd.f32 %v2505_v51, %v8697_v61  ;;  %v2507_v53 = vpop.f32.mrb[30].mxu0  ;;  %v2550_v44 = vpop.f32.mrb[30].mxu1  ;;  %2717 = vmatprep.subr.bf16.mxu0 %v7458_v8  ;;  %8764 = vst [vmem:[#allocation32_spill] sm:$0xff] %v7461_v62  ;;  %2760 = vmatprep.subr.bf16.mxu1 %v7461_v62  ;;  %v7474_v62 = vld [vmem:[#allocation7 + $0xac] ss:$16 sps:$4 sm:$0xff]  }
 0x549   : > { %v4816_v49 = vmul.f32 -1.442695, %v2555_v34  ;;  %v2559_v33 = vadd.f32 %v2507_v53, %v8696_v63  ;;  %v2509_v43 = vpop.f32.mrb[31].mxu0  ;;  %v2552_v57 = vpop.f32.mrb[31].mxu1  ;;  %v7465_v34 = vld [vmem:[#allocation7 + $0x80] ss:$16 sps:$4 sm:$0xff]  }
 0x54a   : > { %v4818_v0 = vmul.f32 -1.442695, %v2556_v52  ;;  %v2560_v59 = vadd.f32 %v2509_v43, %v8697_v61  ;;  %v7468_v53 = vld [vmem:[#allocation7 + $0x88] ss:$16 sps:$4 sm:$0xff]   ;;  %v7471_v63 = vld [vmem:[#allocation7 + $0xa4] ss:$16 sps:$4 sm:$0xff]   ;;  %v2557_v43 = vadd.f32 %v2546_v42, %v8699_v54 }
 0x54b   : > { %5477 = vpow2.f32 %v4816_v49  ;;  %v4817_v51 = vmul.f32 -1.442695, %v2559_v33  ;;  %2718 = vmatpush1.bf16.msra.mxu0 %v7465_v34  ;;  %2761 = vmatpush1.bf16.msra.mxu1 %v7468_v53  ;;  %v2558_v49 = vadd.f32 %v2548_v20, %v8698_v55  ;;  %v7481_v33 = vld [vmem:[#allocation7 + $0xa8] ss:$16 sps:$4 sm:$0xff]   ;;  %v7488_v52 = vld [vmem:[#allocation7 + $0xcc] ss:$16 sps:$4 sm:$0xff]  }
 0x54c   : > { %5479 = vpow2.f32 %v4818_v0  ;;  %v4819_v38 = vmul.f32 -1.442695, %v2560_v59  ;;  %2719 = vmatprep.subr.bf16.mxu0 %v7471_v63  ;;  %2762 = vmatprep.subr.bf16.mxu1 %v7474_v62  ;;  %v7478_v0 = vld [vmem:[#allocation7 + $0xa0] ss:$16 sps:$4 sm:$0xff]   ;;  %8765 = vst [vmem:[#allocation33_spill] sm:$0xff] %v7481_v33  ;;  %8767 = vst [vmem:[#allocation35_spill] sm:$0xff] %v7488_v52 }
 0x54d   : > { %5481 = vpow2.f32 %v4817_v51  ;;  %v7485_v59 = vld [vmem:[#allocation7 + $0xc4] ss:$16 sps:$4 sm:$0xff]   ;;  %v4820_v20 = vmul.f32 -1.442695, %v2558_v49  ;;  %v2561_v51 = vadd.f32 %v2550_v44, %v8699_v54  ;;  %v7493_v61 = vld [vmem:[#allocation7 + $0xc0] ss:$16 sps:$4 sm:$0xff]  }
 0x54e   : > { %5483 = vpow2.f32 %v4819_v38  ;;  %8766 = vst [vmem:[#allocation34_spill] sm:$0xff] %v7485_v59  ;;  %v2562_v38 = vadd.f32 %v2552_v57, %v8698_v55  ;;  %8768 = vst [vmem:[#allocation36_spill] sm:$0xff] %v7493_v61  ;;  %v7502_v49 = vld [vmem:[#allocation7 + $0xec] ss:$16 sps:$4 sm:$0xff]  }
 0x54f   : > { %2720 = vmatpush1.bf16.msra.mxu0 %v7478_v0  ;;  %2763 = vmatpush1.bf16.msra.mxu1 %v7481_v33  ;;  %v7496_v33 = vld [vmem:[#allocation7 + $0xc8] ss:$16 sps:$4 sm:$0xff]   ;;  %5485 = vtanh.f32 %v2557_v43 }
 0x550   : > { %2721 = vmatprep.subr.bf16.mxu0 %v7485_v59  ;;  %2764 = vmatprep.subr.bf16.mxu1 %v7488_v52  ;;  %8769 = vst [vmem:[#allocation37_spill] sm:$0xff] %v7496_v33  ;;  %v7499_v59 = vld [vmem:[#allocation7 + $0xe4] ss:$16 sps:$4 sm:$0xff]   ;;  %5487 = vpow2.f32 %v4820_v20  ;;  %v4821_v54 = vmul.f32 -1.442695, %v2562_v38 }
 0x551   : > { %8770 = vst [vmem:[#allocation42_spill] sm:$0xff] %v7499_v59  ;;  %5489 = vtanh.f32 %v2561_v51  ;;  %v7509_v43 = vld [vmem:[#allocation7 + $0xe8] ss:$16 sps:$4 sm:$0xff]  }
 0x553   : > { %2722 = vmatpush1.bf16.msra.mxu0 %v7493_v61  ;;  %2765 = vmatpush1.bf16.msra.mxu1 %v7496_v33  ;;  %v5245_v61 = vld [vmem:[%s6352_s9 + $0x40] sm:$0xff]  }
 0x554   : > { %2723 = vmatprep.subr.bf16.mxu0 %v7499_v59  ;;  %2766 = vmatprep.subr.bf16.mxu1 %v7502_v49  ;;  %v7506_v33 = vld [vmem:[#allocation7 + $0xe0] ss:$16 sps:$4 sm:$0xff]  }
 0x555   : > { %v5478_v42 = vpop.eup %5477 }
 0x556   : > { %v5480_v44 = vpop.eup %5479  ;;  %v2569_v57 = vadd.f32 1.0, %v5478_v42 }
 0x557   : > { %v2581_v55 = vadd.f32 1.0, %v5480_v44  ;;  %v5482_v52 = vpop.eup %5481  ;;  %2724 = vmatpush1.bf16.msra.mxu0 %v7506_v33  ;;  %2767 = vmatpush1.bf16.msra.mxu1 %v7509_v43 }
 0x558   : > { %5491 = vrcp.f32 %v2569_v57  ;;  %v2570_v59 = vadd.f32 1.0, %v5482_v52  ;;  %2857 = vmatprep.subr.bf16.mxu0 %v7289_v27  ;;  %2900 = vmatprep.subr.bf16.mxu1 %v7292_v14  ;;  %v5484_v20 = vpop.eup %5483 }
 0x559   : > { %5493 = vrcp.f32 %v2581_v55  ;;  %v2582_v38 = vadd.f32 1.0, %v5484_v20  ;;  %v5486_v55 = vpop.eup %5485 }
 0x55a   : > { %5495 = vpow2.f32 %v4821_v54  ;;  %2742 = vmatmul.mubr.bf16.vlgmr.msra.gmra.mrb[32].mxu0 %v5245_v61  ;;  %2785 = vmatmul.mubr.bf16.vlgmr.msra.gmra.mrb[32].mxu1 %v5245_v61  ;;  %v5488_v52 = vpop.eup %5487 }
 0x55b   : > { %5497 = vrcp.f32 %v2570_v59  ;;  %2858 = vmatpush1.bf16.msra.mxu0 %v7295_v26  ;;  %2901 = vmatpush1.bf16.msra.mxu1 %v7298_v23  ;;  %v5490_v54 = vpop.eup %5489  ;;  %v2595_v42 = vadd.f32 1.0, %v5488_v52 }
 0x55c   : > { %5499 = vrcp.f32 %v2582_v38  ;;  %2859 = vmatprep.subr.bf16.mxu0 %v7301_v9  ;;  %2902 = vmatprep.subr.bf16.mxu1 %v7304_v10 }
 0x55d   : > { %2889 = vmatprep.mubr.bf16.mxu0 %v8601_v35  ;;  %2932 = vmatprep.mubr.bf16.mxu1 %v8601_v35  ;;  %5501 = vrcp.f32 %v2595_v42  ;;  %v8775_v42 = vld [vmem:[#allocation27_spill] sm:$0xff] }
 0x55f   : > { %2860 = vmatpush1.bf16.msra.mxu0 %v7309_v15  ;;  %2903 = vmatpush1.bf16.msra.mxu1 %v7312_v39 }
 0x560   : > { %2861 = vmatprep.subr.bf16.mxu0 %v7315_v4  ;;  %2904 = vmatprep.subr.bf16.mxu1 %v7318_v7 }
 0x562   : > { %v5492_v61 = vpop.eup %5491 }
 0x563   : > { %v5494_v59 = vpop.eup %5493  ;;  %v2603_v51 = vmul.f32 %v5492_v61, %v5486_v55  ;;  %2862 = vmatpush1.bf16.msra.mxu0 %v7321_v17  ;;  %2905 = vmatpush1.bf16.msra.mxu1 %v7324_v11 }
 0x564   : > { %v5496_v44 = vpop.eup %5495  ;;  %v2601_v57 = vmul.f32 %v5494_v59, %v7227_v58  ;;  %2863 = vmatprep.subr.bf16.mxu0 %v7327_v31  ;;  %2906 = vmatprep.subr.bf16.mxu1 %v7330_v12  ;;  %v8773_v59 = vld [vmem:[#allocation25_spill] sm:$0xff] }
 0x565   : > { %v5498_v20 = vpop.eup %5497  ;;  %v2596_v39 = vadd.f32 1.0, %v5496_v44  ;;  %v8776_v44 = vld [vmem:[#allocation28_spill] sm:$0xff] }
 0x566   : > { %v7529_v38 = vadd.f32 %v2603_v51, %v2601_v57  ;;  %v2604_v4 = vmul.f32 %v5498_v20, %v5490_v54  ;;  %v5500_v7 = vpop.eup %5499  ;;  %v8774_v51 = vld [vmem:[#allocation26_spill] sm:$0xff]  ;;  %v8777_v57 = vld [vmem:[#allocation29_spill] sm:$0xff] }
 0x567   : > { %v2602_v55 = vmul.f32 %v5500_v7, %v7235_v24  ;;  %2864 = vmatpush1.bf16.msra.mxu0 %v7333_v6  ;;  %2907 = vmatpush1.bf16.msra.mxu1 %v7336_v37  ;;  %v5502_v24 = vpop.eup %5501  ;;  %v8778_v20 = vld [vmem:[#allocation30_spill] sm:$0xff] }
 0x568   : > { %8771 = vst [vmem:[#allocation43_spill] sm:$0xff] %v7529_v38  ;;  %5503 = vtanh.f32 %v7529_v38  ;;  %2865 = vmatprep.subr.bf16.mxu0 %v7339_v60  ;;  %2908 = vmatprep.subr.bf16.mxu1 %v7342_v5  ;;  %v8787_v38 = vld [vmem:[#allocation49_spill] sm:$0xff] }
 0x569   : > { %v7537_v58 = vadd.f32 %v2604_v4, %v2602_v55  ;;  %5505 = vrcp.f32 %v2596_v39  ;;  %v8779_v55 = vld [vmem:[#allocation31_spill] sm:$0xff] }
 0x56b   : > { %8772 = vst [vmem:[#allocation44_spill] sm:$0xff] %v7537_v58  ;;  %5507 = vtanh.f32 %v7537_v58  ;;  %2866 = vmatpush1.bf16.msra.mxu0 %v7345_v21  ;;  %2909 = vmatpush1.bf16.msra.mxu1 %v7348_v19  ;;  %v5246_v58 = vld [vmem:[%s6352_s9 + $0x48] sm:$0xff]  }
 0x56c   : > { %2867 = vmatprep.subr.bf16.mxu0 %v7351_v25  ;;  %2910 = vmatprep.subr.bf16.mxu1 %v7354_v29 }
 0x56f   : > { %2868 = vmatpush1.bf16.msra.mxu0 %v7357_v32  ;;  %2911 = vmatpush1.bf16.msra.mxu1 %v7360_v46 }
 0x570   : > { %2869 = vmatprep.subr.bf16.mxu0 %v7363_v47  ;;  %2912 = vmatprep.subr.bf16.mxu1 %v7366_v48 }
 0x572   : > { %v5504_v39 = vpop.eup %5503 }
 0x573   : > { %v2609_v4 = vmul.f32 %v5504_v39, %v5502_v24  ;;  %2870 = vmatpush1.bf16.msra.mxu0 %v7369_v36  ;;  %2913 = vmatpush1.bf16.msra.mxu1 %v7372_v13  ;;  %v5506_v7 = vpop.eup %5505  ;;  %v8780_v24 = vld [vmem:[#allocation32_spill] sm:$0xff]  ;;  %v8781_v39 = vld [vmem:[#allocation33_spill] sm:$0xff] }
 0x574   : > { %2871 = vmatprep.subr.bf16.mxu0 %v7375_v30  ;;  %2914 = vmatprep.subr.bf16.mxu1 %v7378_v50 }
 0x575   : > { %4822 = vst [vmem:[%s6363_s12 + $0x70] sm:$0xff] %v2609_v4  ;;  %v5508_v52 = vpop.eup %5507 }
 0x576   : > { %v2610_v54 = vmul.f32 %v5508_v52, %v5506_v7  ;;  %v8783_v7 = vld [vmem:[#allocation35_spill] sm:$0xff]  ;;  %v8784_v52 = vld [vmem:[#allocation36_spill] sm:$0xff] }
 0x577   : > { %2872 = vmatpush1.bf16.msra.mxu0 %v7381_v28  ;;  %2915 = vmatpush1.bf16.msra.mxu1 %v7384_v1 }
 0x578   : > { %2949 = vmatprep.subr.bf16.mxu0 %v7387_v2  ;;  %2992 = vmatprep.subr.bf16.mxu1 %v7390_v22  ;;  %4823 = vst [vmem:[%s6363_s12 + $0x78] sm:$0xff] %v2610_v54  ;;  %v2856_v61 = vpack.c.bf16 %v2610_v54, %v2609_v4  ;;  %v8782_v4 = vld [vmem:[#allocation34_spill] sm:$0xff]  ;;  %v8785_v54 = vld [vmem:[#allocation37_spill] sm:$0xff] }
 0x57a   : > { %2890 = vmatmul.mubr.bf16.vlgmr.msra.gmra.mrb[36].mxu0 %v2856_v61  ;;  %2933 = vmatmul.mubr.bf16.vlgmr.msra.gmra.mrb[36].mxu1 %v2856_v61  ;;  %v8786_v61 = vld [vmem:[#allocation42_spill] sm:$0xff] }
 0x57b   : > { %2950 = vmatpush1.bf16.msra.mxu0 %v7411_v45  ;;  %2993 = vmatpush1.bf16.msra.mxu1 %v7414_v56 }
 0x57c   : > { %2951 = vmatprep.subr.bf16.mxu0 %v7417_v3  ;;  %2994 = vmatprep.subr.bf16.mxu1 %v7420_v18 }
 0x57d   : > { %2981 = vmatprep.mubr.bf16.mxu0 %v8601_v35  ;;  %3024 = vmatprep.mubr.bf16.mxu1 %v8601_v35 }
 0x57f   : > { %2952 = vmatpush1.bf16.msra.mxu0 %v7425_v40  ;;  %2995 = vmatpush1.bf16.msra.mxu1 %v7428_v41 }
 0x580   : > { %2953 = vmatprep.subr.bf16.mxu0 %v7431_v16  ;;  %2996 = vmatprep.subr.bf16.mxu1 %v8773_v59 }
 0x583   : > { %2954 = vmatpush1.bf16.msra.mxu0 %v8774_v51  ;;  %2997 = vmatpush1.bf16.msra.mxu1 %v8775_v42 }
 0x584   : > { %2955 = vmatprep.subr.bf16.mxu0 %v8776_v44  ;;  %2998 = vmatprep.subr.bf16.mxu1 %v8777_v57 }
 0x587   : > { %2956 = vmatpush1.bf16.msra.mxu0 %v8778_v20  ;;  %2999 = vmatpush1.bf16.msra.mxu1 %v8779_v55 }
 0x588   : > { %2957 = vmatprep.subr.bf16.mxu0 %v7458_v8  ;;  %3000 = vmatprep.subr.bf16.mxu1 %v8780_v24 }
 0x58b   : > { %2958 = vmatpush1.bf16.msra.mxu0 %v7465_v34  ;;  %3001 = vmatpush1.bf16.msra.mxu1 %v7468_v53 }
 0x58c   : > { %2959 = vmatprep.subr.bf16.mxu0 %v7471_v63  ;;  %3002 = vmatprep.subr.bf16.mxu1 %v7474_v62 }
 0x58f   : > { %2960 = vmatpush1.bf16.msra.mxu0 %v7478_v0  ;;  %3003 = vmatpush1.bf16.msra.mxu1 %v8781_v39 }
 0x590   : > { %2961 = vmatprep.subr.bf16.mxu0 %v8782_v4  ;;  %3004 = vmatprep.subr.bf16.mxu1 %v8783_v7 }
 0x593   : > { %2962 = vmatpush1.bf16.msra.mxu0 %v8784_v52  ;;  %3005 = vmatpush1.bf16.msra.mxu1 %v8785_v54 }
 0x594   : > { %2963 = vmatprep.subr.bf16.mxu0 %v8786_v61  ;;  %3006 = vmatprep.subr.bf16.mxu1 %v7502_v49 }
 0x597   : > { %2964 = vmatpush1.bf16.msra.mxu0 %v7506_v33  ;;  %3007 = vmatpush1.bf16.msra.mxu1 %v7509_v43 }
 0x598   : > { %3097 = vmatprep.subr.bf16.mxu0 %v7289_v27  ;;  %3140 = vmatprep.subr.bf16.mxu1 %v7292_v14  ;;  %v8788_v27 = vld [vmem:[#allocation50_spill] sm:$0xff]  ;;  %v8789_v14 = vld [vmem:[#allocation51_spill] sm:$0xff] }
 0x59a   : > { %2982 = vmatmul.mubr.bf16.vlgmr.msra.gmra.mrb[36].mxu0 %v5246_v58  ;;  %3025 = vmatmul.mubr.bf16.vlgmr.msra.gmra.mrb[36].mxu1 %v5246_v58 }
 0x59b   : > { %3098 = vmatpush1.bf16.msra.mxu0 %v7295_v26  ;;  %3141 = vmatpush1.bf16.msra.mxu1 %v7298_v23 }
 0x59c   : > { %3099 = vmatprep.subr.bf16.mxu0 %v7301_v9  ;;  %3142 = vmatprep.subr.bf16.mxu1 %v7304_v10 }
 0x59d   : > { %3129 = vmatprep.mubr.bf16.mxu0 %v8601_v35  ;;  %3172 = vmatprep.mubr.bf16.mxu1 %v8601_v35 }
 0x59f   : > { %3100 = vmatpush1.bf16.msra.mxu0 %v7309_v15  ;;  %3143 = vmatpush1.bf16.msra.mxu1 %v8787_v38 }
 0x5a0   : > { %3101 = vmatprep.subr.bf16.mxu0 %v8788_v27  ;;  %3144 = vmatprep.subr.bf16.mxu1 %v8789_v14 }
 0x5a3   : > { %3102 = vmatpush1.bf16.msra.mxu0 %v7321_v17  ;;  %3145 = vmatpush1.bf16.msra.mxu1 %v7324_v11 }
 0x5a4   : > { %3103 = vmatprep.subr.bf16.mxu0 %v7327_v31  ;;  %3146 = vmatprep.subr.bf16.mxu1 %v7330_v12 }
 0x5a7   : > { %3104 = vmatpush1.bf16.msra.mxu0 %v7333_v6  ;;  %3147 = vmatpush1.bf16.msra.mxu1 %v7336_v37  ;;  %v8793_v37 = vld [vmem:[#allocation41_spill] sm:$0xff] }
 0x5a8   : > { %3105 = vmatprep.subr.bf16.mxu0 %v7339_v60  ;;  %3148 = vmatprep.subr.bf16.mxu1 %v7342_v5  ;;  %v8792_v60 = vld [vmem:[#allocation40_spill] sm:$0xff] }
 0x5ab   : > { %3106 = vmatpush1.bf16.msra.mxu0 %v7345_v21  ;;  %3149 = vmatpush1.bf16.msra.mxu1 %v7348_v19 }
 0x5ac   : > { %3107 = vmatprep.subr.bf16.mxu0 %v7351_v25  ;;  %3150 = vmatprep.subr.bf16.mxu1 %v7354_v29  ;;  %v8791_v29 = vld [vmem:[#allocation39_spill] sm:$0xff] }
 0x5af   : > { %3108 = vmatpush1.bf16.msra.mxu0 %v7357_v32  ;;  %3151 = vmatpush1.bf16.msra.mxu1 %v7360_v46  ;;  %v8790_v46 = vld [vmem:[#allocation38_spill] sm:$0xff] }
 0x5b0   : > { %3109 = vmatprep.subr.bf16.mxu0 %v7363_v47  ;;  %3152 = vmatprep.subr.bf16.mxu1 %v7366_v48 }
 0x5b3   : > { %3110 = vmatpush1.bf16.msra.mxu0 %v7369_v36  ;;  %3153 = vmatpush1.bf16.msra.mxu1 %v7372_v13 }
 0x5b4   : > { %3111 = vmatprep.subr.bf16.mxu0 %v7375_v30  ;;  %3154 = vmatprep.subr.bf16.mxu1 %v7378_v50 }
 0x5b7   : > { %3112 = vmatpush1.bf16.msra.mxu0 %v7381_v28  ;;  %3155 = vmatpush1.bf16.msra.mxu1 %v7384_v1 }
 0x5b8   : > { %3189 = vmatprep.subr.bf16.mxu0 %v7387_v2  ;;  %3232 = vmatprep.subr.bf16.mxu1 %v7390_v22 }
 0x62d   : > { %v2743_v58 = vpop.f32.mrb[32].mxu0  ;;  %v2786_v47 = vpop.f32.mrb[32].mxu1 }
 0x62e   : > { %v2795_v48 = vadd.f32 %v2743_v58, %v8790_v46  ;;  %v2745_v32 = vpop.f32.mrb[33].mxu0  ;;  %v2788_v36 = vpop.f32.mrb[33].mxu1 }
 0x62f   : > { %v2796_v13 = vadd.f32 %v2745_v32, %v8791_v29  ;;  %v2747_v25 = vpop.f32.mrb[34].mxu0  ;;  %v2790_v30 = vpop.f32.mrb[34].mxu1  ;;  %v2798_v58 = vadd.f32 %v2788_v36, %v8792_v60  ;;  %v2797_v32 = vadd.f32 %v2786_v47, %v8793_v37 }
 0x630   : > { %v4827_v19 = vmul.f32 -1.442695, %v2795_v48  ;;  %v2799_v50 = vadd.f32 %v2747_v25, %v8790_v46  ;;  %v2749_v28 = vpop.f32.mrb[35].mxu0  ;;  %v2792_v21 = vpop.f32.mrb[35].mxu1  ;;  %v2801_v25 = vadd.f32 %v2790_v30, %v8793_v37 }
 0x631   : > { %v4829_v1 = vmul.f32 -1.442695, %v2796_v13  ;;  %v2800_v2 = vadd.f32 %v2749_v28, %v8791_v29  ;;  %v4831_v6 = vmul.f32 -1.442695, %v2798_v58  ;;  %v2802_v48 = vadd.f32 %v2792_v21, %v8792_v60 }
 0x632   : > { %5509 = vpow2.f32 %v4827_v19  ;;  %v4828_v22 = vmul.f32 -1.442695, %v2799_v50 }
 0x633   : > { %5511 = vpow2.f32 %v4829_v1  ;;  %v4830_v5 = vmul.f32 -1.442695, %v2800_v2  ;;  %v4832_v19 = vmul.f32 -1.442695, %v2802_v48 }
 0x634   : > { %5513 = vpow2.f32 %v4828_v22 }
 0x635   : > { %5515 = vpow2.f32 %v4830_v5 }
 0x636   : > { %5517 = vtanh.f32 %v2797_v32  ;;  %v8794_v32 = vld [vmem:[#allocation23_spill] sm:$0xff] }
 0x637   : > { %5519 = vpow2.f32 %v4831_v6 }
 0x638   : > { %5521 = vtanh.f32 %v2801_v25 }
 0x63c   : > { %v5510_v12 = vpop.eup %5509 }
 0x63d   : > { %v5512_v13 = vpop.eup %5511  ;;  %v2809_v31 = vadd.f32 1.0, %v5510_v12 }
 0x63e   : > { %v2821_v50 = vadd.f32 1.0, %v5512_v13  ;;  %v5514_v28 = vpop.eup %5513 }
 0x63f   : > { %5523 = vrcp.f32 %v2809_v31  ;;  %v2810_v36 = vadd.f32 1.0, %v5514_v28  ;;  %v5516_v5 = vpop.eup %5515  ;;  %v8795_v28 = vld [vmem:[#allocation24_spill] sm:$0xff] }
 0x640   : > { %5525 = vrcp.f32 %v2821_v50  ;;  %v2822_v47 = vadd.f32 1.0, %v5516_v5  ;;  %v5518_v21 = vpop.eup %5517 }
 0x641   : > { %5527 = vpow2.f32 %v4832_v19  ;;  %v5520_v1 = vpop.eup %5519 }
 0x642   : > { %5529 = vrcp.f32 %v2810_v36  ;;  %v5522_v30 = vpop.eup %5521  ;;  %v2835_v12 = vadd.f32 1.0, %v5520_v1 }
 0x643   : > { %5531 = vrcp.f32 %v2822_v47 }
 0x644   : > { %5533 = vrcp.f32 %v2835_v12 }
 0x649   : > { %v5524_v2 = vpop.eup %5523 }
 0x64a   : > { %v5526_v22 = vpop.eup %5525  ;;  %v2843_v58 = vmul.f32 %v5524_v2, %v5518_v21 }
 0x64b   : > { %v5528_v6 = vpop.eup %5527  ;;  %v2841_v48 = vmul.f32 %v5526_v22, %v8794_v32 }
 0x64c   : > { %v5530_v25 = vpop.eup %5529  ;;  %v2836_v50 = vadd.f32 1.0, %v5528_v6 }
 0x64d   : > { %v7636_v31 = vadd.f32 %v2843_v58, %v2841_v48  ;;  %v2844_v13 = vmul.f32 %v5530_v25, %v5522_v30  ;;  %v5532_v19 = vpop.eup %5531 }
 0x64e   : > { %v2842_v36 = vmul.f32 %v5532_v19, %v8795_v28  ;;  %v5534_v47 = vpop.eup %5533 }
 0x64f   : > { %5535 = vtanh.f32 %v7636_v31 }
 0x650   : > { %v7640_v5 = vadd.f32 %v2844_v13, %v2842_v36  ;;  %5537 = vrcp.f32 %v2836_v50 }
 0x652   : > { %5539 = vtanh.f32 %v7640_v5 }
 0x659   : > { %v5536_v21 = vpop.eup %5535 }
 0x65a   : > { %v2849_v1 = vmul.f32 %v5536_v21, %v5534_v47  ;;  %v5538_v2 = vpop.eup %5537 }
 0x65c   : > { %4833 = vst [vmem:[%s6363_s12 + $0x80] sm:$0xff] %v2849_v1  ;;  %v5540_v22 = vpop.eup %5539 }
 0x65d   : > { %v2850_v30 = vmul.f32 %v5540_v22, %v5538_v2 }
 0x65f   : > { %4834 = vst [vmem:[%s6363_s12 + $0x88] sm:$0xff] %v2850_v30  ;;  %v3096_v58 = vpack.c.bf16 %v2850_v30, %v2849_v1 }
 0x661   : > { %3130 = vmatmul.mubr.bf16.vlgmr.msra.gmra.mrb[40].mxu0 %v3096_v58  ;;  %3173 = vmatmul.mubr.bf16.vlgmr.msra.gmra.mrb[40].mxu1 %v3096_v58 }
 0x662   : > { %3190 = vmatpush1.bf16.msra.mxu0 %v7411_v45  ;;  %3233 = vmatpush1.bf16.msra.mxu1 %v7414_v56 }
 0x663   : > { %3191 = vmatprep.subr.bf16.mxu0 %v7417_v3  ;;  %3234 = vmatprep.subr.bf16.mxu1 %v7420_v18 }
 0x664   : > { %3221 = vmatprep.mubr.bf16.mxu0 %v8601_v35  ;;  %3264 = vmatprep.mubr.bf16.mxu1 %v8601_v35 }
 0x666   : > { %3192 = vmatpush1.bf16.msra.mxu0 %v7425_v40  ;;  %3235 = vmatpush1.bf16.msra.mxu1 %v7428_v41 }
 0x667   : > { %3193 = vmatprep.subr.bf16.mxu0 %v7431_v16  ;;  %3236 = vmatprep.subr.bf16.mxu1 %v8773_v59 }
 0x66a   : > { %3194 = vmatpush1.bf16.msra.mxu0 %v8774_v51  ;;  %3237 = vmatpush1.bf16.msra.mxu1 %v8775_v42 }
 0x66b   : > { %3195 = vmatprep.subr.bf16.mxu0 %v8776_v44  ;;  %3238 = vmatprep.subr.bf16.mxu1 %v8777_v57 }
 0x66d   : > { %v2983_v12 = vpop.f32.mrb[36].mxu0  ;;  %v3026_v6 = vpop.f32.mrb[36].mxu1 }
 0x66e   : > { %v3035_v32 = vadd.f32 %v2983_v12, %v8790_v46  ;;  %v2985_v48 = vpop.f32.mrb[37].mxu0  ;;  %v3028_v25 = vpop.f32.mrb[37].mxu1  ;;  %3196 = vmatpush1.bf16.msra.mxu0 %v8778_v20  ;;  %3239 = vmatpush1.bf16.msra.mxu1 %v8779_v55  ;;  %v3037_v12 = vadd.f32 %v3026_v6, %v8793_v37 }
 0x66f   : > { %v3036_v13 = vadd.f32 %v2985_v48, %v8791_v29  ;;  %v2987_v19 = vpop.f32.mrb[38].mxu0  ;;  %v3030_v50 = vpop.f32.mrb[38].mxu1  ;;  %3197 = vmatprep.subr.bf16.mxu0 %v7458_v8  ;;  %3240 = vmatprep.subr.bf16.mxu1 %v8780_v24  ;;  %v3038_v58 = vadd.f32 %v3028_v25, %v8792_v60 }
 0x670   : > { %v4838_v28 = vmul.f32 -1.442695, %v3035_v32  ;;  %v3039_v36 = vadd.f32 %v2987_v19, %v8790_v46  ;;  %v2989_v47 = vpop.f32.mrb[39].mxu0  ;;  %v3032_v21 = vpop.f32.mrb[39].mxu1 }
 0x671   : > { %v4840_v1 = vmul.f32 -1.442695, %v3036_v13  ;;  %v3040_v2 = vadd.f32 %v2989_v47, %v8791_v29  ;;  %v4842_v32 = vmul.f32 -1.442695, %v3038_v58  ;;  %v3042_v48 = vadd.f32 %v3032_v21, %v8792_v60  ;;  %v5247_v47 = vld [vmem:[%s6352_s9 + $0x50] sm:$0xff]  }
 0x672   : > { %5541 = vpow2.f32 %v4838_v28  ;;  %v4839_v22 = vmul.f32 -1.442695, %v3039_v36  ;;  %3198 = vmatpush1.bf16.msra.mxu0 %v7465_v34  ;;  %3241 = vmatpush1.bf16.msra.mxu1 %v7468_v53  ;;  %v3041_v13 = vadd.f32 %v3030_v50, %v8793_v37 }
 0x673   : > { %5543 = vpow2.f32 %v4840_v1  ;;  %v4841_v30 = vmul.f32 -1.442695, %v3040_v2  ;;  %3199 = vmatprep.subr.bf16.mxu0 %v7471_v63  ;;  %3242 = vmatprep.subr.bf16.mxu1 %v7474_v62  ;;  %v4843_v28 = vmul.f32 -1.442695, %v3042_v48  ;;  %v8796_v1 = vld [vmem:[#allocation47_spill] sm:$0xff]  ;;  %v8797_v2 = vld [vmem:[#allocation48_spill] sm:$0xff] }
 0x674   : > { %5545 = vpow2.f32 %v4839_v22 }
 0x675   : > { %5547 = vpow2.f32 %v4841_v30 }
 0x676   : > { %3200 = vmatpush1.bf16.msra.mxu0 %v7478_v0  ;;  %3243 = vmatpush1.bf16.msra.mxu1 %v8781_v39  ;;  %5549 = vtanh.f32 %v3037_v12 }
 0x677   : > { %3201 = vmatprep.subr.bf16.mxu0 %v8782_v4  ;;  %3244 = vmatprep.subr.bf16.mxu1 %v8783_v7  ;;  %5551 = vpow2.f32 %v4842_v32 }
 0x678   : > { %5553 = vtanh.f32 %v3041_v13  ;;  %v8798_v13 = vld [vmem:[#allocation43_spill] sm:$0xff] }
 0x67a   : > { %3202 = vmatpush1.bf16.msra.mxu0 %v8784_v52  ;;  %3245 = vmatpush1.bf16.msra.mxu1 %v8785_v54 }
 0x67b   : > { %3203 = vmatprep.subr.bf16.mxu0 %v8786_v61  ;;  %3246 = vmatprep.subr.bf16.mxu1 %v7502_v49 }
 0x67c   : > { %v5542_v25 = vpop.eup %5541 }
 0x67d   : > { %v5544_v6 = vpop.eup %5543  ;;  %v3049_v19 = vadd.f32 1.0, %v5542_v25 }
 0x67e   : > { %v3061_v36 = vadd.f32 1.0, %v5544_v6  ;;  %v5546_v21 = vpop.eup %5545  ;;  %3204 = vmatpush1.bf16.msra.mxu0 %v7506_v33  ;;  %3247 = vmatpush1.bf16.msra.mxu1 %v7509_v43 }
 0x67f   : > { %5555 = vrcp.f32 %v3049_v19  ;;  %v3050_v50 = vadd.f32 1.0, %v5546_v21  ;;  %3337 = vmatprep.subr.bf16.mxu0 %v8796_v1  ;;  %3380 = vmatprep.subr.bf16.mxu1 %v8797_v2  ;;  %v5548_v22 = vpop.eup %5547  ;;  %v8802_v21 = vld [vmem:[#allocation54_spill] sm:$0xff] }
 0x680   : > { %5557 = vrcp.f32 %v3061_v36  ;;  %v3062_v30 = vadd.f32 1.0, %v5548_v22  ;;  %v5550_v58 = vpop.eup %5549  ;;  %v8801_v36 = vld [vmem:[#allocation44_spill] sm:$0xff]  ;;  %v8806_v2 = vld [vmem:[#allocation58_spill] sm:$0xff]  ;;  %v8807_v22 = vld [vmem:[#allocation59_spill] sm:$0xff] }
 0x681   : > { %5559 = vpow2.f32 %v4843_v28  ;;  %3222 = vmatmul.mubr.bf16.vlgmr.msra.gmra.mrb[40].mxu0 %v5247_v47  ;;  %3265 = vmatmul.mubr.bf16.vlgmr.msra.gmra.mrb[40].mxu1 %v5247_v47  ;;  %v5552_v12 = vpop.eup %5551 }
 0x682   : > { %5561 = vrcp.f32 %v3050_v50  ;;  %3338 = vmatpush1.bf16.msra.mxu0 %v7295_v26  ;;  %3381 = vmatpush1.bf16.msra.mxu1 %v7298_v23  ;;  %v5554_v32 = vpop.eup %5553  ;;  %v3075_v48 = vadd.f32 1.0, %v5552_v12  ;;  %v8805_v50 = vld [vmem:[#allocation57_spill] sm:$0xff] }
 0x683   : > { %5563 = vrcp.f32 %v3062_v30  ;;  %3339 = vmatprep.subr.bf16.mxu0 %v7301_v9  ;;  %3382 = vmatprep.subr.bf16.mxu1 %v7304_v10  ;;  %v8808_v30 = vld [vmem:[#allocation60_spill] sm:$0xff]  ;;  %v8810_v12 = vld [vmem:[#allocation17_spill] sm:$0xff] }
 0x684   : > { %3369 = vmatprep.mubr.bf16.mxu0 %v8601_v35  ;;  %3412 = vmatprep.mubr.bf16.mxu1 %v8601_v35  ;;  %5565 = vrcp.f32 %v3075_v48 }
 0x686   : > { %3340 = vmatpush1.bf16.msra.mxu0 %v7309_v15  ;;  %3383 = vmatpush1.bf16.msra.mxu1 %v8787_v38  ;;  %v8799_v15 = vld [vmem:[#allocation52_spill] sm:$0xff]  ;;  %v8800_v38 = vld [vmem:[#allocation53_spill] sm:$0xff] }
 0x687   : > { %3341 = vmatprep.subr.bf16.mxu0 %v8788_v27  ;;  %3384 = vmatprep.subr.bf16.mxu1 %v8789_v14 }
 0x689   : > { %v5556_v26 = vpop.eup %5555 }
 0x68a   : > { %v5558_v23 = vpop.eup %5557  ;;  %v3083_v9 = vmul.f32 %v5556_v26, %v5550_v58  ;;  %3342 = vmatpush1.bf16.msra.mxu0 %v7321_v17  ;;  %3385 = vmatpush1.bf16.msra.mxu1 %v7324_v11  ;;  %v8803_v17 = vld [vmem:[#allocation55_spill] sm:$0xff]  ;;  %v8804_v11 = vld [vmem:[#allocation56_spill] sm:$0xff] }
 0x68b   : > { %v5560_v10 = vpop.eup %5559  ;;  %v3081_v25 = vmul.f32 %v5558_v23, %v8798_v13  ;;  %3343 = vmatprep.subr.bf16.mxu0 %v8799_v15  ;;  %3386 = vmatprep.subr.bf16.mxu1 %v8800_v38  ;;  %v8809_v58 = vld [vmem:[#allocation16_spill] sm:$0xff]  ;;  %v8812_v23 = vld [vmem:[#allocation45_spill] sm:$0xff]  ;;  %v8814_v13 = vld [vmem:[#allocation14_spill] sm:$0xff] }
 0x68c   : > { %v5562_v6 = vpop.eup %5561  ;;  %v3076_v28 = vadd.f32 1.0, %v5560_v10  ;;  %v8816_v15 = vld [vmem:[#allocation61_spill] sm:$0xff]  ;;  %v8817_v38 = vld [vmem:[#allocation19_spill] sm:$0xff] }
 0x68d   : > { %v7703_v19 = vadd.f32 %v3083_v9, %v3081_v25  ;;  %v3084_v27 = vmul.f32 %v5562_v6, %v5554_v32  ;;  %v5564_v14 = vpop.eup %5563  ;;  %v8811_v32 = vld [vmem:[#allocation18_spill] sm:$0xff]  ;;  %v8815_v25 = vld [vmem:[#allocation15_spill] sm:$0xff] }
 0x68e   : > { %v3082_v47 = vmul.f32 %v5564_v14, %v8801_v36  ;;  %3344 = vmatpush1.bf16.msra.mxu0 %v8802_v21  ;;  %3387 = vmatpush1.bf16.msra.mxu1 %v8803_v17  ;;  %v5566_v26 = vpop.eup %5565  ;;  %v8813_v9 = vld [vmem:[#allocation46_spill] sm:$0xff] }
 0x68f   : > { %5567 = vtanh.f32 %v7703_v19  ;;  %3345 = vmatprep.subr.bf16.mxu0 %v8804_v11  ;;  %3388 = vmatprep.subr.bf16.mxu1 %v8805_v50  ;;  %v8819_v36 = vld [vmem:[#allocation62_spill] sm:$0xff]  ;;  %v7854_v11 = vld [vmem:[#allocation9 + $0xec] ss:$16 sps:$4 sm:$0xff]  }
 0x690   : > { %v7711_v1 = vadd.f32 %v3084_v27, %v3082_v47  ;;  %5569 = vrcp.f32 %v3076_v28  ;;  %v8818_v28 = vld [vmem:[#allocation20_spill] sm:$0xff]  ;;  %v8820_v47 = vld [vmem:[#allocation21_spill] sm:$0xff]  ;;  %v8821_v21 = vld [vmem:[#allocation22_spill] sm:$0xff]  ;;  %8844 = vst [vmem:[#allocation52_spill] sm:$0xff] %v7854_v11 }
 0x691   : > { %v7857_v50 = vld [vmem:[#allocation9 + $0xe0] ss:$16 sps:$4 sm:$0xff]  }
 0x692   : > { %5571 = vtanh.f32 %v7711_v1  ;;  %3346 = vmatpush1.bf16.msra.mxu0 %v8806_v2  ;;  %3389 = vmatpush1.bf16.msra.mxu1 %v8807_v22  ;;  %8845 = vst [vmem:[#allocation53_spill] sm:$0xff] %v7857_v50  ;;  %v7860_v2 = vld [vmem:[#allocation9 + $0xe8] ss:$16 sps:$4 sm:$0xff]   ;;  %v7863_v22 = vld [vmem:[#allocation7 + $0x4] ss:$16 sps:$4 sm:$0xff]  }
 0x693   : > { %3347 = vmatprep.subr.bf16.mxu0 %v8808_v30  ;;  %3390 = vmatprep.subr.bf16.mxu1 %v8809_v58  ;;  %8846 = vst [vmem:[#allocation44_spill] sm:$0xff] %v7860_v2  ;;  %8847 = vst [vmem:[#allocation54_spill] sm:$0xff] %v7863_v22  ;;  %v7866_v30 = vld [vmem:[#allocation7 + $0xc] ss:$16 sps:$4 sm:$0xff]  }
 0x694   : > { %8848 = vst [vmem:[#allocation55_spill] sm:$0xff] %v7866_v30 }
 0x696   : > { %3348 = vmatpush1.bf16.msra.mxu0 %v8810_v12  ;;  %3391 = vmatpush1.bf16.msra.mxu1 %v8811_v32 }
 0x697   : > { %3349 = vmatprep.subr.bf16.mxu0 %v8812_v23  ;;  %3392 = vmatprep.subr.bf16.mxu1 %v8813_v9 }
 0x699   : > { %v5568_v48 = vpop.eup %5567 }
 0x69a   : > { %v3089_v10 = vmul.f32 %v5568_v48, %v5566_v26  ;;  %3350 = vmatpush1.bf16.msra.mxu0 %v8814_v13  ;;  %3393 = vmatpush1.bf16.msra.mxu1 %v8815_v25  ;;  %v5570_v6 = vpop.eup %5569 }
 0x69b   : > { %3351 = vmatprep.subr.bf16.mxu0 %v8816_v15  ;;  %3394 = vmatprep.subr.bf16.mxu1 %v8817_v38 }
 0x69c   : > { %4844 = vst [vmem:[%s6363_s12 + $0x90] sm:$0xff] %v3089_v10  ;;  %v5572_v27 = vpop.eup %5571 }
 0x69d   : > { %v3090_v14 = vmul.f32 %v5572_v27, %v5570_v6 }
 0x69e   : > { %3352 = vmatpush1.bf16.msra.mxu0 %v8818_v28  ;;  %3395 = vmatpush1.bf16.msra.mxu1 %v8819_v36 }
 0x69f   : > { %3429 = vmatprep.subr.bf16.mxu0 %v8820_v47  ;;  %3472 = vmatprep.subr.bf16.mxu1 %v8821_v21  ;;  %4845 = vst [vmem:[%s6363_s12 + $0x98] sm:$0xff] %v3090_v14  ;;  %v3336_v17 = vpack.c.bf16 %v3090_v14, %v3089_v10 }
 0x6a1   : > { %3370 = vmatmul.mubr.bf16.vlgmr.msra.gmra.mrb[44].mxu0 %v3336_v17  ;;  %3413 = vmatmul.mubr.bf16.vlgmr.msra.gmra.mrb[44].mxu1 %v3336_v17 }
 0x6a2   : > { %3430 = vmatpush1.bf16.msra.mxu0 %v7411_v45  ;;  %3473 = vmatpush1.bf16.msra.mxu1 %v7414_v56  ;;  %v5248_v45 = vld [vmem:[%s6352_s9 + $0x58] sm:$0xff]  }
 0x6a3   : > { %3431 = vmatprep.subr.bf16.mxu0 %v7417_v3  ;;  %3474 = vmatprep.subr.bf16.mxu1 %v7420_v18  ;;  %v7768_v56 = vld [vmem:[#allocation9 + $0xc] ss:$16 sps:$4 sm:$0xff]   ;;  %v7771_v3 = vld [vmem:[#allocation9] ss:$16 sps:$4 sm:$0xff]   ;;  %v7774_v18 = vld [vmem:[#allocation9 + $0x8] ss:$16 sps:$4 sm:$0xff]  }
 0x6a4   : > { %3461 = vmatprep.mubr.bf16.mxu0 %v8601_v35  ;;  %3504 = vmatprep.mubr.bf16.mxu1 %v8601_v35  ;;  %8823 = vst [vmem:[#allocation26_spill] sm:$0xff] %v7768_v56 }
 0x6a6   : > { %3432 = vmatpush1.bf16.msra.mxu0 %v7425_v40  ;;  %3475 = vmatpush1.bf16.msra.mxu1 %v7428_v41  ;;  %v7777_v40 = vld [vmem:[#allocation9 + $0x24] ss:$16 sps:$4 sm:$0xff]   ;;  %v7780_v41 = vld [vmem:[#allocation9 + $0x2c] ss:$16 sps:$4 sm:$0xff]  }
 0x6a7   : > { %3433 = vmatprep.subr.bf16.mxu0 %v7431_v16  ;;  %3476 = vmatprep.subr.bf16.mxu1 %v8773_v59  ;;  %v7785_v16 = vld [vmem:[#allocation9 + $0x20] ss:$16 sps:$4 sm:$0xff]   ;;  %v7812_v59 = vld [vmem:[#allocation9 + $0x68] ss:$16 sps:$4 sm:$0xff]  }
 0x6a8   : > { %8830 = vst [vmem:[#allocation33_spill] sm:$0xff] %v7812_v59 }
 0x6aa   : > { %3434 = vmatpush1.bf16.msra.mxu0 %v8774_v51  ;;  %3477 = vmatpush1.bf16.msra.mxu1 %v8775_v42  ;;  %v7815_v51 = vld [vmem:[#allocation9 + $0x84] ss:$16 sps:$4 sm:$0xff]   ;;  %v7818_v42 = vld [vmem:[#allocation9 + $0x8c] ss:$16 sps:$4 sm:$0xff]  }
 0x6ab   : > { %3435 = vmatprep.subr.bf16.mxu0 %v8776_v44  ;;  %3478 = vmatprep.subr.bf16.mxu1 %v8777_v57  ;;  %8831 = vst [vmem:[#allocation34_spill] sm:$0xff] %v7815_v51  ;;  %8832 = vst [vmem:[#allocation35_spill] sm:$0xff] %v7818_v42  ;;  %v7821_v44 = vld [vmem:[#allocation9 + $0x80] ss:$16 sps:$4 sm:$0xff]   ;;  %v7824_v57 = vld [vmem:[#allocation9 + $0x88] ss:$16 sps:$4 sm:$0xff]  }
 0x6ac   : > { %8833 = vst [vmem:[#allocation36_spill] sm:$0xff] %v7821_v44  ;;  %8834 = vst [vmem:[#allocation37_spill] sm:$0xff] %v7824_v57 }
 0x6ae   : > { %3436 = vmatpush1.bf16.msra.mxu0 %v8778_v20  ;;  %3479 = vmatpush1.bf16.msra.mxu1 %v8779_v55  ;;  %v7827_v20 = vld [vmem:[#allocation9 + $0xa4] ss:$16 sps:$4 sm:$0xff]   ;;  %v7830_v55 = vld [vmem:[#allocation9 + $0xac] ss:$16 sps:$4 sm:$0xff]  }
 0x6af   : > { %3437 = vmatprep.subr.bf16.mxu0 %v7458_v8  ;;  %3480 = vmatprep.subr.bf16.mxu1 %v8780_v24  ;;  %v7788_v8 = vld [vmem:[#allocation9 + $0x28] ss:$16 sps:$4 sm:$0xff]   ;;  %8835 = vst [vmem:[#allocation42_spill] sm:$0xff] %v7827_v20  ;;  %8836 = vst [vmem:[#allocation49_spill] sm:$0xff] %v7830_v55  ;;  %v7833_v24 = vld [vmem:[#allocation9 + $0xa0] ss:$16 sps:$4 sm:$0xff]  }
 0x6b0   : > { %8824 = vst [vmem:[#allocation27_spill] sm:$0xff] %v7788_v8  ;;  %8837 = vst [vmem:[#allocation50_spill] sm:$0xff] %v7833_v24 }
 0x6b2   : > { %3438 = vmatpush1.bf16.msra.mxu0 %v7465_v34  ;;  %3481 = vmatpush1.bf16.msra.mxu1 %v7468_v53  ;;  %v7794_v34 = vld [vmem:[#allocation9 + $0x4c] ss:$16 sps:$4 sm:$0xff]   ;;  %v7797_v53 = vld [vmem:[#allocation9 + $0x40] ss:$16 sps:$4 sm:$0xff]  }
 0x6b3   : > { %3439 = vmatprep.subr.bf16.mxu0 %v7471_v63  ;;  %3482 = vmatprep.subr.bf16.mxu1 %v7474_v62  ;;  %v7765_v63 = vld [vmem:[#allocation9 + $0x4] ss:$16 sps:$4 sm:$0xff]   ;;  %8826 = vst [vmem:[#allocation29_spill] sm:$0xff] %v7794_v34 }
 0x6b4   : > { %8822 = vst [vmem:[#allocation25_spill] sm:$0xff] %v7765_v63  ;;  %v7791_v62 = vld [vmem:[#allocation9 + $0x44] ss:$16 sps:$4 sm:$0xff]  }
 0x6b5   : > { %8825 = vst [vmem:[#allocation28_spill] sm:$0xff] %v7791_v62 }
 0x6b6   : > { %3440 = vmatpush1.bf16.msra.mxu0 %v7478_v0  ;;  %3483 = vmatpush1.bf16.msra.mxu1 %v8781_v39  ;;  %v7800_v0 = vld [vmem:[#allocation9 + $0x48] ss:$16 sps:$4 sm:$0xff]  }
 0x6b7   : > { %3441 = vmatprep.subr.bf16.mxu0 %v8782_v4  ;;  %3484 = vmatprep.subr.bf16.mxu1 %v8783_v7  ;;  %v7836_v39 = vld [vmem:[#allocation9 + $0xa8] ss:$16 sps:$4 sm:$0xff]   ;;  %v7839_v4 = vld [vmem:[#allocation9 + $0xc4] ss:$16 sps:$4 sm:$0xff]   ;;  %v7842_v7 = vld [vmem:[#allocation9 + $0xcc] ss:$16 sps:$4 sm:$0xff]  }
 0x6b8   : > { %8838 = vst [vmem:[#allocation51_spill] sm:$0xff] %v7836_v39  ;;  %8839 = vst [vmem:[#allocation23_spill] sm:$0xff] %v7839_v4 }
 0x6b9   : > { %8840 = vst [vmem:[#allocation24_spill] sm:$0xff] %v7842_v7 }
 0x6ba   : > { %3442 = vmatpush1.bf16.msra.mxu0 %v8784_v52  ;;  %3485 = vmatpush1.bf16.msra.mxu1 %v8785_v54  ;;  %v7845_v52 = vld [vmem:[#allocation9 + $0xc0] ss:$16 sps:$4 sm:$0xff]   ;;  %v7848_v54 = vld [vmem:[#allocation9 + $0xc8] ss:$16 sps:$4 sm:$0xff]  }
 0x6bb   : > { %3443 = vmatprep.subr.bf16.mxu0 %v8786_v61  ;;  %3486 = vmatprep.subr.bf16.mxu1 %v7502_v49  ;;  %v7806_v49 = vld [vmem:[#allocation9 + $0x6c] ss:$16 sps:$4 sm:$0xff]   ;;  %8841 = vst [vmem:[#allocation47_spill] sm:$0xff] %v7845_v52  ;;  %8842 = vst [vmem:[#allocation48_spill] sm:$0xff] %v7848_v54  ;;  %v7851_v61 = vld [vmem:[#allocation9 + $0xe4] ss:$16 sps:$4 sm:$0xff]  }
 0x6bc   : > { %8828 = vst [vmem:[#allocation31_spill] sm:$0xff] %v7806_v49  ;;  %8843 = vst [vmem:[#allocation43_spill] sm:$0xff] %v7851_v61 }
 0x6be   : > { %3444 = vmatpush1.bf16.msra.mxu0 %v7506_v33  ;;  %3487 = vmatpush1.bf16.msra.mxu1 %v7509_v43  ;;  %v7803_v33 = vld [vmem:[#allocation9 + $0x64] ss:$16 sps:$4 sm:$0xff]   ;;  %v7809_v43 = vld [vmem:[#allocation9 + $0x60] ss:$16 sps:$4 sm:$0xff]  }
 0x6bf   : > { %3577 = vmatprep.subr.bf16.mxu0 %v7765_v63  ;;  %3620 = vmatprep.subr.bf16.mxu1 %v7768_v56  ;;  %8827 = vst [vmem:[#allocation30_spill] sm:$0xff] %v7803_v33  ;;  %8829 = vst [vmem:[#allocation32_spill] sm:$0xff] %v7809_v43 }
 0x6c1   : > { %3462 = vmatmul.mubr.bf16.vlgmr.msra.gmra.mrb[44].mxu0 %v5248_v45  ;;  %3505 = vmatmul.mubr.bf16.vlgmr.msra.gmra.mrb[44].mxu1 %v5248_v45 }
 0x6c2   : > { %3578 = vmatpush1.bf16.msra.mxu0 %v7771_v3  ;;  %3621 = vmatpush1.bf16.msra.mxu1 %v7774_v18 }
 0x6c3   : > { %3579 = vmatprep.subr.bf16.mxu0 %v7777_v40  ;;  %3622 = vmatprep.subr.bf16.mxu1 %v7780_v41 }
 0x6c4   : > { %3609 = vmatprep.mubr.bf16.mxu0 %v8601_v35  ;;  %3652 = vmatprep.mubr.bf16.mxu1 %v8601_v35 }
 0x6c6   : > { %3580 = vmatpush1.bf16.msra.mxu0 %v7785_v16  ;;  %3623 = vmatpush1.bf16.msra.mxu1 %v7788_v8 }
 0x6c7   : > { %3581 = vmatprep.subr.bf16.mxu0 %v7791_v62  ;;  %3624 = vmatprep.subr.bf16.mxu1 %v7794_v34 }
 0x6ca   : > { %3582 = vmatpush1.bf16.msra.mxu0 %v7797_v53  ;;  %3625 = vmatpush1.bf16.msra.mxu1 %v7800_v0 }
 0x6cb   : > { %3583 = vmatprep.subr.bf16.mxu0 %v7803_v33  ;;  %3626 = vmatprep.subr.bf16.mxu1 %v7806_v49 }
 0x6ce   : > { %3584 = vmatpush1.bf16.msra.mxu0 %v7809_v43  ;;  %3627 = vmatpush1.bf16.msra.mxu1 %v7812_v59 }
 0x6cf   : > { %3585 = vmatprep.subr.bf16.mxu0 %v7815_v51  ;;  %3628 = vmatprep.subr.bf16.mxu1 %v7818_v42 }
 0x6d2   : > { %3586 = vmatpush1.bf16.msra.mxu0 %v7821_v44  ;;  %3629 = vmatpush1.bf16.msra.mxu1 %v7824_v57 }
 0x6d3   : > { %3587 = vmatprep.subr.bf16.mxu0 %v7827_v20  ;;  %3630 = vmatprep.subr.bf16.mxu1 %v7830_v55 }
 0x6d6   : > { %3588 = vmatpush1.bf16.msra.mxu0 %v7833_v24  ;;  %3631 = vmatpush1.bf16.msra.mxu1 %v7836_v39 }
 0x6d7   : > { %3589 = vmatprep.subr.bf16.mxu0 %v7839_v4  ;;  %3632 = vmatprep.subr.bf16.mxu1 %v7842_v7 }
 0x6da   : > { %3590 = vmatpush1.bf16.msra.mxu0 %v7845_v52  ;;  %3633 = vmatpush1.bf16.msra.mxu1 %v7848_v54 }
 0x6db   : > { %3591 = vmatprep.subr.bf16.mxu0 %v7851_v61  ;;  %3634 = vmatprep.subr.bf16.mxu1 %v7854_v11 }
 0x6de   : > { %3592 = vmatpush1.bf16.msra.mxu0 %v7857_v50  ;;  %3635 = vmatpush1.bf16.msra.mxu1 %v7860_v2 }
 0x6df   : > { %3669 = vmatprep.subr.bf16.mxu0 %v7863_v22  ;;  %3712 = vmatprep.subr.bf16.mxu1 %v7866_v30 }
 0x754   : > { %v3223_v58 = vpop.f32.mrb[40].mxu0  ;;  %v3266_v12 = vpop.f32.mrb[40].mxu1 }
 0x755   : > { %v3275_v32 = vadd.f32 %v3223_v58, %v8790_v46  ;;  %v3225_v26 = vpop.f32.mrb[41].mxu0  ;;  %v3268_v23 = vpop.f32.mrb[41].mxu1  ;;  %v3277_v47 = vadd.f32 %v3266_v12, %v8793_v37 }
 0x756   : > { %v3276_v9 = vadd.f32 %v3225_v26, %v8791_v29  ;;  %v3227_v48 = vpop.f32.mrb[42].mxu0  ;;  %v3270_v10 = vpop.f32.mrb[42].mxu1  ;;  %v3278_v36 = vadd.f32 %v3268_v23, %v8792_v60 }
 0x757   : > { %v4849_v13 = vmul.f32 -1.442695, %v3275_v32  ;;  %v3279_v25 = vadd.f32 %v3227_v48, %v8790_v46  ;;  %v3229_v6 = vpop.f32.mrb[43].mxu0  ;;  %v3272_v15 = vpop.f32.mrb[43].mxu1  ;;  %v3281_v45 = vadd.f32 %v3270_v10, %v8793_v37 }
 0x758   : > { %v4851_v38 = vmul.f32 -1.442695, %v3276_v9  ;;  %v3280_v27 = vadd.f32 %v3229_v6, %v8791_v29  ;;  %v4853_v21 = vmul.f32 -1.442695, %v3278_v36  ;;  %v3282_v17 = vadd.f32 %v3272_v15, %v8792_v60 }
 0x759   : > { %5573 = vpow2.f32 %v4849_v13  ;;  %v4850_v14 = vmul.f32 -1.442695, %v3279_v25 }
 0x75a   : > { %5575 = vpow2.f32 %v4851_v38  ;;  %v4852_v28 = vmul.f32 -1.442695, %v3280_v27  ;;  %v4854_v9 = vmul.f32 -1.442695, %v3282_v17 }
 0x75b   : > { %5577 = vpow2.f32 %v4850_v14 }
 0x75c   : > { %5579 = vpow2.f32 %v4852_v28 }
 0x75d   : > { %5581 = vtanh.f32 %v3277_v47 }
 0x75e   : > { %5583 = vpow2.f32 %v4853_v21 }
 0x75f   : > { %5585 = vtanh.f32 %v3281_v45 }
 0x763   : > { %v5574_v58 = vpop.eup %5573 }
 0x764   : > { %v5576_v32 = vpop.eup %5575  ;;  %v3289_v26 = vadd.f32 1.0, %v5574_v58 }
 0x765   : > { %v3301_v48 = vadd.f32 1.0, %v5576_v32  ;;  %v5578_v13 = vpop.eup %5577 }
 0x766   : > { %5587 = vrcp.f32 %v3289_v26  ;;  %v3290_v23 = vadd.f32 1.0, %v5578_v13  ;;  %v5580_v25 = vpop.eup %5579 }
 0x767   : > { %5589 = vrcp.f32 %v3301_v48  ;;  %v3302_v12 = vadd.f32 1.0, %v5580_v25  ;;  %v5582_v6 = vpop.eup %5581 }
 0x768   : > { %5591 = vpow2.f32 %v4854_v9  ;;  %v5584_v15 = vpop.eup %5583 }
 0x769   : > { %5593 = vrcp.f32 %v3290_v23  ;;  %v5586_v10 = vpop.eup %5585  ;;  %v3315_v28 = vadd.f32 1.0, %v5584_v15  ;;  %v7887_v15 = vld [vmem:[#allocation7] ss:$16 sps:$4 sm:$0xff]  }
 0x76a   : > { %5595 = vrcp.f32 %v3302_v12 }
 0x76b   : > { %5597 = vrcp.f32 %v3315_v28  ;;  %v7907_v28 = vld [vmem:[#allocation7 + $0x44] ss:$16 sps:$4 sm:$0xff]  }
 0x770   : > { %v5588_v38 = vpop.eup %5587 }
 0x771   : > { %v5590_v27 = vpop.eup %5589  ;;  %v3323_v14 = vmul.f32 %v5588_v38, %v5582_v6  ;;  %v7896_v38 = vld [vmem:[#allocation7 + $0x2c] ss:$16 sps:$4 sm:$0xff]  }
 0x772   : > { %v5592_v36 = vpop.eup %5591  ;;  %v3321_v47 = vmul.f32 %v5590_v27, %v7636_v31  ;;  %v7901_v27 = vld [vmem:[#allocation7 + $0x20] ss:$16 sps:$4 sm:$0xff]  }
 0x773   : > { %v5594_v21 = vpop.eup %5593  ;;  %v3316_v32 = vadd.f32 1.0, %v5592_v36  ;;  %v7910_v36 = vld [vmem:[#allocation7 + $0x4c] ss:$16 sps:$4 sm:$0xff]  }
 0x774   : > { %v7878_v17 = vadd.f32 %v3323_v14, %v3321_v47  ;;  %v3324_v45 = vmul.f32 %v5594_v21, %v5586_v10  ;;  %v5596_v58 = vpop.eup %5595  ;;  %v7893_v10 = vld [vmem:[#allocation7 + $0x24] ss:$16 sps:$4 sm:$0xff]   ;;  %v7904_v14 = vld [vmem:[#allocation7 + $0x28] ss:$16 sps:$4 sm:$0xff]   ;;  %8851 = vst [vmem:[#allocation58_spill] sm:$0xff] %v7910_v36 }
 0x775   : > { %v3322_v26 = vmul.f32 %v5596_v58, %v7640_v5  ;;  %v5598_v48 = vpop.eup %5597  ;;  %v7890_v5 = vld [vmem:[#allocation7 + $0x8] ss:$16 sps:$4 sm:$0xff]   ;;  %v7913_v47 = vld [vmem:[#allocation7 + $0x40] ss:$16 sps:$4 sm:$0xff]   ;;  %v7922_v58 = vld [vmem:[#allocation7 + $0x6c] ss:$16 sps:$4 sm:$0xff]  }
 0x776   : > { %8849 = vst [vmem:[#allocation56_spill] sm:$0xff] %v7878_v17  ;;  %5599 = vtanh.f32 %v7878_v17  ;;  %8852 = vst [vmem:[#allocation59_spill] sm:$0xff] %v7913_v47  ;;  %v7916_v21 = vld [vmem:[#allocation7 + $0x48] ss:$16 sps:$4 sm:$0xff]  }
 0x777   : > { %v7882_v9 = vadd.f32 %v3324_v45, %v3322_v26  ;;  %5601 = vrcp.f32 %v3316_v32  ;;  %8853 = vst [vmem:[#allocation60_spill] sm:$0xff] %v7916_v21  ;;  %v7919_v45 = vld [vmem:[#allocation7 + $0x64] ss:$16 sps:$4 sm:$0xff]   ;;  %8855 = vst [vmem:[#allocation17_spill] sm:$0xff] %v7922_v58 }
 0x778   : > { %8854 = vst [vmem:[#allocation16_spill] sm:$0xff] %v7919_v45 }
 0x779   : > { %8850 = vst [vmem:[#allocation57_spill] sm:$0xff] %v7882_v9  ;;  %5603 = vtanh.f32 %v7882_v9 }
 0x780   : > { %v5600_v31 = vpop.eup %5599 }
 0x781   : > { %v3329_v13 = vmul.f32 %v5600_v31, %v5598_v48  ;;  %v5602_v23 = vpop.eup %5601 }
 0x783   : > { %4855 = vst [vmem:[%s6363_s12 + $0xa0] sm:$0xff] %v3329_v13  ;;  %v5604_v25 = vpop.eup %5603 }
 0x784   : > { %v3330_v12 = vmul.f32 %v5604_v25, %v5602_v23  ;;  %v7926_v23 = vld [vmem:[#allocation7 + $0x60] ss:$16 sps:$4 sm:$0xff]   ;;  %v7929_v25 = vld [vmem:[#allocation7 + $0x68] ss:$16 sps:$4 sm:$0xff]  }
 0x785   : > { %8856 = vst [vmem:[#allocation18_spill] sm:$0xff] %v7926_v23  ;;  %8857 = vst [vmem:[#allocation45_spill] sm:$0xff] %v7929_v25 }
 0x786   : > { %4856 = vst [vmem:[%s6363_s12 + $0xa8] sm:$0xff] %v3330_v12  ;;  %v3576_v6 = vpack.c.bf16 %v3330_v12, %v3329_v13 }
 0x788   : > { %3610 = vmatmul.mubr.bf16.vlgmr.msra.gmra.mrb[48].mxu0 %v3576_v6  ;;  %3653 = vmatmul.mubr.bf16.vlgmr.msra.gmra.mrb[48].mxu1 %v3576_v6 }
 0x789   : > { %3670 = vmatpush1.bf16.msra.mxu0 %v7887_v15  ;;  %3713 = vmatpush1.bf16.msra.mxu1 %v7890_v5 }
 0x78a   : > { %3671 = vmatprep.subr.bf16.mxu0 %v7893_v10  ;;  %3714 = vmatprep.subr.bf16.mxu1 %v7896_v38 }
 0x78b   : > { %3701 = vmatprep.mubr.bf16.mxu0 %v8601_v35  ;;  %3744 = vmatprep.mubr.bf16.mxu1 %v8601_v35 }
 0x78d   : > { %3672 = vmatpush1.bf16.msra.mxu0 %v7901_v27  ;;  %3715 = vmatpush1.bf16.msra.mxu1 %v7904_v14 }
 0x78e   : > { %3673 = vmatprep.subr.bf16.mxu0 %v7907_v28  ;;  %3716 = vmatprep.subr.bf16.mxu1 %v7910_v36 }
 0x791   : > { %3674 = vmatpush1.bf16.msra.mxu0 %v7913_v47  ;;  %3717 = vmatpush1.bf16.msra.mxu1 %v7916_v21 }
 0x792   : > { %3675 = vmatprep.subr.bf16.mxu0 %v7919_v45  ;;  %3718 = vmatprep.subr.bf16.mxu1 %v7922_v58  ;;  %v7934_v45 = vld [vmem:[#allocation7 + $0x84] ss:$16 sps:$4 sm:$0xff]  }
 0x794   : > { %v3463_v32 = vpop.f32.mrb[44].mxu0  ;;  %v3506_v26 = vpop.f32.mrb[44].mxu1 }
 0x795   : > { %v3515_v48 = vadd.f32 %v3463_v32, %v8790_v46  ;;  %v3465_v31 = vpop.f32.mrb[45].mxu0  ;;  %v3508_v13 = vpop.f32.mrb[45].mxu1  ;;  %3676 = vmatpush1.bf16.msra.mxu0 %v7926_v23  ;;  %3719 = vmatpush1.bf16.msra.mxu1 %v7929_v25  ;;  %v7937_v32 = vld [vmem:[#allocation7 + $0x8c] ss:$16 sps:$4 sm:$0xff]  }
 0x796   : > { %v3516_v12 = vadd.f32 %v3465_v31, %v8791_v29  ;;  %v3467_v6 = vpop.f32.mrb[46].mxu0  ;;  %v3510_v9 = vpop.f32.mrb[46].mxu1  ;;  %3677 = vmatprep.subr.bf16.mxu0 %v7934_v45  ;;  %8858 = vst [vmem:[#allocation46_spill] sm:$0xff] %v7937_v32  ;;  %3720 = vmatprep.subr.bf16.mxu1 %v7937_v32  ;;  %v7950_v32 = vld [vmem:[#allocation7 + $0xac] ss:$16 sps:$4 sm:$0xff]  }
 0x797   : > { %v4860_v17 = vmul.f32 -1.442695, %v3515_v48  ;;  %v3519_v58 = vadd.f32 %v3467_v6, %v8790_v46  ;;  %v3469_v23 = vpop.f32.mrb[47].mxu0  ;;  %v3512_v21 = vpop.f32.mrb[47].mxu1  ;;  %v7941_v48 = vld [vmem:[#allocation7 + $0x80] ss:$16 sps:$4 sm:$0xff]  }
 0x798   : > { %v4862_v47 = vmul.f32 -1.442695, %v3516_v12  ;;  %v3520_v25 = vadd.f32 %v3469_v23, %v8791_v29  ;;  %v7944_v6 = vld [vmem:[#allocation7 + $0x88] ss:$16 sps:$4 sm:$0xff]   ;;  %v7947_v46 = vld [vmem:[#allocation7 + $0xa4] ss:$16 sps:$4 sm:$0xff]   ;;  %v3517_v23 = vadd.f32 %v3506_v26, %v8793_v37 }
 0x799   : > { %5605 = vpow2.f32 %v4860_v17  ;;  %v4861_v31 = vmul.f32 -1.442695, %v3519_v58  ;;  %3678 = vmatpush1.bf16.msra.mxu0 %v7941_v48  ;;  %3721 = vmatpush1.bf16.msra.mxu1 %v7944_v6  ;;  %v3518_v17 = vadd.f32 %v3508_v13, %v8792_v60  ;;  %v7957_v58 = vld [vmem:[#allocation7 + $0xa8] ss:$16 sps:$4 sm:$0xff]   ;;  %v7964_v12 = vld [vmem:[#allocation7 + $0xcc] ss:$16 sps:$4 sm:$0xff]  }
 0x79a   : > { %5607 = vpow2.f32 %v4862_v47  ;;  %v4863_v36 = vmul.f32 -1.442695, %v3520_v25  ;;  %3679 = vmatprep.subr.bf16.mxu0 %v7947_v46  ;;  %3722 = vmatprep.subr.bf16.mxu1 %v7950_v32  ;;  %v7954_v47 = vld [vmem:[#allocation7 + $0xa0] ss:$16 sps:$4 sm:$0xff]   ;;  %8859 = vst [vmem:[#allocation14_spill] sm:$0xff] %v7957_v58  ;;  %8861 = vst [vmem:[#allocation61_spill] sm:$0xff] %v7964_v12 }
 0x79b   : > { %5609 = vpow2.f32 %v4861_v31  ;;  %v7961_v25 = vld [vmem:[#allocation7 + $0xc4] ss:$16 sps:$4 sm:$0xff]   ;;  %v4864_v13 = vmul.f32 -1.442695, %v3518_v17  ;;  %v3521_v31 = vadd.f32 %v3510_v9, %v8793_v37  ;;  %v7969_v29 = vld [vmem:[#allocation7 + $0xc0] ss:$16 sps:$4 sm:$0xff]  }
 0x79c   : > { %5611 = vpow2.f32 %v4863_v36  ;;  %8860 = vst [vmem:[#allocation15_spill] sm:$0xff] %v7961_v25  ;;  %v3522_v36 = vadd.f32 %v3512_v21, %v8792_v60  ;;  %8862 = vst [vmem:[#allocation19_spill] sm:$0xff] %v7969_v29  ;;  %v7978_v17 = vld [vmem:[#allocation7 + $0xec] ss:$16 sps:$4 sm:$0xff]  }
 0x79d   : > { %3680 = vmatpush1.bf16.msra.mxu0 %v7954_v47  ;;  %3723 = vmatpush1.bf16.msra.mxu1 %v7957_v58  ;;  %v7972_v58 = vld [vmem:[#allocation7 + $0xc8] ss:$16 sps:$4 sm:$0xff]   ;;  %5613 = vtanh.f32 %v3517_v23 }
 0x79e   : > { %3681 = vmatprep.subr.bf16.mxu0 %v7961_v25  ;;  %3724 = vmatprep.subr.bf16.mxu1 %v7964_v12  ;;  %8863 = vst [vmem:[#allocation20_spill] sm:$0xff] %v7972_v58  ;;  %v7975_v25 = vld [vmem:[#allocation7 + $0xe4] ss:$16 sps:$4 sm:$0xff]   ;;  %5615 = vpow2.f32 %v4864_v13  ;;  %v4865_v37 = vmul.f32 -1.442695, %v3522_v36 }
 0x79f   : > { %8864 = vst [vmem:[#allocation62_spill] sm:$0xff] %v7975_v25  ;;  %5617 = vtanh.f32 %v3521_v31  ;;  %v7985_v23 = vld [vmem:[#allocation7 + $0xe8] ss:$16 sps:$4 sm:$0xff]  }
 0x7a1   : > { %3682 = vmatpush1.bf16.msra.mxu0 %v7969_v29  ;;  %3725 = vmatpush1.bf16.msra.mxu1 %v7972_v58  ;;  %v5249_v29 = vld [vmem:[%s6352_s9 + $0x60] sm:$0xff]  }
 0x7a2   : > { %3683 = vmatprep.subr.bf16.mxu0 %v7975_v25  ;;  %3726 = vmatprep.subr.bf16.mxu1 %v7978_v17  ;;  %v7982_v58 = vld [vmem:[#allocation7 + $0xe0] ss:$16 sps:$4 sm:$0xff]  }
 0x7a3   : > { %v5606_v26 = vpop.eup %5605 }
 0x7a4   : > { %v5608_v9 = vpop.eup %5607  ;;  %v3529_v21 = vadd.f32 1.0, %v5606_v26 }
 0x7a5   : > { %v3541_v60 = vadd.f32 1.0, %v5608_v9  ;;  %v5610_v12 = vpop.eup %5609  ;;  %3684 = vmatpush1.bf16.msra.mxu0 %v7982_v58  ;;  %3727 = vmatpush1.bf16.msra.mxu1 %v7985_v23 }
 0x7a6   : > { %5619 = vrcp.f32 %v3529_v21  ;;  %v3530_v25 = vadd.f32 1.0, %v5610_v12  ;;  %3817 = vmatprep.subr.bf16.mxu0 %v7765_v63  ;;  %3860 = vmatprep.subr.bf16.mxu1 %v7768_v56  ;;  %v5612_v13 = vpop.eup %5611 }
 0x7a7   : > { %5621 = vrcp.f32 %v3541_v60  ;;  %v3542_v36 = vadd.f32 1.0, %v5612_v13  ;;  %v5614_v60 = vpop.eup %5613 }
 0x7a8   : > { %5623 = vpow2.f32 %v4865_v37  ;;  %3702 = vmatmul.mubr.bf16.vlgmr.msra.gmra.mrb[48].mxu0 %v5249_v29  ;;  %3745 = vmatmul.mubr.bf16.vlgmr.msra.gmra.mrb[48].mxu1 %v5249_v29  ;;  %v5616_v12 = vpop.eup %5615 }
 0x7a9   : > { %5625 = vrcp.f32 %v3530_v25  ;;  %3818 = vmatpush1.bf16.msra.mxu0 %v7771_v3  ;;  %3861 = vmatpush1.bf16.msra.mxu1 %v7774_v18  ;;  %v5618_v37 = vpop.eup %5617  ;;  %v3555_v26 = vadd.f32 1.0, %v5616_v12 }
 0x7aa   : > { %5627 = vrcp.f32 %v3542_v36  ;;  %3819 = vmatprep.subr.bf16.mxu0 %v7777_v40  ;;  %3862 = vmatprep.subr.bf16.mxu1 %v7780_v41 }
 0x7ab   : > { %3849 = vmatprep.mubr.bf16.mxu0 %v8601_v35  ;;  %3892 = vmatprep.mubr.bf16.mxu1 %v8601_v35  ;;  %5629 = vrcp.f32 %v3555_v26  ;;  %v8869_v26 = vld [vmem:[#allocation60_spill] sm:$0xff] }
 0x7ad   : > { %3820 = vmatpush1.bf16.msra.mxu0 %v7785_v16  ;;  %3863 = vmatpush1.bf16.msra.mxu1 %v7788_v8 }
 0x7ae   : > { %3821 = vmatprep.subr.bf16.mxu0 %v7791_v62  ;;  %3864 = vmatprep.subr.bf16.mxu1 %v7794_v34 }
 0x7b0   : > { %v5620_v29 = vpop.eup %5619 }
 0x7b1   : > { %v5622_v25 = vpop.eup %5621  ;;  %v3563_v31 = vmul.f32 %v5620_v29, %v5614_v60  ;;  %3822 = vmatpush1.bf16.msra.mxu0 %v7797_v53  ;;  %3865 = vmatpush1.bf16.msra.mxu1 %v7800_v0 }
 0x7b2   : > { %v5624_v9 = vpop.eup %5623  ;;  %v3561_v21 = vmul.f32 %v5622_v25, %v7703_v19  ;;  %3823 = vmatprep.subr.bf16.mxu0 %v7803_v33  ;;  %3866 = vmatprep.subr.bf16.mxu1 %v7806_v49  ;;  %v8867_v25 = vld [vmem:[#allocation58_spill] sm:$0xff] }
 0x7b3   : > { %v5626_v13 = vpop.eup %5625  ;;  %v3556_v8 = vadd.f32 1.0, %v5624_v9  ;;  %v8870_v9 = vld [vmem:[#allocation16_spill] sm:$0xff] }
 0x7b4   : > { %v8005_v36 = vadd.f32 %v3563_v31, %v3561_v21  ;;  %v3564_v62 = vmul.f32 %v5626_v13, %v5618_v37  ;;  %v5628_v34 = vpop.eup %5627  ;;  %v8868_v31 = vld [vmem:[#allocation59_spill] sm:$0xff]  ;;  %v8871_v21 = vld [vmem:[#allocation17_spill] sm:$0xff]  ;;  %v8872_v13 = vld [vmem:[#allocation18_spill] sm:$0xff] }
 0x7b5   : > { %v3562_v60 = vmul.f32 %v5628_v34, %v7711_v1  ;;  %3824 = vmatpush1.bf16.msra.mxu0 %v7809_v43  ;;  %3867 = vmatpush1.bf16.msra.mxu1 %v7812_v59  ;;  %v5630_v1 = vpop.eup %5629 }
 0x7b6   : > { %8865 = vst [vmem:[#allocation21_spill] sm:$0xff] %v8005_v36  ;;  %5631 = vtanh.f32 %v8005_v36  ;;  %3825 = vmatprep.subr.bf16.mxu0 %v7815_v51  ;;  %3868 = vmatprep.subr.bf16.mxu1 %v7818_v42  ;;  %v8881_v36 = vld [vmem:[#allocation27_spill] sm:$0xff] }
 0x7b7   : > { %v8013_v19 = vadd.f32 %v3564_v62, %v3562_v60  ;;  %5633 = vrcp.f32 %v3556_v8  ;;  %v8873_v60 = vld [vmem:[#allocation45_spill] sm:$0xff] }
 0x7b9   : > { %8866 = vst [vmem:[#allocation22_spill] sm:$0xff] %v8013_v19  ;;  %5635 = vtanh.f32 %v8013_v19  ;;  %3826 = vmatpush1.bf16.msra.mxu0 %v7821_v44  ;;  %3869 = vmatpush1.bf16.msra.mxu1 %v7824_v57  ;;  %v5250_v19 = vld [vmem:[%s6352_s9 + $0x68] sm:$0xff]  }
 0x7ba   : > { %3827 = vmatprep.subr.bf16.mxu0 %v7827_v20  ;;  %3870 = vmatprep.subr.bf16.mxu1 %v7830_v55 }
 0x7bd   : > { %3828 = vmatpush1.bf16.msra.mxu0 %v7833_v24  ;;  %3871 = vmatpush1.bf16.msra.mxu1 %v7836_v39 }
 0x7be   : > { %3829 = vmatprep.subr.bf16.mxu0 %v7839_v4  ;;  %3872 = vmatprep.subr.bf16.mxu1 %v7842_v7 }
 0x7c0   : > { %v5632_v8 = vpop.eup %5631 }
 0x7c1   : > { %v3569_v62 = vmul.f32 %v5632_v8, %v5630_v1  ;;  %3830 = vmatpush1.bf16.msra.mxu0 %v7845_v52  ;;  %3873 = vmatpush1.bf16.msra.mxu1 %v7848_v54  ;;  %v5634_v34 = vpop.eup %5633  ;;  %v8874_v1 = vld [vmem:[#allocation46_spill] sm:$0xff] }
 0x7c2   : > { %3831 = vmatprep.subr.bf16.mxu0 %v7851_v61  ;;  %3874 = vmatprep.subr.bf16.mxu1 %v7854_v11  ;;  %v8875_v8 = vld [vmem:[#allocation14_spill] sm:$0xff] }
 0x7c3   : > { %4866 = vst [vmem:[%s6363_s12 + $0xb0] sm:$0xff] %v3569_v62  ;;  %v5636_v12 = vpop.eup %5635 }
 0x7c4   : > { %v3570_v37 = vmul.f32 %v5636_v12, %v5634_v34  ;;  %v8877_v34 = vld [vmem:[#allocation61_spill] sm:$0xff]  ;;  %v8878_v12 = vld [vmem:[#allocation19_spill] sm:$0xff] }
 0x7c5   : > { %3832 = vmatpush1.bf16.msra.mxu0 %v7857_v50  ;;  %3875 = vmatpush1.bf16.msra.mxu1 %v7860_v2 }
 0x7c6   : > { %3909 = vmatprep.subr.bf16.mxu0 %v7863_v22  ;;  %3952 = vmatprep.subr.bf16.mxu1 %v7866_v30  ;;  %4867 = vst [vmem:[%s6363_s12 + $0xb8] sm:$0xff] %v3570_v37  ;;  %v3816_v29 = vpack.c.bf16 %v3570_v37, %v3569_v62  ;;  %v8876_v62 = vld [vmem:[#allocation15_spill] sm:$0xff]  ;;  %v8879_v37 = vld [vmem:[#allocation20_spill] sm:$0xff] }
 0x7c8   : > { %3850 = vmatmul.mubr.bf16.vlgmr.msra.gmra.mrb[52].mxu0 %v3816_v29  ;;  %3893 = vmatmul.mubr.bf16.vlgmr.msra.gmra.mrb[52].mxu1 %v3816_v29  ;;  %v8880_v29 = vld [vmem:[#allocation62_spill] sm:$0xff] }
 0x7c9   : > { %3910 = vmatpush1.bf16.msra.mxu0 %v7887_v15  ;;  %3953 = vmatpush1.bf16.msra.mxu1 %v7890_v5 }
 0x7ca   : > { %3911 = vmatprep.subr.bf16.mxu0 %v7893_v10  ;;  %3954 = vmatprep.subr.bf16.mxu1 %v7896_v38 }
 0x7cb   : > { %3941 = vmatprep.mubr.bf16.mxu0 %v8601_v35  ;;  %3984 = vmatprep.mubr.bf16.mxu1 %v8601_v35 }
 0x7cd   : > { %3912 = vmatpush1.bf16.msra.mxu0 %v7901_v27  ;;  %3955 = vmatpush1.bf16.msra.mxu1 %v7904_v14 }
 0x7ce   : > { %3913 = vmatprep.subr.bf16.mxu0 %v7907_v28  ;;  %3956 = vmatprep.subr.bf16.mxu1 %v8867_v25 }
 0x7d1   : > { %3914 = vmatpush1.bf16.msra.mxu0 %v8868_v31  ;;  %3957 = vmatpush1.bf16.msra.mxu1 %v8869_v26 }
 0x7d2   : > { %3915 = vmatprep.subr.bf16.mxu0 %v8870_v9  ;;  %3958 = vmatprep.subr.bf16.mxu1 %v8871_v21 }
 0x7d5   : > { %3916 = vmatpush1.bf16.msra.mxu0 %v8872_v13  ;;  %3959 = vmatpush1.bf16.msra.mxu1 %v8873_v60 }
 0x7d6   : > { %3917 = vmatprep.subr.bf16.mxu0 %v7934_v45  ;;  %3960 = vmatprep.subr.bf16.mxu1 %v8874_v1 }
 0x7d9   : > { %3918 = vmatpush1.bf16.msra.mxu0 %v7941_v48  ;;  %3961 = vmatpush1.bf16.msra.mxu1 %v7944_v6 }
 0x7da   : > { %3919 = vmatprep.subr.bf16.mxu0 %v7947_v46  ;;  %3962 = vmatprep.subr.bf16.mxu1 %v7950_v32 }
 0x7dd   : > { %3920 = vmatpush1.bf16.msra.mxu0 %v7954_v47  ;;  %3963 = vmatpush1.bf16.msra.mxu1 %v8875_v8 }
 0x7de   : > { %3921 = vmatprep.subr.bf16.mxu0 %v8876_v62  ;;  %3964 = vmatprep.subr.bf16.mxu1 %v8877_v34 }
 0x7e1   : > { %3922 = vmatpush1.bf16.msra.mxu0 %v8878_v12  ;;  %3965 = vmatpush1.bf16.msra.mxu1 %v8879_v37 }
 0x7e2   : > { %3923 = vmatprep.subr.bf16.mxu0 %v8880_v29  ;;  %3966 = vmatprep.subr.bf16.mxu1 %v7978_v17 }
 0x7e5   : > { %3924 = vmatpush1.bf16.msra.mxu0 %v7982_v58  ;;  %3967 = vmatpush1.bf16.msra.mxu1 %v7985_v23 }
 0x7e6   : > { %4057 = vmatprep.subr.bf16.mxu0 %v7765_v63  ;;  %4100 = vmatprep.subr.bf16.mxu1 %v7768_v56  ;;  %v8882_v63 = vld [vmem:[#allocation28_spill] sm:$0xff]  ;;  %v8883_v56 = vld [vmem:[#allocation29_spill] sm:$0xff] }
 0x7e8   : > { %3942 = vmatmul.mubr.bf16.vlgmr.msra.gmra.mrb[52].mxu0 %v5250_v19  ;;  %3985 = vmatmul.mubr.bf16.vlgmr.msra.gmra.mrb[52].mxu1 %v5250_v19 }
 0x7e9   : > { %4058 = vmatpush1.bf16.msra.mxu0 %v7771_v3  ;;  %4101 = vmatpush1.bf16.msra.mxu1 %v7774_v18 }
 0x7ea   : > { %4059 = vmatprep.subr.bf16.mxu0 %v7777_v40  ;;  %4102 = vmatprep.subr.bf16.mxu1 %v7780_v41 }
 0x7eb   : > { %4089 = vmatprep.mubr.bf16.mxu0 %v8601_v35  ;;  %4132 = vmatprep.mubr.bf16.mxu1 %v8601_v35 }
 0x7ed   : > { %4060 = vmatpush1.bf16.msra.mxu0 %v7785_v16  ;;  %4103 = vmatpush1.bf16.msra.mxu1 %v8881_v36 }
 0x7ee   : > { %4061 = vmatprep.subr.bf16.mxu0 %v8882_v63  ;;  %4104 = vmatprep.subr.bf16.mxu1 %v8883_v56 }
 0x7f1   : > { %4062 = vmatpush1.bf16.msra.mxu0 %v7797_v53  ;;  %4105 = vmatpush1.bf16.msra.mxu1 %v7800_v0 }
 0x7f2   : > { %4063 = vmatprep.subr.bf16.mxu0 %v7803_v33  ;;  %4106 = vmatprep.subr.bf16.mxu1 %v7806_v49 }
 0x7f5   : > { %4064 = vmatpush1.bf16.msra.mxu0 %v7809_v43  ;;  %4107 = vmatpush1.bf16.msra.mxu1 %v7812_v59  ;;  %v8887_v59 = vld [vmem:[#allocation41_spill] sm:$0xff] }
 0x7f6   : > { %4065 = vmatprep.subr.bf16.mxu0 %v7815_v51  ;;  %4108 = vmatprep.subr.bf16.mxu1 %v7818_v42  ;;  %v8886_v51 = vld [vmem:[#allocation40_spill] sm:$0xff] }
 0x7f9   : > { %4066 = vmatpush1.bf16.msra.mxu0 %v7821_v44  ;;  %4109 = vmatpush1.bf16.msra.mxu1 %v7824_v57 }
 0x7fa   : > { %4067 = vmatprep.subr.bf16.mxu0 %v7827_v20  ;;  %4110 = vmatprep.subr.bf16.mxu1 %v7830_v55  ;;  %v8885_v55 = vld [vmem:[#allocation39_spill] sm:$0xff] }
 0x7fd   : > { %4068 = vmatpush1.bf16.msra.mxu0 %v7833_v24  ;;  %4111 = vmatpush1.bf16.msra.mxu1 %v7836_v39  ;;  %v8884_v39 = vld [vmem:[#allocation38_spill] sm:$0xff] }
 0x7fe   : > { %4069 = vmatprep.subr.bf16.mxu0 %v7839_v4  ;;  %4112 = vmatprep.subr.bf16.mxu1 %v7842_v7 }
 0x801   : > { %4070 = vmatpush1.bf16.msra.mxu0 %v7845_v52  ;;  %4113 = vmatpush1.bf16.msra.mxu1 %v7848_v54 }
 0x802   : > { %4071 = vmatprep.subr.bf16.mxu0 %v7851_v61  ;;  %4114 = vmatprep.subr.bf16.mxu1 %v7854_v11 }
 0x805   : > { %4072 = vmatpush1.bf16.msra.mxu0 %v7857_v50  ;;  %4115 = vmatpush1.bf16.msra.mxu1 %v7860_v2 }
 0x806   : > { %4149 = vmatprep.subr.bf16.mxu0 %v7863_v22  ;;  %4192 = vmatprep.subr.bf16.mxu1 %v7866_v30 }
 0x87b   : > { %v3703_v19 = vpop.f32.mrb[48].mxu0  ;;  %v3746_v4 = vpop.f32.mrb[48].mxu1 }
 0x87c   : > { %v3755_v7 = vadd.f32 %v3703_v19, %v8884_v39  ;;  %v3705_v24 = vpop.f32.mrb[49].mxu0  ;;  %v3748_v52 = vpop.f32.mrb[49].mxu1 }
 0x87d   : > { %v3756_v54 = vadd.f32 %v3705_v24, %v8885_v55  ;;  %v3707_v20 = vpop.f32.mrb[50].mxu0  ;;  %v3750_v61 = vpop.f32.mrb[50].mxu1  ;;  %v3758_v19 = vadd.f32 %v3748_v52, %v8886_v51  ;;  %v3757_v24 = vadd.f32 %v3746_v4, %v8887_v59 }
 0x87e   : > { %v4871_v57 = vmul.f32 -1.442695, %v3755_v7  ;;  %v3759_v11 = vadd.f32 %v3707_v20, %v8884_v39  ;;  %v3709_v50 = vpop.f32.mrb[51].mxu0  ;;  %v3752_v44 = vpop.f32.mrb[51].mxu1  ;;  %v3761_v20 = vadd.f32 %v3750_v61, %v8887_v59 }
 0x87f   : > { %v4873_v2 = vmul.f32 -1.442695, %v3756_v54  ;;  %v3760_v22 = vadd.f32 %v3709_v50, %v8885_v55  ;;  %v4875_v43 = vmul.f32 -1.442695, %v3758_v19  ;;  %v3762_v7 = vadd.f32 %v3752_v44, %v8886_v51 }
 0x880   : > { %5637 = vpow2.f32 %v4871_v57  ;;  %v4872_v30 = vmul.f32 -1.442695, %v3759_v11 }
 0x881   : > { %5639 = vpow2.f32 %v4873_v2  ;;  %v4874_v42 = vmul.f32 -1.442695, %v3760_v22  ;;  %v4876_v57 = vmul.f32 -1.442695, %v3762_v7 }
 0x882   : > { %5641 = vpow2.f32 %v4872_v30 }
 0x883   : > { %5643 = vpow2.f32 %v4874_v42 }
 0x884   : > { %5645 = vtanh.f32 %v3757_v24  ;;  %v8888_v24 = vld [vmem:[#allocation56_spill] sm:$0xff] }
 0x885   : > { %5647 = vpow2.f32 %v4875_v43 }
 0x886   : > { %5649 = vtanh.f32 %v3761_v20 }
 0x88a   : > { %v5638_v49 = vpop.eup %5637 }
 0x88b   : > { %v5640_v54 = vpop.eup %5639  ;;  %v3769_v33 = vadd.f32 1.0, %v5638_v49 }
 0x88c   : > { %v3781_v11 = vadd.f32 1.0, %v5640_v54  ;;  %v5642_v50 = vpop.eup %5641 }
 0x88d   : > { %5651 = vrcp.f32 %v3769_v33  ;;  %v3770_v52 = vadd.f32 1.0, %v5642_v50  ;;  %v5644_v42 = vpop.eup %5643  ;;  %v8889_v50 = vld [vmem:[#allocation57_spill] sm:$0xff] }
 0x88e   : > { %5653 = vrcp.f32 %v3781_v11  ;;  %v3782_v4 = vadd.f32 1.0, %v5644_v42  ;;  %v5646_v44 = vpop.eup %5645 }
 0x88f   : > { %5655 = vpow2.f32 %v4876_v57  ;;  %v5648_v2 = vpop.eup %5647 }
 0x890   : > { %5657 = vrcp.f32 %v3770_v52  ;;  %v5650_v61 = vpop.eup %5649  ;;  %v3795_v49 = vadd.f32 1.0, %v5648_v2 }
 0x891   : > { %5659 = vrcp.f32 %v3782_v4 }
 0x892   : > { %5661 = vrcp.f32 %v3795_v49 }
 0x897   : > { %v5652_v22 = vpop.eup %5651 }
 0x898   : > { %v5654_v30 = vpop.eup %5653  ;;  %v3803_v19 = vmul.f32 %v5652_v22, %v5646_v44 }
 0x899   : > { %v5656_v43 = vpop.eup %5655  ;;  %v3801_v7 = vmul.f32 %v5654_v30, %v8888_v24 }
 0x89a   : > { %v5658_v20 = vpop.eup %5657  ;;  %v3796_v11 = vadd.f32 1.0, %v5656_v43 }
 0x89b   : > { %v8112_v33 = vadd.f32 %v3803_v19, %v3801_v7  ;;  %v3804_v54 = vmul.f32 %v5658_v20, %v5650_v61  ;;  %v5660_v57 = vpop.eup %5659 }
 0x89c   : > { %v3802_v52 = vmul.f32 %v5660_v57, %v8889_v50  ;;  %v5662_v4 = vpop.eup %5661 }
 0x89d   : > { %5663 = vtanh.f32 %v8112_v33 }
 0x89e   : > { %v8116_v42 = vadd.f32 %v3804_v54, %v3802_v52  ;;  %5665 = vrcp.f32 %v3796_v11 }
 0x8a0   : > { %5667 = vtanh.f32 %v8116_v42 }
 0x8a7   : > { %v5664_v44 = vpop.eup %5663 }
 0x8a8   : > { %v3809_v2 = vmul.f32 %v5664_v44, %v5662_v4  ;;  %v5666_v22 = vpop.eup %5665 }
 0x8aa   : > { %4877 = vst [vmem:[%s6363_s12 + $0xc0] sm:$0xff] %v3809_v2  ;;  %v5668_v30 = vpop.eup %5667 }
 0x8ab   : > { %v3810_v61 = vmul.f32 %v5668_v30, %v5666_v22 }
 0x8ad   : > { %4878 = vst [vmem:[%s6363_s12 + $0xc8] sm:$0xff] %v3810_v61  ;;  %v4056_v19 = vpack.c.bf16 %v3810_v61, %v3809_v2 }
 0x8af   : > { %4090 = vmatmul.mubr.bf16.vlgmr.msra.gmra.mrb[56].mxu0 %v4056_v19  ;;  %4133 = vmatmul.mubr.bf16.vlgmr.msra.gmra.mrb[56].mxu1 %v4056_v19 }
 0x8b0   : > { %4150 = vmatpush1.bf16.msra.mxu0 %v7887_v15  ;;  %4193 = vmatpush1.bf16.msra.mxu1 %v7890_v5 }
 0x8b1   : > { %4151 = vmatprep.subr.bf16.mxu0 %v7893_v10  ;;  %4194 = vmatprep.subr.bf16.mxu1 %v7896_v38 }
 0x8b2   : > { %4181 = vmatprep.mubr.bf16.mxu0 %v8601_v35  ;;  %4224 = vmatprep.mubr.bf16.mxu1 %v8601_v35 }
 0x8b4   : > { %4152 = vmatpush1.bf16.msra.mxu0 %v7901_v27  ;;  %4195 = vmatpush1.bf16.msra.mxu1 %v7904_v14 }
 0x8b5   : > { %4153 = vmatprep.subr.bf16.mxu0 %v7907_v28  ;;  %4196 = vmatprep.subr.bf16.mxu1 %v8867_v25 }
 0x8b8   : > { %4154 = vmatpush1.bf16.msra.mxu0 %v8868_v31  ;;  %4197 = vmatpush1.bf16.msra.mxu1 %v8869_v26 }
 0x8b9   : > { %4155 = vmatprep.subr.bf16.mxu0 %v8870_v9  ;;  %4198 = vmatprep.subr.bf16.mxu1 %v8871_v21 }
 0x8bb   : > { %v3943_v49 = vpop.f32.mrb[52].mxu0  ;;  %v3986_v43 = vpop.f32.mrb[52].mxu1 }
 0x8bc   : > { %v3995_v24 = vadd.f32 %v3943_v49, %v8884_v39  ;;  %v3945_v7 = vpop.f32.mrb[53].mxu0  ;;  %v3988_v20 = vpop.f32.mrb[53].mxu1  ;;  %4156 = vmatpush1.bf16.msra.mxu0 %v8872_v13  ;;  %4199 = vmatpush1.bf16.msra.mxu1 %v8873_v60  ;;  %v3997_v49 = vadd.f32 %v3986_v43, %v8887_v59 }
 0x8bd   : > { %v3996_v54 = vadd.f32 %v3945_v7, %v8885_v55  ;;  %v3947_v57 = vpop.f32.mrb[54].mxu0  ;;  %v3990_v11 = vpop.f32.mrb[54].mxu1  ;;  %4157 = vmatprep.subr.bf16.mxu0 %v7934_v45  ;;  %4200 = vmatprep.subr.bf16.mxu1 %v8874_v1  ;;  %v3998_v19 = vadd.f32 %v3988_v20, %v8886_v51 }
 0x8be   : > { %v4882_v50 = vmul.f32 -1.442695, %v3995_v24  ;;  %v3999_v52 = vadd.f32 %v3947_v57, %v8884_v39  ;;  %v3949_v4 = vpop.f32.mrb[55].mxu0  ;;  %v3992_v44 = vpop.f32.mrb[55].mxu1 }
 0x8bf   : > { %v4884_v2 = vmul.f32 -1.442695, %v3996_v54  ;;  %v4000_v22 = vadd.f32 %v3949_v4, %v8885_v55  ;;  %v4886_v24 = vmul.f32 -1.442695, %v3998_v19  ;;  %v4002_v7 = vadd.f32 %v3992_v44, %v8886_v51  ;;  %v5251_v4 = vld [vmem:[%s6352_s9 + $0x70] sm:$0xff]  }
 0x8c0   : > { %5669 = vpow2.f32 %v4882_v50  ;;  %v4883_v30 = vmul.f32 -1.442695, %v3999_v52  ;;  %4158 = vmatpush1.bf16.msra.mxu0 %v7941_v48  ;;  %4201 = vmatpush1.bf16.msra.mxu1 %v7944_v6  ;;  %v4001_v54 = vadd.f32 %v3990_v11, %v8887_v59 }
 0x8c1   : > { %5671 = vpow2.f32 %v4884_v2  ;;  %v4885_v61 = vmul.f32 -1.442695, %v4000_v22  ;;  %4159 = vmatprep.subr.bf16.mxu0 %v7947_v46  ;;  %4202 = vmatprep.subr.bf16.mxu1 %v7950_v32  ;;  %v4887_v50 = vmul.f32 -1.442695, %v4002_v7  ;;  %v8890_v2 = vld [vmem:[#allocation25_spill] sm:$0xff]  ;;  %v8891_v22 = vld [vmem:[#allocation26_spill] sm:$0xff] }
 0x8c2   : > { %5673 = vpow2.f32 %v4883_v30 }
 0x8c3   : > { %5675 = vpow2.f32 %v4885_v61 }
 0x8c4   : > { %4160 = vmatpush1.bf16.msra.mxu0 %v7954_v47  ;;  %4203 = vmatpush1.bf16.msra.mxu1 %v8875_v8  ;;  %5677 = vtanh.f32 %v3997_v49 }
 0x8c5   : > { %4161 = vmatprep.subr.bf16.mxu0 %v8876_v62  ;;  %4204 = vmatprep.subr.bf16.mxu1 %v8877_v34  ;;  %5679 = vpow2.f32 %v4886_v24 }
 0x8c6   : > { %5681 = vtanh.f32 %v4001_v54  ;;  %v8892_v54 = vld [vmem:[#allocation21_spill] sm:$0xff] }
 0x8c8   : > { %4162 = vmatpush1.bf16.msra.mxu0 %v8878_v12  ;;  %4205 = vmatpush1.bf16.msra.mxu1 %v8879_v37 }
 0x8c9   : > { %4163 = vmatprep.subr.bf16.mxu0 %v8880_v29  ;;  %4206 = vmatprep.subr.bf16.mxu1 %v7978_v17 }
 0x8ca   : > { %v5670_v20 = vpop.eup %5669 }
 0x8cb   : > { %v5672_v43 = vpop.eup %5671  ;;  %v4009_v57 = vadd.f32 1.0, %v5670_v20 }
 0x8cc   : > { %v4021_v52 = vadd.f32 1.0, %v5672_v43  ;;  %v5674_v44 = vpop.eup %5673  ;;  %4164 = vmatpush1.bf16.msra.mxu0 %v7982_v58  ;;  %4207 = vmatpush1.bf16.msra.mxu1 %v7985_v23 }
 0x8cd   : > { %5683 = vrcp.f32 %v4009_v57  ;;  %v4010_v11 = vadd.f32 1.0, %v5674_v44  ;;  %4297 = vmatprep.subr.bf16.mxu0 %v8890_v2  ;;  %4340 = vmatprep.subr.bf16.mxu1 %v8891_v22  ;;  %v5676_v30 = vpop.eup %5675  ;;  %v8896_v44 = vld [vmem:[#allocation32_spill] sm:$0xff] }
 0x8ce   : > { %5685 = vrcp.f32 %v4021_v52  ;;  %v4022_v61 = vadd.f32 1.0, %v5676_v30  ;;  %v5678_v19 = vpop.eup %5677  ;;  %v8895_v52 = vld [vmem:[#allocation22_spill] sm:$0xff]  ;;  %v8900_v22 = vld [vmem:[#allocation36_spill] sm:$0xff]  ;;  %v8901_v30 = vld [vmem:[#allocation37_spill] sm:$0xff] }
 0x8cf   : > { %5687 = vpow2.f32 %v4887_v50  ;;  %4182 = vmatmul.mubr.bf16.vlgmr.msra.gmra.mrb[56].mxu0 %v5251_v4  ;;  %4225 = vmatmul.mubr.bf16.vlgmr.msra.gmra.mrb[56].mxu1 %v5251_v4  ;;  %v5680_v49 = vpop.eup %5679 }
 0x8d0   : > { %5689 = vrcp.f32 %v4010_v11  ;;  %4298 = vmatpush1.bf16.msra.mxu0 %v7771_v3  ;;  %4341 = vmatpush1.bf16.msra.mxu1 %v7774_v18  ;;  %v5682_v24 = vpop.eup %5681  ;;  %v4035_v7 = vadd.f32 1.0, %v5680_v49  ;;  %v8899_v11 = vld [vmem:[#allocation35_spill] sm:$0xff]  ;;  %v8904_v49 = vld [vmem:[#allocation50_spill] sm:$0xff] }
 0x8d1   : > { %5691 = vrcp.f32 %v4022_v61  ;;  %4299 = vmatprep.subr.bf16.mxu0 %v7777_v40  ;;  %4342 = vmatprep.subr.bf16.mxu1 %v7780_v41  ;;  %v8902_v61 = vld [vmem:[#allocation42_spill] sm:$0xff] }
 0x8d2   : > { %4329 = vmatprep.mubr.bf16.mxu0 %v8601_v35  ;;  %4372 = vmatprep.mubr.bf16.mxu1 %v8601_v35  ;;  %5693 = vrcp.f32 %v4035_v7 }
 0x8d4   : > { %4300 = vmatpush1.bf16.msra.mxu0 %v7785_v16  ;;  %4343 = vmatpush1.bf16.msra.mxu1 %v8881_v36  ;;  %v8893_v16 = vld [vmem:[#allocation30_spill] sm:$0xff]  ;;  %v8894_v36 = vld [vmem:[#allocation31_spill] sm:$0xff] }
 0x8d5   : > { %4301 = vmatprep.subr.bf16.mxu0 %v8882_v63  ;;  %4344 = vmatprep.subr.bf16.mxu1 %v8883_v56 }
 0x8d7   : > { %v5684_v3 = vpop.eup %5683 }
 0x8d8   : > { %v5686_v18 = vpop.eup %5685  ;;  %v4043_v40 = vmul.f32 %v5684_v3, %v5678_v19  ;;  %4302 = vmatpush1.bf16.msra.mxu0 %v7797_v53  ;;  %4345 = vmatpush1.bf16.msra.mxu1 %v7800_v0  ;;  %v8897_v53 = vld [vmem:[#allocation33_spill] sm:$0xff]  ;;  %v8898_v0 = vld [vmem:[#allocation34_spill] sm:$0xff] }
 0x8d9   : > { %v5688_v41 = vpop.eup %5687  ;;  %v4041_v20 = vmul.f32 %v5686_v18, %v8892_v54  ;;  %4303 = vmatprep.subr.bf16.mxu0 %v8893_v16  ;;  %4346 = vmatprep.subr.bf16.mxu1 %v8894_v36  ;;  %v8903_v19 = vld [vmem:[#allocation49_spill] sm:$0xff]  ;;  %v8906_v18 = vld [vmem:[#allocation23_spill] sm:$0xff]  ;;  %v8911_v36 = vld [vmem:[#allocation52_spill] sm:$0xff] }
 0x8da   : > { %v5690_v43 = vpop.eup %5689  ;;  %v4036_v50 = vadd.f32 1.0, %v5688_v41  ;;  %v8908_v54 = vld [vmem:[#allocation47_spill] sm:$0xff] }
 0x8db   : > { %v8179_v57 = vadd.f32 %v4043_v40, %v4041_v20  ;;  %v4044_v63 = vmul.f32 %v5690_v43, %v5682_v24  ;;  %v5692_v56 = vpop.eup %5691  ;;  %v8905_v24 = vld [vmem:[#allocation51_spill] sm:$0xff]  ;;  %v8907_v40 = vld [vmem:[#allocation24_spill] sm:$0xff] }
 0x8dc   : > { %v4042_v4 = vmul.f32 %v5692_v56, %v8895_v52  ;;  %4304 = vmatpush1.bf16.msra.mxu0 %v8896_v44  ;;  %4347 = vmatpush1.bf16.msra.mxu1 %v8897_v53  ;;  %v5694_v3 = vpop.eup %5693  ;;  %v8909_v20 = vld [vmem:[#allocation48_spill] sm:$0xff]  ;;  %v8910_v16 = vld [vmem:[#allocation43_spill] sm:$0xff] }
 0x8dd   : > { %5695 = vtanh.f32 %v8179_v57  ;;  %4305 = vmatprep.subr.bf16.mxu0 %v8898_v0  ;;  %4348 = vmatprep.subr.bf16.mxu1 %v8899_v11  ;;  %v8913_v52 = vld [vmem:[#allocation44_spill] sm:$0xff]  ;;  %v8915_v44 = vld [vmem:[#allocation55_spill] sm:$0xff] }
 0x8de   : > { %v8187_v2 = vadd.f32 %v4044_v63, %v4042_v4  ;;  %5697 = vrcp.f32 %v4036_v50  ;;  %v8912_v50 = vld [vmem:[#allocation53_spill] sm:$0xff]  ;;  %v8914_v4 = vld [vmem:[#allocation54_spill] sm:$0xff] }
 0x8e0   : > { %5699 = vtanh.f32 %v8187_v2  ;;  %4306 = vmatpush1.bf16.msra.mxu0 %v8900_v22  ;;  %4349 = vmatpush1.bf16.msra.mxu1 %v8901_v30 }
 0x8e1   : > { %4307 = vmatprep.subr.bf16.mxu0 %v8902_v61  ;;  %4350 = vmatprep.subr.bf16.mxu1 %v8903_v19 }
 0x8e4   : > { %4308 = vmatpush1.bf16.msra.mxu0 %v8904_v49  ;;  %4351 = vmatpush1.bf16.msra.mxu1 %v8905_v24 }
 0x8e5   : > { %4309 = vmatprep.subr.bf16.mxu0 %v8906_v18  ;;  %4352 = vmatprep.subr.bf16.mxu1 %v8907_v40 }
 0x8e7   : > { %v5696_v7 = vpop.eup %5695 }
 0x8e8   : > { %v4049_v41 = vmul.f32 %v5696_v7, %v5694_v3  ;;  %4310 = vmatpush1.bf16.msra.mxu0 %v8908_v54  ;;  %4353 = vmatpush1.bf16.msra.mxu1 %v8909_v20  ;;  %v5698_v43 = vpop.eup %5697 }
 0x8e9   : > { %4311 = vmatprep.subr.bf16.mxu0 %v8910_v16  ;;  %4354 = vmatprep.subr.bf16.mxu1 %v8911_v36 }
 0x8ea   : > { %4888 = vst [vmem:[%s6363_s12 + $0xd0] sm:$0xff] %v4049_v41  ;;  %v5700_v63 = vpop.eup %5699 }
 0x8eb   : > { %v4050_v56 = vmul.f32 %v5700_v63, %v5698_v43 }
 0x8ec   : > { %4312 = vmatpush1.bf16.msra.mxu0 %v8912_v50  ;;  %4355 = vmatpush1.bf16.msra.mxu1 %v8913_v52 }
 0x8ed   : > { %4389 = vmatprep.subr.bf16.mxu0 %v8914_v4  ;;  %4432 = vmatprep.subr.bf16.mxu1 %v8915_v44  ;;  %4889 = vst [vmem:[%s6363_s12 + $0xd8] sm:$0xff] %v4050_v56  ;;  %v4296_v53 = vpack.c.bf16 %v4050_v56, %v4049_v41 }
 0x8ef   : > { %4330 = vmatmul.mubr.bf16.vlgmr.msra.gmra.mrb[60].mxu0 %v4296_v53  ;;  %4373 = vmatmul.mubr.bf16.vlgmr.msra.gmra.mrb[60].mxu1 %v4296_v53 }
 0x8f0   : > { %4390 = vmatpush1.bf16.msra.mxu0 %v7887_v15  ;;  %4433 = vmatpush1.bf16.msra.mxu1 %v7890_v5 }
 0x8f1   : > { %4391 = vmatprep.subr.bf16.mxu0 %v7893_v10  ;;  %4434 = vmatprep.subr.bf16.mxu1 %v7896_v38 }
 0x8f2   : > { %4421 = vmatprep.mubr.bf16.mxu0 %v8601_v35  ;;  %4464 = vmatprep.mubr.bf16.mxu1 %v8601_v35  ;;  %v5252_v35 = vld [vmem:[%s6352_s9 + $0x78] sm:$0xff]  }
 0x8f4   : > { %4392 = vmatpush1.bf16.msra.mxu0 %v7901_v27  ;;  %4435 = vmatpush1.bf16.msra.mxu1 %v7904_v14 }
 0x8f5   : > { %4393 = vmatprep.subr.bf16.mxu0 %v7907_v28  ;;  %4436 = vmatprep.subr.bf16.mxu1 %v8867_v25 }
 0x8f8   : > { %4394 = vmatpush1.bf16.msra.mxu0 %v8868_v31  ;;  %4437 = vmatpush1.bf16.msra.mxu1 %v8869_v26 }
 0x8f9   : > { %4395 = vmatprep.subr.bf16.mxu0 %v8870_v9  ;;  %4438 = vmatprep.subr.bf16.mxu1 %v8871_v21 }
 0x8fc   : > { %4396 = vmatpush1.bf16.msra.mxu0 %v8872_v13  ;;  %4439 = vmatpush1.bf16.msra.mxu1 %v8873_v60 }
 0x8fd   : > { %4397 = vmatprep.subr.bf16.mxu0 %v7934_v45  ;;  %4440 = vmatprep.subr.bf16.mxu1 %v8874_v1 }
 0x900   : > { %4398 = vmatpush1.bf16.msra.mxu0 %v7941_v48  ;;  %4441 = vmatpush1.bf16.msra.mxu1 %v7944_v6 }
 0x901   : > { %4399 = vmatprep.subr.bf16.mxu0 %v7947_v46  ;;  %4442 = vmatprep.subr.bf16.mxu1 %v7950_v32 }
 0x904   : > { %4400 = vmatpush1.bf16.msra.mxu0 %v7954_v47  ;;  %4443 = vmatpush1.bf16.msra.mxu1 %v8875_v8 }
 0x905   : > { %4401 = vmatprep.subr.bf16.mxu0 %v8876_v62  ;;  %4444 = vmatprep.subr.bf16.mxu1 %v8877_v34 }
 0x908   : > { %4402 = vmatpush1.bf16.msra.mxu0 %v8878_v12  ;;  %4445 = vmatpush1.bf16.msra.mxu1 %v8879_v37 }
 0x909   : > { %4403 = vmatprep.subr.bf16.mxu0 %v8880_v29  ;;  %4446 = vmatprep.subr.bf16.mxu1 %v7978_v17 }
 0x90c   : > { %4404 = vmatpush1.bf16.msra.mxu0 %v7982_v58  ;;  %4447 = vmatpush1.bf16.msra.mxu1 %v7985_v23 }
 0x90f   : > { %4422 = vmatmul.mubr.bf16.vlgmr.msra.gmra.mrb[60].mxu0 %v5252_v35  ;;  %4465 = vmatmul.mubr.bf16.vlgmr.msra.gmra.mrb[60].mxu1 %v5252_v35 }
 0x9a2   : > { %v4183_v46 = vpop.f32.mrb[56].mxu0  ;;  %v4226_v15 = vpop.f32.mrb[56].mxu1 }
 0x9a3   : > { %v4235_v5 = vadd.f32 %v4183_v46, %v8884_v39  ;;  %v4185_v10 = vpop.f32.mrb[57].mxu0  ;;  %v4228_v38 = vpop.f32.mrb[57].mxu1  ;;  %v4237_v31 = vadd.f32 %v4226_v15, %v8887_v59 }
 0x9a4   : > { %v4236_v27 = vadd.f32 %v4185_v10, %v8885_v55  ;;  %v4187_v14 = vpop.f32.mrb[58].mxu0  ;;  %v4230_v28 = vpop.f32.mrb[58].mxu1  ;;  %v4238_v25 = vadd.f32 %v4228_v38, %v8886_v51 }
 0x9a5   : > { %v4893_v45 = vmul.f32 -1.442695, %v4235_v5  ;;  %v4239_v32 = vadd.f32 %v4187_v14, %v8884_v39  ;;  %v4189_v48 = vpop.f32.mrb[59].mxu0  ;;  %v4232_v6 = vpop.f32.mrb[59].mxu1  ;;  %v4241_v21 = vadd.f32 %v4230_v28, %v8887_v59 }
 0x9a6   : > { %v4895_v47 = vmul.f32 -1.442695, %v4236_v27  ;;  %v4240_v58 = vadd.f32 %v4189_v48, %v8885_v55  ;;  %v4897_v26 = vmul.f32 -1.442695, %v4238_v25  ;;  %v4242_v9 = vadd.f32 %v4232_v6, %v8886_v51 }
 0x9a7   : > { %5701 = vpow2.f32 %v4893_v45  ;;  %v4894_v17 = vmul.f32 -1.442695, %v4239_v32 }
 0x9a8   : > { %5703 = vpow2.f32 %v4895_v47  ;;  %v4896_v23 = vmul.f32 -1.442695, %v4240_v58  ;;  %v4898_v8 = vmul.f32 -1.442695, %v4242_v9 }
 0x9a9   : > { %5705 = vpow2.f32 %v4894_v17 }
 0x9aa   : > { %5707 = vpow2.f32 %v4896_v23 }
 0x9ab   : > { %5709 = vtanh.f32 %v4237_v31 }
 0x9ac   : > { %5711 = vpow2.f32 %v4897_v26 }
 0x9ad   : > { %5713 = vtanh.f32 %v4241_v21 }
 0x9b1   : > { %v5702_v13 = vpop.eup %5701 }
 0x9b2   : > { %v5704_v60 = vpop.eup %5703  ;;  %v4249_v1 = vadd.f32 1.0, %v5702_v13 }
 0x9b3   : > { %v4261_v62 = vadd.f32 1.0, %v5704_v60  ;;  %v5706_v34 = vpop.eup %5705 }
 0x9b4   : > { %5715 = vrcp.f32 %v4249_v1  ;;  %v4250_v12 = vadd.f32 1.0, %v5706_v34  ;;  %v5708_v37 = vpop.eup %5707 }
 0x9b5   : > { %5717 = vrcp.f32 %v4261_v62  ;;  %v4262_v29 = vadd.f32 1.0, %v5708_v37  ;;  %v5710_v0 = vpop.eup %5709 }
 0x9b6   : > { %5719 = vpow2.f32 %v4898_v8  ;;  %v5712_v11 = vpop.eup %5711 }
 0x9b7   : > { %5721 = vrcp.f32 %v4250_v12  ;;  %v5714_v22 = vpop.eup %5713  ;;  %v4275_v49 = vadd.f32 1.0, %v5712_v11 }
 0x9b8   : > { %5723 = vrcp.f32 %v4262_v29 }
 0x9b9   : > { %5725 = vrcp.f32 %v4275_v49 }
 0x9be   : > { %v5716_v30 = vpop.eup %5715 }
 0x9bf   : > { %v5718_v61 = vpop.eup %5717  ;;  %v4283_v19 = vmul.f32 %v5716_v30, %v5710_v0 }
 0x9c0   : > { %v5720_v24 = vpop.eup %5719  ;;  %v4281_v3 = vmul.f32 %v5718_v61, %v8112_v33 }
 0x9c1   : > { %v5722_v18 = vpop.eup %5721  ;;  %v4276_v54 = vadd.f32 1.0, %v5720_v24 }
 0x9c2   : > { %v4285_v40 = vadd.f32 %v4283_v19, %v4281_v3  ;;  %v4284_v7 = vmul.f32 %v5722_v18, %v5714_v22  ;;  %v5724_v41 = vpop.eup %5723 }
 0x9c3   : > { %v4282_v20 = vmul.f32 %v5724_v41, %v8116_v42  ;;  %v5726_v16 = vpop.eup %5725 }
 0x9c4   : > { %5727 = vtanh.f32 %v4285_v40  ;;  %4535 = vst [vmem:[#allocation3] sm:$0xff] %v4285_v40 }
 0x9c5   : > { %v4286_v43 = vadd.f32 %v4284_v7, %v4282_v20  ;;  %5729 = vrcp.f32 %v4276_v54 }
 0x9c7   : > { %5731 = vtanh.f32 %v4286_v43  ;;  %4536 = vst [vmem:[#allocation3 + $0x8] sm:$0xff] %v4286_v43 }
 0x9ce   : > { %v5728_v36 = vpop.eup %5727 }
 0x9cf   : > { %v4289_v63 = vmul.f32 %v5728_v36, %v5726_v16  ;;  %v5730_v33 = vpop.eup %5729 }
 0x9d1   : > { %4899 = vst [vmem:[%s6363_s12 + $0xe0] sm:$0xff] %v4289_v63  ;;  %4533 = vst [vmem:[#allocation2] sm:$0xff] %v4289_v63  ;;  %v5732_v56 = vpop.eup %5731 }
 0x9d2   : > { %v4290_v50 = vmul.f32 %v5732_v56, %v5730_v33 }
 0x9d4   : > { %4900 = vst [vmem:[%s6363_s12 + $0xe8] sm:$0xff] %v4290_v50  ;;  %4534 = vst [vmem:[#allocation2 + $0x8] sm:$0xff] %v4290_v50 }
 0x9e2   : > { %v4423_v52 = vpop.f32.mrb[60].mxu0  ;;  %v4466_v4 = vpop.f32.mrb[60].mxu1 }
 0x9e3   : > { %v4475_v44 = vadd.f32 %v4423_v52, %v8884_v39  ;;  %v4425_v53 = vpop.f32.mrb[61].mxu0  ;;  %v4468_v42 = vpop.f32.mrb[61].mxu1  ;;  %v4477_v6 = vadd.f32 %v4466_v4, %v8887_v59 }
 0x9e4   : > { %v4476_v35 = vadd.f32 %v4425_v53, %v8885_v55  ;;  %v4427_v46 = vpop.f32.mrb[62].mxu0  ;;  %v4470_v15 = vpop.f32.mrb[62].mxu1  ;;  %v4478_v48 = vadd.f32 %v4468_v42, %v8886_v51 }
 0x9e5   : > { %v4904_v5 = vmul.f32 -1.442695, %v4475_v44  ;;  %v4479_v10 = vadd.f32 %v4427_v46, %v8884_v39  ;;  %v4429_v38 = vpop.f32.mrb[63].mxu0  ;;  %v4472_v27 = vpop.f32.mrb[63].mxu1  ;;  %v4481_v39 = vadd.f32 %v4470_v15, %v8887_v59 }
 0x9e6   : > { %v4906_v14 = vmul.f32 -1.442695, %v4476_v35  ;;  %v4480_v28 = vadd.f32 %v4429_v38, %v8885_v55  ;;  %v4908_v47 = vmul.f32 -1.442695, %v4478_v48  ;;  %v4482_v58 = vadd.f32 %v4472_v27, %v8886_v51 }
 0x9e7   : > { %5733 = vpow2.f32 %v4904_v5  ;;  %v4905_v45 = vmul.f32 -1.442695, %v4479_v10 }
 0x9e8   : > { %5735 = vpow2.f32 %v4906_v14  ;;  %v4907_v32 = vmul.f32 -1.442695, %v4480_v28  ;;  %v4909_v55 = vmul.f32 -1.442695, %v4482_v58 }
 0x9e9   : > { %5737 = vpow2.f32 %v4905_v45 }
 0x9ea   : > { %5739 = vpow2.f32 %v4907_v32 }
 0x9eb   : > { %5741 = vtanh.f32 %v4477_v6 }
 0x9ec   : > { %5743 = vpow2.f32 %v4908_v47 }
 0x9ed   : > { %5745 = vtanh.f32 %v4481_v39 }
 0x9f1   : > { %v5734_v17 = vpop.eup %5733 }
 0x9f2   : > { %v5736_v23 = vpop.eup %5735  ;;  %v4489_v25 = vadd.f32 1.0, %v5734_v17 }
 0x9f3   : > { %v4501_v31 = vadd.f32 1.0, %v5736_v23  ;;  %v5738_v26 = vpop.eup %5737 }
 0x9f4   : > { %5747 = vrcp.f32 %v4489_v25  ;;  %v4490_v9 = vadd.f32 1.0, %v5738_v26  ;;  %v5740_v21 = vpop.eup %5739 }
 0x9f5   : > { %5749 = vrcp.f32 %v4501_v31  ;;  %v4502_v13 = vadd.f32 1.0, %v5740_v21  ;;  %v5742_v51 = vpop.eup %5741 }
 0x9f6   : > { %5751 = vpow2.f32 %v4909_v55  ;;  %v5744_v60 = vpop.eup %5743 }
 0x9f7   : > { %5753 = vrcp.f32 %v4490_v9  ;;  %v5746_v59 = vpop.eup %5745  ;;  %v4515_v34 = vadd.f32 1.0, %v5744_v60 }
 0x9f8   : > { %5755 = vrcp.f32 %v4502_v13 }
 0x9f9   : > { %5757 = vrcp.f32 %v4515_v34 }
 0x9fe   : > { %v5748_v1 = vpop.eup %5747 }
 0x9ff   : > { %v5750_v8 = vpop.eup %5749  ;;  %v4523_v62 = vmul.f32 %v5748_v1, %v5742_v51 }
 0xa00   : > { %v5752_v12 = vpop.eup %5751  ;;  %v4521_v37 = vmul.f32 %v5750_v8, %v8179_v57 }
 0xa01   : > { %v5754_v29 = vpop.eup %5753  ;;  %v4516_v30 = vadd.f32 1.0, %v5752_v12 }
 0xa02   : > { %v4525_v0 = vadd.f32 %v4523_v62, %v4521_v37  ;;  %v4524_v11 = vmul.f32 %v5754_v29, %v5746_v59  ;;  %v5756_v22 = vpop.eup %5755 }
 0xa03   : > { %v4522_v61 = vmul.f32 %v5756_v22, %v8187_v2  ;;  %v5758_v57 = vpop.eup %5757 }
 0xa04   : > { %5759 = vtanh.f32 %v4525_v0  ;;  %4539 = vst [vmem:[#allocation3 + $0x10] sm:$0xff] %v4525_v0 }
 0xa05   : > { %v4526_v19 = vadd.f32 %v4524_v11, %v4522_v61  ;;  %5761 = vrcp.f32 %v4516_v30 }
 0xa07   : > { %5763 = vtanh.f32 %v4526_v19  ;;  %4540 = vst [vmem:[#allocation3 + $0x18] sm:$0xff] %v4526_v19 }
 0xa0e   : > { %v5760_v49 = vpop.eup %5759 }
 0xa0f   : > { %v4529_v24 = vmul.f32 %v5760_v49, %v5758_v57  ;;  %v5762_v3 = vpop.eup %5761 }
 0xa11   : > { %4910 = vst [vmem:[%s6363_s12 + $0xf0] sm:$0xff] %v4529_v24  ;;  %4537 = vst [vmem:[#allocation2 + $0x10] sm:$0xff] %v4529_v24  ;;  %v5764_v18 = vpop.eup %5763 }
 0xa12   : > { %v4530_v2 = vmul.f32 %v5764_v18, %v5762_v3 }
 0xa14   : > { %4911 = vst [vmem:[%s6363_s12 + $0xf8] sm:$0xff] %v4530_v2  ;;  %4538 = vst [vmem:[#allocation2 + $0x18] sm:$0xff] %v4530_v2 }
 0xa15   : > { %6056 = shalt.err (!%p6053_p9)
}
 0xa16   : > { %s6057_s10 = scalar_lea.hbm %s8269_s24, 4096  ;;  %s6061_s12 = scalar_lea.hbm %s8324_s4, 16384 }
 0xa17   : > { %p6058_p12 = scmp.ne.s32.totalorder %s8269_s24, %s6057_s10  ;;  %p6062_p7 = scmp.lt.u32.totalorder %s8269_s24, %s8324_s4 }
 0xa18   : > { %p6063_p10 = scmp.lt.u32.totalorder %s6061_s12, %s6057_s10  ;;  %p6065_p2 = scmp.lt.u32.totalorder %s6057_s10, %s8269_s24 }
 0xa19   : > { %p6059_p11 = pnand %p6058_p12, %p6293_p8 }
 0xa1a   : > { %p6064_p1 = por %p6063_p10, %p6062_p7 }
 0xa1b   : > { %p6060_p3 = pneg %p6059_p11 }
 0xa1c   : > { %p6066_p4 = por %p6065_p2, %p6064_p1 }
 0xa1e   : > { %p6067_p6 = pnand %p6066_p4, %p6060_p3 }
 0xa20   : > { %6070 = shalt.err (!%p6067_p6)
}
 0xa21   : > { %s6141_s13 = smov 128   ;;  %s6142_s14 = smov 8  }
 0xa22   : > { %5060 = dma.vmem_to_hbm [thread:$0]  (%p6293_p8), %s8271_s29, 4096, %s8269_s24, %s4542_s7, %s6141_s13, %s6141_s13, %s6142_s14  }
 0xa23 PF: > { %p5082_p13 = scmp.ge.s32.totalorder %s6129_s20, 2  ;;  %s4573_s11 = sand.u32 1, %s6109_s15  }
 0xa24   : > { %p8916_p0 = scmp.ne.s32.totalorder %s8566_s26, 0  ;;  %s4574_s18 = scalar_lea.sflag [#allocation6], %s4573_s11 }
 0xa26   : > { %p5074_p5 = pnand %p5082_p13, %p8916_p0 }
 0xa28   : > { %6104 = dma.done.wait (!%p5074_p5), %s4574_s18, 4096  }
 0xa29   : > { %6106 = vsyncadd (!%p5074_p5), %s4574_s18, 4294963200  ;;  %s21_s20 = sadd.s32 1, %s6129_s20   ;;  %s8917_s15 = smov %s6113_s16 }
 0xa2a   : > { %p18_p9 = scmp.ge.s32.totalorder %s21_s20, 6   ;;  %s8918_s16 = smov %s6117_s17 }
 0xa2b   : > { %s8919_s17 = smov %s6302_s22  ;;  %s8920_s18 = smov %s6125_s19 }
 0xa2c   : > { %s8921_s19 = smov %s8923_s5  ;;  %20 = sbr.rel (!%p18_p9) target bundleno = 7 (0x7), region = 107 }
 0xa33   :  { %4579 = vsyncpa [#allocation5], 1 }
 0xa34   :  { %4581 = vsyncpa [#allocation5 + $0x1], 1 }
 0xa35   :  { %4582 = vsyncpa [#allocation8], 1 }
 0xa36   :  { %4583 = vsyncpa [#allocation6], 1 }
 0xa37   :  { %4585 = vsyncpa [#allocation6 + $0x1], 1 }

</bundles_post_ra>
